<compile_context>
chip_gen: v5e
topology: v5e:2x2
jax: 0.10.0
libtpu: 0.0.40
codegen_flags: <defaults>
</compile_context>

<pallas_src>
import math
import jax
import jax.numpy as jnp
from jax.experimental import pallas as pl
from jax.experimental.pallas import tpu as pltpu


def _round_up(x, m):
    return ((x + m - 1) // m) * m


def _pick_tile(total, candidates):
    for c in candidates:
        if total % c == 0:
            return c
    return total


# ---------------------------------------------------------------------------
# Kernel 1: LSTM recurrence.
# Grid = (batch_tiles [parallel], time_blocks [arbitrary]); each grid step runs
# Tc timesteps for one batch tile.  Fused gate weights stay VMEM-resident
# (constant index_map), h/c persist in VMEM scratch across time blocks.
# ---------------------------------------------------------------------------
def _lstm_kernel(x_ref, wx_ref, wh_ref, b_ref, h_out_ref, h_scr, c_scr):
    """
    x_ref     : (Tc, Bt, Ep)  embedded inputs for this time block / batch tile
    wx_ref    : (Ep, 4*Hp)    fused input->gate weights, gate order [i, f, g, o]
    wh_ref    : (Hp, 4*Hp)    fused hidden->gate weights
    b_ref     : (1, 4*Hp)     fused gate biases
    h_out_ref : (Tc, Bt, Hp)  hidden states for all Tc steps
    h_scr/c_scr : (Bt, Hp) f32 recurrent state, persists across time blocks
    """
    @pl.when(pl.program_id(1) == 0)
    def _():
        h_scr[...] = jnp.zeros_like(h_scr)
        c_scr[...] = jnp.zeros_like(c_scr)

    wh = wh_ref[...]
    hp = h_scr.shape[-1]
    t_block, bt, ep = x_ref.shape

    # Input->gate contribution for the whole time block in one lane-dense GEMM
    # (it does not depend on the recurrence); bias folded in.
    xg = (jnp.dot(x_ref[...].reshape(t_block * bt, ep), wx_ref[...],
                  preferred_element_type=jnp.float32)
          + b_ref[...]).reshape(t_block, bt, 4 * hp)

    # Fully-unrolled recurrent loop: 1 MXU push (h @ Wh) + VPU/EUP gate math per step.
    for tc in range(t_block):
        gates = xg[tc] + jnp.dot(h_scr[...], wh,
                                 preferred_element_type=jnp.float32)   # (Bt, 4*Hp)
        i_t = jax.nn.sigmoid(gates[:, 0 * hp:1 * hp])
        f_t = jax.nn.sigmoid(gates[:, 1 * hp:2 * hp])
        g_t = jnp.tanh(gates[:, 2 * hp:3 * hp])
        o_t = jax.nn.sigmoid(gates[:, 3 * hp:4 * hp])
        c_t = g_t * i_t + c_scr[...] * f_t
        h_t = jnp.tanh(c_t) * o_t
        c_scr[...] = c_t
        h_scr[...] = h_t
        h_out_ref[tc] = h_t


# ---------------------------------------------------------------------------
# Kernel 2: vocab projection  logits = H @ Wfc + bfc, tiled over (M, V).
# ---------------------------------------------------------------------------
def _proj_kernel(h_ref, w_ref, b_ref, out_ref):
    out_ref[...] = (jnp.dot(h_ref[...], w_ref[...],
                            preferred_element_type=jnp.float32)
                    + b_ref[...])


def text_generation_forward(x_ids, params, *, t_block=8):
    """x_ids: int32 [T, B] token indices.  Returns logits [T, B, V] float32."""
    emb_table = params["embedding"]                      # (V, E)
    wx, wh, b = params["wx"], params["wh"], params["b"]  # (4,E,H),(4,H,H),(4,1,H)
    wfc, bfc = params["wfc"], params["bfc"]              # (H,V),(1,V)

    T, B = x_ids.shape
    V, E = emb_table.shape
    H = wh.shape[-1]

    # vreg-friendly padded sizes: sublanes (8) on batch, lanes (128) on E/H/V.
    Bp = _round_up(B, 8)
    Ep = _round_up(E, 128)
    Hp = _round_up(H, 128)
    Vp = _round_up(V, 128)
    Tc = max(1, min(t_block, T))
    Tp = _round_up(T, Tc)

    # Fuse gates along a 4*Hp axis in order [i, f, g, o]; zero padding keeps the
    # padded hidden/embedding lanes inert (padded h/c lanes stay exactly 0).
    wx_f = jnp.concatenate(
        [jnp.pad(wx[k], ((0, Ep - E), (0, Hp - H))) for k in range(4)], axis=1)
    wh_f = jnp.concatenate(
        [jnp.pad(wh[k], ((0, Hp - H), (0, Hp - H))) for k in range(4)], axis=1)
    b_f = jnp.concatenate(
        [jnp.pad(b[k], ((0, 0), (0, Hp - H))) for k in range(4)], axis=1)
    wfc_p = jnp.pad(wfc, ((0, Hp - H), (0, Vp - V)))
    bfc_p = jnp.pad(bfc, ((0, 0), (0, Vp - V)))

    # Embedding lookup (plain-JAX gather glue) + padding to (Tp, Bp, Ep).
    # TODO(synk): stream embedding rows via scalar-prefetched gather instead of
    # materializing the [T, B, E] embeds array in HBM.
    embeds = jnp.take(emb_table, x_ids, axis=0)
    embeds = jnp.pad(embeds, ((0, Tp - T), (0, Bp - B), (0, Ep - E)))

    # Batch-tile axis: 2 tiles when the padded batch allows -> keeps v7x's 2nd
    # TensorCore busy; a single tile (no-op) on small batches / v5e / v6e.
    nb = 2 if (Bp % 16 == 0) else 1
    Bt = Bp // nb
    nt = Tp // Tc

    hs = pl.pallas_call(
        _lstm_kernel,
        out_shape=jax.ShapeDtypeStruct((Tp, Bp, Hp), jnp.float32),
        grid_spec=pltpu.PrefetchScalarGridSpec(
            num_scalar_prefetch=0,
            grid=(nb, nt),
            in_specs=[
                pl.BlockSpec((Tc, Bt, Ep), lambda bi, ti: (ti, bi, 0)),   # embeds
                pl.BlockSpec((Ep, 4 * Hp), lambda bi, ti: (0, 0)),        # wx fused
                pl.BlockSpec((Hp, 4 * Hp), lambda bi, ti: (0, 0)),        # wh fused
                pl.BlockSpec((1, 4 * Hp), lambda bi, ti: (0, 0)),         # bias fused
            ],
            out_specs=pl.BlockSpec((Tc, Bt, Hp), lambda bi, ti: (ti, bi, 0)),
            scratch_shapes=[
                pltpu.VMEM((Bt, Hp), jnp.float32),   # h_t
                pltpu.VMEM((Bt, Hp), jnp.float32),   # c_t
            ],
        ),
        compiler_params=pltpu.CompilerParams(
            dimension_semantics=("parallel", "arbitrary"),
            vmem_limit_bytes=48 * 1024 * 1024,
        ),
    )(embeds, wx_f, wh_f, b_f)

    # One large lane-dense GEMM for the vocab projection, tiled over (M, V).
    Mp = Tp * Bp
    h2d = hs.reshape(Mp, Hp)
    tm = _pick_tile(Mp, (512, 256, 128, 64, 32, 16, 8))
    tn = _pick_tile(Vp, (512, 256, 128))

    logits_p = pl.pallas_call(
        _proj_kernel,
        out_shape=jax.ShapeDtypeStruct((Mp, Vp), jnp.float32),
        grid_spec=pltpu.PrefetchScalarGridSpec(
            num_scalar_prefetch=0,
            grid=(Mp // tm, Vp // tn),
            in_specs=[
                pl.BlockSpec((tm, Hp), lambda i, j: (i, 0)),   # hidden states
                pl.BlockSpec((Hp, tn), lambda i, j: (0, j)),   # wfc (V-tiled)
                pl.BlockSpec((1, tn), lambda i, j: (0, j)),    # bfc
            ],
            out_specs=pl.BlockSpec((tm, tn), lambda i, j: (i, j)),
        ),
        compiler_params=pltpu.CompilerParams(
            dimension_semantics=("parallel", "parallel"),
            vmem_limit_bytes=48 * 1024 * 1024,
        ),
    )(h2d, wfc_p, bfc_p)

    return logits_p.reshape(Tp, Bp, Vp)[:T, :B, :V]


def init_params(key, vocab_size, embed_size, hidden_size):
    """Deterministic synthetic init mirroring the module's parameter shapes."""
    sigma = 1.0 / math.sqrt(hidden_size)
    ks = jax.random.split(key, 6)
    wx = jax.random.uniform(ks[0], (4, embed_size, hidden_size),
                            jnp.float32, -sigma, sigma)
    wh = jax.random.uniform(ks[1], (4, hidden_size, hidden_size),
                            jnp.float32, -sigma, sigma)
    b = jax.random.uniform(ks[2], (4, 1, hidden_size),
                           jnp.float32, -sigma, sigma)
    embedding = jax.random.normal(ks[3], (vocab_size, embed_size), jnp.float32)
    lim = 1.0 / math.sqrt(hidden_size)
    wfc = jax.random.uniform(ks[4], (hidden_size, vocab_size),
                             jnp.float32, -lim, lim)
    bfc = jax.random.uniform(ks[5], (1, vocab_size), jnp.float32, -lim, lim)
    return {"embedding": embedding, "wx": wx, "wh": wh, "b": b,
            "wfc": wfc, "bfc": bfc}


def reference_forward(x_ids, params):
    """Pure-JAX reference of the PyTorch forward for the correctness check."""
    embeds = jnp.take(params["embedding"], x_ids, axis=0)  # [T, B, E]
    T, B, _ = embeds.shape
    H = params["wh"].shape[-1]
    wx, wh, b = params["wx"], params["wh"], params["b"]

    def step(carry, x_t):
        h, c = carry
        i_t = jax.nn.sigmoid(x_t @ wx[0] + h @ wh[0] + b[0])
        f_t = jax.nn.sigmoid(x_t @ wx[1] + h @ wh[1] + b[1])
        g_t = jnp.tanh(x_t @ wx[2] + h @ wh[2] + b[2])
        o_t = jax.nn.sigmoid(x_t @ wx[3] + h @ wh[3] + b[3])
        c = g_t * i_t + c * f_t
        h = jnp.tanh(c) * o_t
        return (h, c), h

    h0 = jnp.zeros((B, H), jnp.float32)
    c0 = jnp.zeros((B, H), jnp.float32)
    _, hs = jax.lax.scan(step, (h0, c0), embeds)
    return hs @ params["wfc"] + params["bfc"]


if __name__ == "__main__":
    T, B = 8, 4           # sequence length, batch size
    VOCAB, EMB, HID = 24, 16, 32

    key = jax.random.PRNGKey(0)
    pkey, xkey = jax.random.split(key)
    params = init_params(pkey, VOCAB, EMB, HID)
    x_ids = jax.random.randint(xkey, (T, B), 0, VOCAB, dtype=jnp.int32)

    logits = jax.block_until_ready(text_generation_forward(x_ids, params))
    ref = jax.block_until_ready(reference_forward(x_ids, params))

    assert logits.shape == (T, B, VOCAB)
    assert jnp.allclose(logits, ref, atol=1e-4, rtol=1e-4), "mismatch vs reference"

    print("KERNEL_OK")
</pallas_src>

<mosaic_0001>
module attributes {stable_mosaic.version = 11 : i64} {
  func.func @_lstm_kernel(%arg0: i32, %arg1: i32, %arg2: memref<8x8x128xf32, #tpu.memory_space<vmem>>, %arg3: memref<128x512xf32, #tpu.memory_space<vmem>>, %arg4: memref<128x512xf32, #tpu.memory_space<vmem>>, %arg5: memref<1x512xf32, #tpu.memory_space<vmem>>, %arg6: memref<8x8x128xf32, #tpu.memory_space<vmem>>, %arg7: memref<8x128xf32, #tpu.memory_space<vmem>>, %arg8: memref<8x128xf32, #tpu.memory_space<vmem>>) attributes {dimension_semantics = [#tpu.dimension_semantics<parallel>, #tpu.dimension_semantics<arbitrary>], iteration_bounds = array<i64: 1, 1>, scalar_prefetch = 0 : i64, scratch_operands = 2 : i64, tpu.core_type = #tpu.core_type<tc>, window_params = [{transform_indices = @transform_0, window_bounds = array<i64: 8, 8, 128>}, {pipeline_mode = #tpu.pipeline_mode<synchronous>, transform_indices = @transform_1, window_bounds = array<i64: 128, 512>}, {pipeline_mode = #tpu.pipeline_mode<synchronous>, transform_indices = @transform_2, window_bounds = array<i64: 128, 512>}, {pipeline_mode = #tpu.pipeline_mode<synchronous>, transform_indices = @transform_3, window_bounds = array<i64: 1, 512>}, {transform_indices = @transform_4, window_bounds = array<i64: 8, 8, 128>}]} {
    %c0_i32 = arith.constant 0 : i32
    %0 = arith.cmpi eq, %arg1, %c0_i32 : i32
    %1 = arith.extui %0 : i1 to i32
    %c0_i32_0 = arith.constant 0 : i32
    %2 = arith.cmpi ne, %1, %c0_i32_0 : i32
    scf.if %2 {
      %cst_122 = arith.constant 0.000000e+00 : f32
      %300 = vector.broadcast %cst_122 : f32 to vector<8x128xf32>
      %c0_123 = arith.constant 0 : index
      %c0_124 = arith.constant 0 : index
      %301 = vector.load %arg7[%c0_123, %c0_124] : memref<8x128xf32, #tpu.memory_space<vmem>>, vector<8x128xf32>
      tpu.vector_store %arg7[%c0_123, %c0_124], %300 {strides = array<i32>} : memref<8x128xf32, #tpu.memory_space<vmem>>, vector<8x128xf32>,
      %cst_125 = arith.constant 0.000000e+00 : f32
      %302 = vector.broadcast %cst_125 : f32 to vector<8x128xf32>
      %c0_126 = arith.constant 0 : index
      %c0_127 = arith.constant 0 : index
      %303 = vector.load %arg8[%c0_126, %c0_127] : memref<8x128xf32, #tpu.memory_space<vmem>>, vector<8x128xf32>
      tpu.vector_store %arg8[%c0_126, %c0_127], %302 {strides = array<i32>} : memref<8x128xf32, #tpu.memory_space<vmem>>, vector<8x128xf32>,
    } else {
    }
    %c0 = arith.constant 0 : index
    %c0_1 = arith.constant 0 : index
    %3 = vector.load %arg4[%c0, %c0_1] : memref<128x512xf32, #tpu.memory_space<vmem>>, vector<128x512xf32>
    %c0_2 = arith.constant 0 : index
    %c0_3 = arith.constant 0 : index
    %c0_4 = arith.constant 0 : index
    %4 = vector.load %arg2[%c0_2, %c0_3, %c0_4] : memref<8x8x128xf32, #tpu.memory_space<vmem>>, vector<8x8x128xf32>
    %5 = vector.shape_cast %4 : vector<8x8x128xf32> to vector<64x128xf32>
    %c0_5 = arith.constant 0 : index
    %c0_6 = arith.constant 0 : index
    %6 = vector.load %arg3[%c0_5, %c0_6] : memref<128x512xf32, #tpu.memory_space<vmem>>, vector<128x512xf32>
    %cst = arith.constant dense<0.000000e+00> : vector<64x512xf32>
    %7 = tpu.matmul %5, %6, %cst {dimension_numbers = #tpu.dot_dimension_numbers<[1], [0], [0], [1], [0, 0, 1, 1], [], []>} : vector<64x128xf32>, vector<128x512xf32>, vector<64x512xf32> -> vector<64x512xf32>
    %c0_7 = arith.constant 0 : index
    %c0_8 = arith.constant 0 : index
    %8 = vector.load %arg5[%c0_7, %c0_8] : memref<1x512xf32, #tpu.memory_space<vmem>>, vector<1x512xf32>
    %9 = vector.broadcast %8 : vector<1x512xf32> to vector<64x512xf32>
    %10 = arith.addf %7, %9 : vector<64x512xf32>
    %11 = vector.shape_cast %10 : vector<64x512xf32> to vector<8x8x512xf32>
    %12 = vector.extract_strided_slice %11 {offsets = [0, 0, 0], sizes = [1, 8, 512], strides = [1, 1, 1]} : vector<8x8x512xf32> to vector<1x8x512xf32>
    %13 = vector.shape_cast %12 : vector<1x8x512xf32> to vector<8x512xf32>
    %c0_9 = arith.constant 0 : index
    %c0_10 = arith.constant 0 : index
    %14 = vector.load %arg7[%c0_9, %c0_10] : memref<8x128xf32, #tpu.memory_space<vmem>>, vector<8x128xf32>
    %cst_11 = arith.constant dense<0.000000e+00> : vector<8x512xf32>
    %15 = tpu.matmul %14, %3, %cst_11 {dimension_numbers = #tpu.dot_dimension_numbers<[1], [0], [0], [1], [0, 0, 1, 1], [], []>} : vector<8x128xf32>, vector<128x512xf32>, vector<8x512xf32> -> vector<8x512xf32>
    %16 = arith.addf %13, %15 : vector<8x512xf32>
    %17 = vector.extract_strided_slice %16 {offsets = [0, 0], sizes = [8, 128], strides = [1, 1]} : vector<8x512xf32> to vector<8x128xf32>
    %18 = arith.negf %17 : vector<8x128xf32>
    %19 = math.exp %18 : vector<8x128xf32>
    %cst_12 = arith.constant 1.000000e+00 : f32
    %20 = vector.broadcast %cst_12 : f32 to vector<8x128xf32>
    %21 = arith.addf %20, %19 : vector<8x128xf32>
    %22 = arith.divf %20, %21 : vector<8x128xf32>
    %23 = vector.extract_strided_slice %16 {offsets = [0, 128], sizes = [8, 128], strides = [1, 1]} : vector<8x512xf32> to vector<8x128xf32>
    %24 = arith.negf %23 : vector<8x128xf32>
    %25 = math.exp %24 : vector<8x128xf32>
    %cst_13 = arith.constant 1.000000e+00 : f32
    %26 = vector.broadcast %cst_13 : f32 to vector<8x128xf32>
    %27 = arith.addf %26, %25 : vector<8x128xf32>
    %28 = arith.divf %26, %27 : vector<8x128xf32>
    %29 = vector.extract_strided_slice %16 {offsets = [0, 256], sizes = [8, 128], strides = [1, 1]} : vector<8x512xf32> to vector<8x128xf32>
    %30 = math.tanh %29 : vector<8x128xf32>
    %31 = vector.extract_strided_slice %16 {offsets = [0, 384], sizes = [8, 128], strides = [1, 1]} : vector<8x512xf32> to vector<8x128xf32>
    %32 = arith.negf %31 : vector<8x128xf32>
    %33 = math.exp %32 : vector<8x128xf32>
    %cst_14 = arith.constant 1.000000e+00 : f32
    %34 = vector.broadcast %cst_14 : f32 to vector<8x128xf32>
    %35 = arith.addf %34, %33 : vector<8x128xf32>
    %36 = arith.divf %34, %35 : vector<8x128xf32>
    %37 = arith.mulf %30, %22 : vector<8x128xf32>
    %c0_15 = arith.constant 0 : index
    %c0_16 = arith.constant 0 : index
    %38 = vector.load %arg8[%c0_15, %c0_16] : memref<8x128xf32, #tpu.memory_space<vmem>>, vector<8x128xf32>
    %39 = arith.mulf %38, %28 : vector<8x128xf32>
    %40 = arith.addf %37, %39 : vector<8x128xf32>
    %41 = math.tanh %40 : vector<8x128xf32>
    %42 = arith.mulf %41, %36 : vector<8x128xf32>
    %c0_17 = arith.constant 0 : index
    %c0_18 = arith.constant 0 : index
    %43 = vector.load %arg8[%c0_17, %c0_18] : memref<8x128xf32, #tpu.memory_space<vmem>>, vector<8x128xf32>
    tpu.vector_store %arg8[%c0_17, %c0_18], %40 {strides = array<i32>} : memref<8x128xf32, #tpu.memory_space<vmem>>, vector<8x128xf32>,
    %c0_19 = arith.constant 0 : index
    %c0_20 = arith.constant 0 : index
    %44 = vector.load %arg7[%c0_19, %c0_20] : memref<8x128xf32, #tpu.memory_space<vmem>>, vector<8x128xf32>
    tpu.vector_store %arg7[%c0_19, %c0_20], %42 {strides = array<i32>} : memref<8x128xf32, #tpu.memory_space<vmem>>, vector<8x128xf32>,
    %c0_21 = arith.constant 0 : index
    %c0_22 = arith.constant 0 : index
    %c0_23 = arith.constant 0 : index
    %45 = vector.load %arg6[%c0_21, %c0_22, %c0_23] : memref<8x8x128xf32, #tpu.memory_space<vmem>>, vector<1x8x128xf32>
    %46 = vector.shape_cast %45 : vector<1x8x128xf32> to vector<8x128xf32>
    %47 = vector.shape_cast %42 : vector<8x128xf32> to vector<1x8x128xf32>
    tpu.vector_store %arg6[%c0_21, %c0_22, %c0_23], %47 {strides = array<i32>} : memref<8x8x128xf32, #tpu.memory_space<vmem>>, vector<1x8x128xf32>,
    %48 = vector.extract_strided_slice %11 {offsets = [1, 0, 0], sizes = [1, 8, 512], strides = [1, 1, 1]} : vector<8x8x512xf32> to vector<1x8x512xf32>
    %49 = vector.shape_cast %48 : vector<1x8x512xf32> to vector<8x512xf32>
    %c0_24 = arith.constant 0 : index
    %c0_25 = arith.constant 0 : index
    %50 = vector.load %arg7[%c0_24, %c0_25] : memref<8x128xf32, #tpu.memory_space<vmem>>, vector<8x128xf32>
    %cst_26 = arith.constant dense<0.000000e+00> : vector<8x512xf32>
    %51 = tpu.matmul %50, %3, %cst_26 {dimension_numbers = #tpu.dot_dimension_numbers<[1], [0], [0], [1], [0, 0, 1, 1], [], []>} : vector<8x128xf32>, vector<128x512xf32>, vector<8x512xf32> -> vector<8x512xf32>
    %52 = arith.addf %49, %51 : vector<8x512xf32>
    %53 = vector.extract_strided_slice %52 {offsets = [0, 0], sizes = [8, 128], strides = [1, 1]} : vector<8x512xf32> to vector<8x128xf32>
    %54 = arith.negf %53 : vector<8x128xf32>
    %55 = math.exp %54 : vector<8x128xf32>
    %cst_27 = arith.constant 1.000000e+00 : f32
    %56 = vector.broadcast %cst_27 : f32 to vector<8x128xf32>
    %57 = arith.addf %56, %55 : vector<8x128xf32>
    %58 = arith.divf %56, %57 : vector<8x128xf32>
    %59 = vector.extract_strided_slice %52 {offsets = [0, 128], sizes = [8, 128], strides = [1, 1]} : vector<8x512xf32> to vector<8x128xf32>
    %60 = arith.negf %59 : vector<8x128xf32>
    %61 = math.exp %60 : vector<8x128xf32>
    %cst_28 = arith.constant 1.000000e+00 : f32
    %62 = vector.broadcast %cst_28 : f32 to vector<8x128xf32>
    %63 = arith.addf %62, %61 : vector<8x128xf32>
    %64 = arith.divf %62, %63 : vector<8x128xf32>
    %65 = vector.extract_strided_slice %52 {offsets = [0, 256], sizes = [8, 128], strides = [1, 1]} : vector<8x512xf32> to vector<8x128xf32>
    %66 = math.tanh %65 : vector<8x128xf32>
    %67 = vector.extract_strided_slice %52 {offsets = [0, 384], sizes = [8, 128], strides = [1, 1]} : vector<8x512xf32> to vector<8x128xf32>
    %68 = arith.negf %67 : vector<8x128xf32>
    %69 = math.exp %68 : vector<8x128xf32>
    %cst_29 = arith.constant 1.000000e+00 : f32
    %70 = vector.broadcast %cst_29 : f32 to vector<8x128xf32>
    %71 = arith.addf %70, %69 : vector<8x128xf32>
    %72 = arith.divf %70, %71 : vector<8x128xf32>
    %73 = arith.mulf %66, %58 : vector<8x128xf32>
    %c0_30 = arith.constant 0 : index
    %c0_31 = arith.constant 0 : index
    %74 = vector.load %arg8[%c0_30, %c0_31] : memref<8x128xf32, #tpu.memory_space<vmem>>, vector<8x128xf32>
    %75 = arith.mulf %74, %64 : vector<8x128xf32>
    %76 = arith.addf %73, %75 : vector<8x128xf32>
    %77 = math.tanh %76 : vector<8x128xf32>
    %78 = arith.mulf %77, %72 : vector<8x128xf32>
    %c0_32 = arith.constant 0 : index
    %c0_33 = arith.constant 0 : index
    %79 = vector.load %arg8[%c0_32, %c0_33] : memref<8x128xf32, #tpu.memory_space<vmem>>, vector<8x128xf32>
    tpu.vector_store %arg8[%c0_32, %c0_33], %76 {strides = array<i32>} : memref<8x128xf32, #tpu.memory_space<vmem>>, vector<8x128xf32>,
    %c0_34 = arith.constant 0 : index
    %c0_35 = arith.constant 0 : index
    %80 = vector.load %arg7[%c0_34, %c0_35] : memref<8x128xf32, #tpu.memory_space<vmem>>, vector<8x128xf32>
    tpu.vector_store %arg7[%c0_34, %c0_35], %78 {strides = array<i32>} : memref<8x128xf32, #tpu.memory_space<vmem>>, vector<8x128xf32>,
    %c1 = arith.constant 1 : index
    %c0_36 = arith.constant 0 : index
    %c0_37 = arith.constant 0 : index
    %81 = vector.load %arg6[%c1, %c0_36, %c0_37] : memref<8x8x128xf32, #tpu.memory_space<vmem>>, vector<1x8x128xf32>
    %82 = vector.shape_cast %81 : vector<1x8x128xf32> to vector<8x128xf32>
    %83 = vector.shape_cast %78 : vector<8x128xf32> to vector<1x8x128xf32>
    tpu.vector_store %arg6[%c1, %c0_36, %c0_37], %83 {strides = array<i32>} : memref<8x8x128xf32, #tpu.memory_space<vmem>>, vector<1x8x128xf32>,
    %84 = vector.extract_strided_slice %11 {offsets = [2, 0, 0], sizes = [1, 8, 512], strides = [1, 1, 1]} : vector<8x8x512xf32> to vector<1x8x512xf32>
    %85 = vector.shape_cast %84 : vector<1x8x512xf32> to vector<8x512xf32>
    %c0_38 = arith.constant 0 : index
    %c0_39 = arith.constant 0 : index
    %86 = vector.load %arg7[%c0_38, %c0_39] : memref<8x128xf32, #tpu.memory_space<vmem>>, vector<8x128xf32>
    %cst_40 = arith.constant dense<0.000000e+00> : vector<8x512xf32>
    %87 = tpu.matmul %86, %3, %cst_40 {dimension_numbers = #tpu.dot_dimension_numbers<[1], [0], [0], [1], [0, 0, 1, 1], [], []>} : vector<8x128xf32>, vector<128x512xf32>, vector<8x512xf32> -> vector<8x512xf32>
    %88 = arith.addf %85, %87 : vector<8x512xf32>
    %89 = vector.extract_strided_slice %88 {offsets = [0, 0], sizes = [8, 128], strides = [1, 1]} : vector<8x512xf32> to vector<8x128xf32>
    %90 = arith.negf %89 : vector<8x128xf32>
    %91 = math.exp %90 : vector<8x128xf32>
    %cst_41 = arith.constant 1.000000e+00 : f32
    %92 = vector.broadcast %cst_41 : f32 to vector<8x128xf32>
    %93 = arith.addf %92, %91 : vector<8x128xf32>
    %94 = arith.divf %92, %93 : vector<8x128xf32>
    %95 = vector.extract_strided_slice %88 {offsets = [0, 128], sizes = [8, 128], strides = [1, 1]} : vector<8x512xf32> to vector<8x128xf32>
    %96 = arith.negf %95 : vector<8x128xf32>
    %97 = math.exp %96 : vector<8x128xf32>
    %cst_42 = arith.constant 1.000000e+00 : f32
    %98 = vector.broadcast %cst_42 : f32 to vector<8x128xf32>
    %99 = arith.addf %98, %97 : vector<8x128xf32>
    %100 = arith.divf %98, %99 : vector<8x128xf32>
    %101 = vector.extract_strided_slice %88 {offsets = [0, 256], sizes = [8, 128], strides = [1, 1]} : vector<8x512xf32> to vector<8x128xf32>
    %102 = math.tanh %101 : vector<8x128xf32>
    %103 = vector.extract_strided_slice %88 {offsets = [0, 384], sizes = [8, 128], strides = [1, 1]} : vector<8x512xf32> to vector<8x128xf32>
    %104 = arith.negf %103 : vector<8x128xf32>
    %105 = math.exp %104 : vector<8x128xf32>
    %cst_43 = arith.constant 1.000000e+00 : f32
    %106 = vector.broadcast %cst_43 : f32 to vector<8x128xf32>
    %107 = arith.addf %106, %105 : vector<8x128xf32>
    %108 = arith.divf %106, %107 : vector<8x128xf32>
    %109 = arith.mulf %102, %94 : vector<8x128xf32>
    %c0_44 = arith.constant 0 : index
    %c0_45 = arith.constant 0 : index
    %110 = vector.load %arg8[%c0_44, %c0_45] : memref<8x128xf32, #tpu.memory_space<vmem>>, vector<8x128xf32>
    %111 = arith.mulf %110, %100 : vector<8x128xf32>
    %112 = arith.addf %109, %111 : vector<8x128xf32>
    %113 = math.tanh %112 : vector<8x128xf32>
    %114 = arith.mulf %113, %108 : vector<8x128xf32>
    %c0_46 = arith.constant 0 : index
    %c0_47 = arith.constant 0 : index
    %115 = vector.load %arg8[%c0_46, %c0_47] : memref<8x128xf32, #tpu.memory_space<vmem>>, vector<8x128xf32>
    tpu.vector_store %arg8[%c0_46, %c0_47], %112 {strides = array<i32>} : memref<8x128xf32, #tpu.memory_space<vmem>>, vector<8x128xf32>,
    %c0_48 = arith.constant 0 : index
    %c0_49 = arith.constant 0 : index
    %116 = vector.load %arg7[%c0_48, %c0_49] : memref<8x128xf32, #tpu.memory_space<vmem>>, vector<8x128xf32>
    tpu.vector_store %arg7[%c0_48, %c0_49], %114 {strides = array<i32>} : memref<8x128xf32, #tpu.memory_space<vmem>>, vector<8x128xf32>,
    %c2 = arith.constant 2 : index
    %c0_50 = arith.constant 0 : index
    %c0_51 = arith.constant 0 : index
    %117 = vector.load %arg6[%c2, %c0_50, %c0_51] : memref<8x8x128xf32, #tpu.memory_space<vmem>>, vector<1x8x128xf32>
    %118 = vector.shape_cast %117 : vector<1x8x128xf32> to vector<8x128xf32>
    %119 = vector.shape_cast %114 : vector<8x128xf32> to vector<1x8x128xf32>
    tpu.vector_store %arg6[%c2, %c0_50, %c0_51], %119 {strides = array<i32>} : memref<8x8x128xf32, #tpu.memory_space<vmem>>, vector<1x8x128xf32>,
    %120 = vector.extract_strided_slice %11 {offsets = [3, 0, 0], sizes = [1, 8, 512], strides = [1, 1, 1]} : vector<8x8x512xf32> to vector<1x8x512xf32>
    %121 = vector.shape_cast %120 : vector<1x8x512xf32> to vector<8x512xf32>
    %c0_52 = arith.constant 0 : index
    %c0_53 = arith.constant 0 : index
    %122 = vector.load %arg7[%c0_52, %c0_53] : memref<8x128xf32, #tpu.memory_space<vmem>>, vector<8x128xf32>
    %cst_54 = arith.constant dense<0.000000e+00> : vector<8x512xf32>
    %123 = tpu.matmul %122, %3, %cst_54 {dimension_numbers = #tpu.dot_dimension_numbers<[1], [0], [0], [1], [0, 0, 1, 1], [], []>} : vector<8x128xf32>, vector<128x512xf32>, vector<8x512xf32> -> vector<8x512xf32>
    %124 = arith.addf %121, %123 : vector<8x512xf32>
    %125 = vector.extract_strided_slice %124 {offsets = [0, 0], sizes = [8, 128], strides = [1, 1]} : vector<8x512xf32> to vector<8x128xf32>
    %126 = arith.negf %125 : vector<8x128xf32>
    %127 = math.exp %126 : vector<8x128xf32>
    %cst_55 = arith.constant 1.000000e+00 : f32
    %128 = vector.broadcast %cst_55 : f32 to vector<8x128xf32>
    %129 = arith.addf %128, %127 : vector<8x128xf32>
    %130 = arith.divf %128, %129 : vector<8x128xf32>
    %131 = vector.extract_strided_slice %124 {offsets = [0, 128], sizes = [8, 128], strides = [1, 1]} : vector<8x512xf32> to vector<8x128xf32>
    %132 = arith.negf %131 : vector<8x128xf32>
    %133 = math.exp %132 : vector<8x128xf32>
    %cst_56 = arith.constant 1.000000e+00 : f32
    %134 = vector.broadcast %cst_56 : f32 to vector<8x128xf32>
    %135 = arith.addf %134, %133 : vector<8x128xf32>
    %136 = arith.divf %134, %135 : vector<8x128xf32>
    %137 = vector.extract_strided_slice %124 {offsets = [0, 256], sizes = [8, 128], strides = [1, 1]} : vector<8x512xf32> to vector<8x128xf32>
    %138 = math.tanh %137 : vector<8x128xf32>
    %139 = vector.extract_strided_slice %124 {offsets = [0, 384], sizes = [8, 128], strides = [1, 1]} : vector<8x512xf32> to vector<8x128xf32>
    %140 = arith.negf %139 : vector<8x128xf32>
    %141 = math.exp %140 : vector<8x128xf32>
    %cst_57 = arith.constant 1.000000e+00 : f32
    %142 = vector.broadcast %cst_57 : f32 to vector<8x128xf32>
    %143 = arith.addf %142, %141 : vector<8x128xf32>
    %144 = arith.divf %142, %143 : vector<8x128xf32>
    %145 = arith.mulf %138, %130 : vector<8x128xf32>
    %c0_58 = arith.constant 0 : index
    %c0_59 = arith.constant 0 : index
    %146 = vector.load %arg8[%c0_58, %c0_59] : memref<8x128xf32, #tpu.memory_space<vmem>>, vector<8x128xf32>
    %147 = arith.mulf %146, %136 : vector<8x128xf32>
    %148 = arith.addf %145, %147 : vector<8x128xf32>
    %149 = math.tanh %148 : vector<8x128xf32>
    %150 = arith.mulf %149, %144 : vector<8x128xf32>
    %c0_60 = arith.constant 0 : index
    %c0_61 = arith.constant 0 : index
    %151 = vector.load %arg8[%c0_60, %c0_61] : memref<8x128xf32, #tpu.memory_space<vmem>>, vector<8x128xf32>
    tpu.vector_store %arg8[%c0_60, %c0_61], %148 {strides = array<i32>} : memref<8x128xf32, #tpu.memory_space<vmem>>, vector<8x128xf32>,
    %c0_62 = arith.constant 0 : index
    %c0_63 = arith.constant 0 : index
    %152 = vector.load %arg7[%c0_62, %c0_63] : memref<8x128xf32, #tpu.memory_space<vmem>>, vector<8x128xf32>
    tpu.vector_store %arg7[%c0_62, %c0_63], %150 {strides = array<i32>} : memref<8x128xf32, #tpu.memory_space<vmem>>, vector<8x128xf32>,
    %c3 = arith.constant 3 : index
    %c0_64 = arith.constant 0 : index
    %c0_65 = arith.constant 0 : index
    %153 = vector.load %arg6[%c3, %c0_64, %c0_65] : memref<8x8x128xf32, #tpu.memory_space<vmem>>, vector<1x8x128xf32>
    %154 = vector.shape_cast %153 : vector<1x8x128xf32> to vector<8x128xf32>
    %155 = vector.shape_cast %150 : vector<8x128xf32> to vector<1x8x128xf32>
    tpu.vector_store %arg6[%c3, %c0_64, %c0_65], %155 {strides = array<i32>} : memref<8x8x128xf32, #tpu.memory_space<vmem>>, vector<1x8x128xf32>,
    %156 = vector.extract_strided_slice %11 {offsets = [4, 0, 0], sizes = [1, 8, 512], strides = [1, 1, 1]} : vector<8x8x512xf32> to vector<1x8x512xf32>
    %157 = vector.shape_cast %156 : vector<1x8x512xf32> to vector<8x512xf32>
    %c0_66 = arith.constant 0 : index
    %c0_67 = arith.constant 0 : index
    %158 = vector.load %arg7[%c0_66, %c0_67] : memref<8x128xf32, #tpu.memory_space<vmem>>, vector<8x128xf32>
    %cst_68 = arith.constant dense<0.000000e+00> : vector<8x512xf32>
    %159 = tpu.matmul %158, %3, %cst_68 {dimension_numbers = #tpu.dot_dimension_numbers<[1], [0], [0], [1], [0, 0, 1, 1], [], []>} : vector<8x128xf32>, vector<128x512xf32>, vector<8x512xf32> -> vector<8x512xf32>
    %160 = arith.addf %157, %159 : vector<8x512xf32>
    %161 = vector.extract_strided_slice %160 {offsets = [0, 0], sizes = [8, 128], strides = [1, 1]} : vector<8x512xf32> to vector<8x128xf32>
    %162 = arith.negf %161 : vector<8x128xf32>
    %163 = math.exp %162 : vector<8x128xf32>
    %cst_69 = arith.constant 1.000000e+00 : f32
    %164 = vector.broadcast %cst_69 : f32 to vector<8x128xf32>
    %165 = arith.addf %164, %163 : vector<8x128xf32>
    %166 = arith.divf %164, %165 : vector<8x128xf32>
    %167 = vector.extract_strided_slice %160 {offsets = [0, 128], sizes = [8, 128], strides = [1, 1]} : vector<8x512xf32> to vector<8x128xf32>
    %168 = arith.negf %167 : vector<8x128xf32>
    %169 = math.exp %168 : vector<8x128xf32>
    %cst_70 = arith.constant 1.000000e+00 : f32
    %170 = vector.broadcast %cst_70 : f32 to vector<8x128xf32>
    %171 = arith.addf %170, %169 : vector<8x128xf32>
    %172 = arith.divf %170, %171 : vector<8x128xf32>
    %173 = vector.extract_strided_slice %160 {offsets = [0, 256], sizes = [8, 128], strides = [1, 1]} : vector<8x512xf32> to vector<8x128xf32>
    %174 = math.tanh %173 : vector<8x128xf32>
    %175 = vector.extract_strided_slice %160 {offsets = [0, 384], sizes = [8, 128], strides = [1, 1]} : vector<8x512xf32> to vector<8x128xf32>
    %176 = arith.negf %175 : vector<8x128xf32>
    %177 = math.exp %176 : vector<8x128xf32>
    %cst_71 = arith.constant 1.000000e+00 : f32
    %178 = vector.broadcast %cst_71 : f32 to vector<8x128xf32>
    %179 = arith.addf %178, %177 : vector<8x128xf32>
    %180 = arith.divf %178, %179 : vector<8x128xf32>
    %181 = arith.mulf %174, %166 : vector<8x128xf32>
    %c0_72 = arith.constant 0 : index
    %c0_73 = arith.constant 0 : index
    %182 = vector.load %arg8[%c0_72, %c0_73] : memref<8x128xf32, #tpu.memory_space<vmem>>, vector<8x128xf32>
    %183 = arith.mulf %182, %172 : vector<8x128xf32>
    %184 = arith.addf %181, %183 : vector<8x128xf32>
    %185 = math.tanh %184 : vector<8x128xf32>
    %186 = arith.mulf %185, %180 : vector<8x128xf32>
    %c0_74 = arith.constant 0 : index
    %c0_75 = arith.constant 0 : index
    %187 = vector.load %arg8[%c0_74, %c0_75] : memref<8x128xf32, #tpu.memory_space<vmem>>, vector<8x128xf32>
    tpu.vector_store %arg8[%c0_74, %c0_75], %184 {strides = array<i32>} : memref<8x128xf32, #tpu.memory_space<vmem>>, vector<8x128xf32>,
    %c0_76 = arith.constant 0 : index
    %c0_77 = arith.constant 0 : index
    %188 = vector.load %arg7[%c0_76, %c0_77] : memref<8x128xf32, #tpu.memory_space<vmem>>, vector<8x128xf32>
    tpu.vector_store %arg7[%c0_76, %c0_77], %186 {strides = array<i32>} : memref<8x128xf32, #tpu.memory_space<vmem>>, vector<8x128xf32>,
    %c4 = arith.constant 4 : index
    %c0_78 = arith.constant 0 : index
    %c0_79 = arith.constant 0 : index
    %189 = vector.load %arg6[%c4, %c0_78, %c0_79] : memref<8x8x128xf32, #tpu.memory_space<vmem>>, vector<1x8x128xf32>
    %190 = vector.shape_cast %189 : vector<1x8x128xf32> to vector<8x128xf32>
    %191 = vector.shape_cast %186 : vector<8x128xf32> to vector<1x8x128xf32>
    tpu.vector_store %arg6[%c4, %c0_78, %c0_79], %191 {strides = array<i32>} : memref<8x8x128xf32, #tpu.memory_space<vmem>>, vector<1x8x128xf32>,
    %192 = vector.extract_strided_slice %11 {offsets = [5, 0, 0], sizes = [1, 8, 512], strides = [1, 1, 1]} : vector<8x8x512xf32> to vector<1x8x512xf32>
    %193 = vector.shape_cast %192 : vector<1x8x512xf32> to vector<8x512xf32>
    %c0_80 = arith.constant 0 : index
    %c0_81 = arith.constant 0 : index
    %194 = vector.load %arg7[%c0_80, %c0_81] : memref<8x128xf32, #tpu.memory_space<vmem>>, vector<8x128xf32>
    %cst_82 = arith.constant dense<0.000000e+00> : vector<8x512xf32>
    %195 = tpu.matmul %194, %3, %cst_82 {dimension_numbers = #tpu.dot_dimension_numbers<[1], [0], [0], [1], [0, 0, 1, 1], [], []>} : vector<8x128xf32>, vector<128x512xf32>, vector<8x512xf32> -> vector<8x512xf32>
    %196 = arith.addf %193, %195 : vector<8x512xf32>
    %197 = vector.extract_strided_slice %196 {offsets = [0, 0], sizes = [8, 128], strides = [1, 1]} : vector<8x512xf32> to vector<8x128xf32>
    %198 = arith.negf %197 : vector<8x128xf32>
    %199 = math.exp %198 : vector<8x128xf32>
    %cst_83 = arith.constant 1.000000e+00 : f32
    %200 = vector.broadcast %cst_83 : f32 to vector<8x128xf32>
    %201 = arith.addf %200, %199 : vector<8x128xf32>
    %202 = arith.divf %200, %201 : vector<8x128xf32>
    %203 = vector.extract_strided_slice %196 {offsets = [0, 128], sizes = [8, 128], strides = [1, 1]} : vector<8x512xf32> to vector<8x128xf32>
    %204 = arith.negf %203 : vector<8x128xf32>
    %205 = math.exp %204 : vector<8x128xf32>
    %cst_84 = arith.constant 1.000000e+00 : f32
    %206 = vector.broadcast %cst_84 : f32 to vector<8x128xf32>
    %207 = arith.addf %206, %205 : vector<8x128xf32>
    %208 = arith.divf %206, %207 : vector<8x128xf32>
    %209 = vector.extract_strided_slice %196 {offsets = [0, 256], sizes = [8, 128], strides = [1, 1]} : vector<8x512xf32> to vector<8x128xf32>
    %210 = math.tanh %209 : vector<8x128xf32>
    %211 = vector.extract_strided_slice %196 {offsets = [0, 384], sizes = [8, 128], strides = [1, 1]} : vector<8x512xf32> to vector<8x128xf32>
    %212 = arith.negf %211 : vector<8x128xf32>
    %213 = math.exp %212 : vector<8x128xf32>
    %cst_85 = arith.constant 1.000000e+00 : f32
    %214 = vector.broadcast %cst_85 : f32 to vector<8x128xf32>
    %215 = arith.addf %214, %213 : vector<8x128xf32>
    %216 = arith.divf %214, %215 : vector<8x128xf32>
    %217 = arith.mulf %210, %202 : vector<8x128xf32>
    %c0_86 = arith.constant 0 : index
    %c0_87 = arith.constant 0 : index
    %218 = vector.load %arg8[%c0_86, %c0_87] : memref<8x128xf32, #tpu.memory_space<vmem>>, vector<8x128xf32>
    %219 = arith.mulf %218, %208 : vector<8x128xf32>
    %220 = arith.addf %217, %219 : vector<8x128xf32>
    %221 = math.tanh %220 : vector<8x128xf32>
    %222 = arith.mulf %221, %216 : vector<8x128xf32>
    %c0_88 = arith.constant 0 : index
    %c0_89 = arith.constant 0 : index
    %223 = vector.load %arg8[%c0_88, %c0_89] : memref<8x128xf32, #tpu.memory_space<vmem>>, vector<8x128xf32>
    tpu.vector_store %arg8[%c0_88, %c0_89], %220 {strides = array<i32>} : memref<8x128xf32, #tpu.memory_space<vmem>>, vector<8x128xf32>,
    %c0_90 = arith.constant 0 : index
    %c0_91 = arith.constant 0 : index
    %224 = vector.load %arg7[%c0_90, %c0_91] : memref<8x128xf32, #tpu.memory_space<vmem>>, vector<8x128xf32>
    tpu.vector_store %arg7[%c0_90, %c0_91], %222 {strides = array<i32>} : memref<8x128xf32, #tpu.memory_space<vmem>>, vector<8x128xf32>,
    %c5 = arith.constant 5 : index
    %c0_92 = arith.constant 0 : index
    %c0_93 = arith.constant 0 : index
    %225 = vector.load %arg6[%c5, %c0_92, %c0_93] : memref<8x8x128xf32, #tpu.memory_space<vmem>>, vector<1x8x128xf32>
    %226 = vector.shape_cast %225 : vector<1x8x128xf32> to vector<8x128xf32>
    %227 = vector.shape_cast %222 : vector<8x128xf32> to vector<1x8x128xf32>
    tpu.vector_store %arg6[%c5, %c0_92, %c0_93], %227 {strides = array<i32>} : memref<8x8x128xf32, #tpu.memory_space<vmem>>, vector<1x8x128xf32>,
    %228 = vector.extract_strided_slice %11 {offsets = [6, 0, 0], sizes = [1, 8, 512], strides = [1, 1, 1]} : vector<8x8x512xf32> to vector<1x8x512xf32>
    %229 = vector.shape_cast %228 : vector<1x8x512xf32> to vector<8x512xf32>
    %c0_94 = arith.constant 0 : index
    %c0_95 = arith.constant 0 : index
    %230 = vector.load %arg7[%c0_94, %c0_95] : memref<8x128xf32, #tpu.memory_space<vmem>>, vector<8x128xf32>
    %cst_96 = arith.constant dense<0.000000e+00> : vector<8x512xf32>
    %231 = tpu.matmul %230, %3, %cst_96 {dimension_numbers = #tpu.dot_dimension_numbers<[1], [0], [0], [1], [0, 0, 1, 1], [], []>} : vector<8x128xf32>, vector<128x512xf32>, vector<8x512xf32> -> vector<8x512xf32>
    %232 = arith.addf %229, %231 : vector<8x512xf32>
    %233 = vector.extract_strided_slice %232 {offsets = [0, 0], sizes = [8, 128], strides = [1, 1]} : vector<8x512xf32> to vector<8x128xf32>
    %234 = arith.negf %233 : vector<8x128xf32>
    %235 = math.exp %234 : vector<8x128xf32>
    %cst_97 = arith.constant 1.000000e+00 : f32
    %236 = vector.broadcast %cst_97 : f32 to vector<8x128xf32>
    %237 = arith.addf %236, %235 : vector<8x128xf32>
    %238 = arith.divf %236, %237 : vector<8x128xf32>
    %239 = vector.extract_strided_slice %232 {offsets = [0, 128], sizes = [8, 128], strides = [1, 1]} : vector<8x512xf32> to vector<8x128xf32>
    %240 = arith.negf %239 : vector<8x128xf32>
    %241 = math.exp %240 : vector<8x128xf32>
    %cst_98 = arith.constant 1.000000e+00 : f32
    %242 = vector.broadcast %cst_98 : f32 to vector<8x128xf32>
    %243 = arith.addf %242, %241 : vector<8x128xf32>
    %244 = arith.divf %242, %243 : vector<8x128xf32>
    %245 = vector.extract_strided_slice %232 {offsets = [0, 256], sizes = [8, 128], strides = [1, 1]} : vector<8x512xf32> to vector<8x128xf32>
    %246 = math.tanh %245 : vector<8x128xf32>
    %247 = vector.extract_strided_slice %232 {offsets = [0, 384], sizes = [8, 128], strides = [1, 1]} : vector<8x512xf32> to vector<8x128xf32>
    %248 = arith.negf %247 : vector<8x128xf32>
    %249 = math.exp %248 : vector<8x128xf32>
    %cst_99 = arith.constant 1.000000e+00 : f32
    %250 = vector.broadcast %cst_99 : f32 to vector<8x128xf32>
    %251 = arith.addf %250, %249 : vector<8x128xf32>
    %252 = arith.divf %250, %251 : vector<8x128xf32>
    %253 = arith.mulf %246, %238 : vector<8x128xf32>
    %c0_100 = arith.constant 0 : index
    %c0_101 = arith.constant 0 : index
    %254 = vector.load %arg8[%c0_100, %c0_101] : memref<8x128xf32, #tpu.memory_space<vmem>>, vector<8x128xf32>
    %255 = arith.mulf %254, %244 : vector<8x128xf32>
    %256 = arith.addf %253, %255 : vector<8x128xf32>
    %257 = math.tanh %256 : vector<8x128xf32>
    %258 = arith.mulf %257, %252 : vector<8x128xf32>
    %c0_102 = arith.constant 0 : index
    %c0_103 = arith.constant 0 : index
    %259 = vector.load %arg8[%c0_102, %c0_103] : memref<8x128xf32, #tpu.memory_space<vmem>>, vector<8x128xf32>
    tpu.vector_store %arg8[%c0_102, %c0_103], %256 {strides = array<i32>} : memref<8x128xf32, #tpu.memory_space<vmem>>, vector<8x128xf32>,
    %c0_104 = arith.constant 0 : index
    %c0_105 = arith.constant 0 : index
    %260 = vector.load %arg7[%c0_104, %c0_105] : memref<8x128xf32, #tpu.memory_space<vmem>>, vector<8x128xf32>
    tpu.vector_store %arg7[%c0_104, %c0_105], %258 {strides = array<i32>} : memref<8x128xf32, #tpu.memory_space<vmem>>, vector<8x128xf32>,
    %c6 = arith.constant 6 : index
    %c0_106 = arith.constant 0 : index
    %c0_107 = arith.constant 0 : index
    %261 = vector.load %arg6[%c6, %c0_106, %c0_107] : memref<8x8x128xf32, #tpu.memory_space<vmem>>, vector<1x8x128xf32>
    %262 = vector.shape_cast %261 : vector<1x8x128xf32> to vector<8x128xf32>
    %263 = vector.shape_cast %258 : vector<8x128xf32> to vector<1x8x128xf32>
    tpu.vector_store %arg6[%c6, %c0_106, %c0_107], %263 {strides = array<i32>} : memref<8x8x128xf32, #tpu.memory_space<vmem>>, vector<1x8x128xf32>,
    %264 = vector.extract_strided_slice %11 {offsets = [7, 0, 0], sizes = [1, 8, 512], strides = [1, 1, 1]} : vector<8x8x512xf32> to vector<1x8x512xf32>
    %265 = vector.shape_cast %264 : vector<1x8x512xf32> to vector<8x512xf32>
    %c0_108 = arith.constant 0 : index
    %c0_109 = arith.constant 0 : index
    %266 = vector.load %arg7[%c0_108, %c0_109] : memref<8x128xf32, #tpu.memory_space<vmem>>, vector<8x128xf32>
    %cst_110 = arith.constant dense<0.000000e+00> : vector<8x512xf32>
    %267 = tpu.matmul %266, %3, %cst_110 {dimension_numbers = #tpu.dot_dimension_numbers<[1], [0], [0], [1], [0, 0, 1, 1], [], []>} : vector<8x128xf32>, vector<128x512xf32>, vector<8x512xf32> -> vector<8x512xf32>
    %268 = arith.addf %265, %267 : vector<8x512xf32>
    %269 = vector.extract_strided_slice %268 {offsets = [0, 0], sizes = [8, 128], strides = [1, 1]} : vector<8x512xf32> to vector<8x128xf32>
    %270 = arith.negf %269 : vector<8x128xf32>
    %271 = math.exp %270 : vector<8x128xf32>
    %cst_111 = arith.constant 1.000000e+00 : f32
    %272 = vector.broadcast %cst_111 : f32 to vector<8x128xf32>
    %273 = arith.addf %272, %271 : vector<8x128xf32>
    %274 = arith.divf %272, %273 : vector<8x128xf32>
    %275 = vector.extract_strided_slice %268 {offsets = [0, 128], sizes = [8, 128], strides = [1, 1]} : vector<8x512xf32> to vector<8x128xf32>
    %276 = arith.negf %275 : vector<8x128xf32>
    %277 = math.exp %276 : vector<8x128xf32>
    %cst_112 = arith.constant 1.000000e+00 : f32
    %278 = vector.broadcast %cst_112 : f32 to vector<8x128xf32>
    %279 = arith.addf %278, %277 : vector<8x128xf32>
    %280 = arith.divf %278, %279 : vector<8x128xf32>
    %281 = vector.extract_strided_slice %268 {offsets = [0, 256], sizes = [8, 128], strides = [1, 1]} : vector<8x512xf32> to vector<8x128xf32>
    %282 = math.tanh %281 : vector<8x128xf32>
    %283 = vector.extract_strided_slice %268 {offsets = [0, 384], sizes = [8, 128], strides = [1, 1]} : vector<8x512xf32> to vector<8x128xf32>
    %284 = arith.negf %283 : vector<8x128xf32>
    %285 = math.exp %284 : vector<8x128xf32>
    %cst_113 = arith.constant 1.000000e+00 : f32
    %286 = vector.broadcast %cst_113 : f32 to vector<8x128xf32>
    %287 = arith.addf %286, %285 : vector<8x128xf32>
    %288 = arith.divf %286, %287 : vector<8x128xf32>
    %289 = arith.mulf %282, %274 : vector<8x128xf32>
    %c0_114 = arith.constant 0 : index
    %c0_115 = arith.constant 0 : index
    %290 = vector.load %arg8[%c0_114, %c0_115] : memref<8x128xf32, #tpu.memory_space<vmem>>, vector<8x128xf32>
    %291 = arith.mulf %290, %280 : vector<8x128xf32>
    %292 = arith.addf %289, %291 : vector<8x128xf32>
    %293 = math.tanh %292 : vector<8x128xf32>
    %294 = arith.mulf %293, %288 : vector<8x128xf32>
    %c0_116 = arith.constant 0 : index
    %c0_117 = arith.constant 0 : index
    %295 = vector.load %arg8[%c0_116, %c0_117] : memref<8x128xf32, #tpu.memory_space<vmem>>, vector<8x128xf32>
    tpu.vector_store %arg8[%c0_116, %c0_117], %292 {strides = array<i32>} : memref<8x128xf32, #tpu.memory_space<vmem>>, vector<8x128xf32>,
    %c0_118 = arith.constant 0 : index
    %c0_119 = arith.constant 0 : index
    %296 = vector.load %arg7[%c0_118, %c0_119] : memref<8x128xf32, #tpu.memory_space<vmem>>, vector<8x128xf32>
    tpu.vector_store %arg7[%c0_118, %c0_119], %294 {strides = array<i32>} : memref<8x128xf32, #tpu.memory_space<vmem>>, vector<8x128xf32>,
    %c7 = arith.constant 7 : index
    %c0_120 = arith.constant 0 : index
    %c0_121 = arith.constant 0 : index
    %297 = vector.load %arg6[%c7, %c0_120, %c0_121] : memref<8x8x128xf32, #tpu.memory_space<vmem>>, vector<1x8x128xf32>
    %298 = vector.shape_cast %297 : vector<1x8x128xf32> to vector<8x128xf32>
    %299 = vector.shape_cast %294 : vector<8x128xf32> to vector<1x8x128xf32>
    tpu.vector_store %arg6[%c7, %c0_120, %c0_121], %299 {strides = array<i32>} : memref<8x8x128xf32, #tpu.memory_space<vmem>>, vector<1x8x128xf32>,
    return
  }
  func.func @transform_0(%arg0: i32, %arg1: i32) -> (i32, i32, i32) {
    %c0_i32 = arith.constant 0 : i32
    %c0_i32_0 = arith.constant 0 : i32
    return %arg1, %arg0, %c0_i32 : i32, i32, i32
  }
  func.func @transform_1(%arg0: i32, %arg1: i32) -> (i32, i32) {
    %c0_i32 = arith.constant 0 : i32
    %c0_i32_0 = arith.constant 0 : i32
    %c0_i32_1 = arith.constant 0 : i32
    return %c0_i32, %c0_i32_0 : i32, i32
  }
  func.func @transform_2(%arg0: i32, %arg1: i32) -> (i32, i32) {
    %c0_i32 = arith.constant 0 : i32
    %c0_i32_0 = arith.constant 0 : i32
    %c0_i32_1 = arith.constant 0 : i32
    return %c0_i32, %c0_i32_0 : i32, i32
  }
  func.func @transform_3(%arg0: i32, %arg1: i32) -> (i32, i32) {
    %c0_i32 = arith.constant 0 : i32
    %c0_i32_0 = arith.constant 0 : i32
    %c0_i32_1 = arith.constant 0 : i32
    return %c0_i32, %c0_i32_0 : i32, i32
  }
  func.func @transform_4(%arg0: i32, %arg1: i32) -> (i32, i32, i32) {
    %c0_i32 = arith.constant 0 : i32
    %c0_i32_0 = arith.constant 0 : i32
    return %arg1, %arg0, %c0_i32 : i32, i32, i32
  }
}

</mosaic_0001>

<bundles_post_ra>
// kernel: tpu_custom_call.1
= control target key start
LH: loop header
LB: loop body
LE: loop exit
PB: predicated region body
PF: predicated region fallthrough
CT: control target
= control target key end

     0   :  { %9 = vsyncpa [#allocation5], 0  ;;  %s2945_s0 = inlined_call_operand.hbm [shape: f32[8,8,128], index: 0, kind: input, shape index: {}]   ;;  %s2946_s1 = inlined_call_operand.hbm [shape: f32[128,512], index: 1, kind: input, shape index: {}]   ;;  %s2947_s2 = inlined_call_operand.hbm [shape: f32[128,512], index: 2, kind: input, shape index: {}]   ;;  %s2948_s3 = inlined_call_operand.hbm [shape: f32[1,512], index: 3, kind: input, shape index: {}]   ;;  %s2949_s4 = inlined_call_operand.hbm [shape: f32[8,8,128], index: 4, kind: output, shape index: {}]  }
   0x1   :  { %10 = vsyncpa [#allocation8], 0 }
   0x2   :  { %11 = vsyncpa [#allocation11], 0  ;;  %s30_s17 = sshll.u32 %s2946_s1, 4  ;;  %s31_s17 = int_to_ptr.hbm [resolvable:$true] %s30_s17 }
   0x3   :  { %12 = vsyncpa [#allocation6], 0  ;;  %s1993_s18 = smov [#allocation7]   ;;  %s17_s22 = sshll.u32 %s2945_s0, 4  ;;  %s18_s22 = int_to_ptr.hbm [resolvable:$true] %s17_s22 }
   0x4   :  { %s32_s19 = sshll.u32 %s1993_s18, 4  ;;  %s1994_s23 = smov 512   ;;  %s33_s19 = int_to_ptr.vmem [resolvable:$true] %s32_s19 }
   0x5   :  { %s1995_s24 = smov 32   ;;  %s1996_s25 = smov [#allocation4]  }
   0x6   :  { %38 = dma.hbm_to_vmem [thread:$0]  %s31_s17, 8192, %s33_s19, [#allocation8], %s1994_s23, %s1994_s23, %s1995_s24  }
   0x7   :  { %s19_s26 = sshll.u32 %s1996_s25, 4  ;;  %s1997_s27 = smov 128   ;;  %s20_s26 = int_to_ptr.vmem [resolvable:$true] %s19_s26 }
   0x8   :  { %s1998_s28 = smov 8   ;;  %s43_s30 = sshll.u32 %s2947_s2, 4  ;;  %s44_s30 = int_to_ptr.hbm [resolvable:$true] %s43_s30 }
   0x9   :  { %25 = dma.hbm_to_vmem [thread:$0]  %s18_s22, 1024, %s20_s26, [#allocation5], %s1997_s27, %s1997_s27, %s1998_s28  }
   0xa   :  { %s1999_s5 = smov [#allocation9]   ;;  %s57_s8 = sshll.u32 %s2948_s3, 4  ;;  %s58_s8 = int_to_ptr.hbm [resolvable:$true] %s57_s8 }
   0xb   :  { %s45_s0 = sshll.u32 %s1999_s5, 4  ;;  %s2000_s9 = smov [#allocation10]   ;;  %s46_s0 = int_to_ptr.vmem [resolvable:$true] %s45_s0 }
   0xc   :  { %51 = dma.hbm_to_vmem [thread:$0]  %s44_s30, 8192, %s46_s0, [#allocation8], %s1994_s23, %s1994_s23, %s1995_s24  }
   0xd   :  { %s59_s10 = sshll.u32 %s2000_s9, 4  ;;  %s60_s10 = int_to_ptr.vmem [resolvable:$true] %s59_s10 }
   0xe   :  { %62 = dma.hbm_to_vmem [thread:$0]  %s58_s8, 64, %s60_s10, [#allocation11]  }
   0xf   :  { %1985 = dma.done.wait [#allocation5], 1024  }
  0x10   :  { %1986 = vsyncadd [#allocation5], 4294966272 }
  0x11   :  { %1987 = dma.done.wait [#allocation8], 16384  }
  0x12   :  { %1988 = vsyncadd [#allocation8], 4294950912 }
  0x13   :  { %1989 = dma.done.wait [#allocation11], 64  }
  0x14   :  { %1990 = vsyncadd [#allocation11], 4294967232  ;;  %v217_v0 = vld [vmem:[#allocation7 + $0x1e0] sm:$0xff]  ;;  %v218_v1 = vld [vmem:[#allocation7 + $0x1e8] sm:$0xff]  ;;  %s2002_s2 = smov [#allocation12]   ;;  %s1624_s13 = sshll.u32 %s2949_s4, 4  ;;  %s1625_s13 = int_to_ptr.hbm [resolvable:$true] %s1624_s13 }
  0x15   :  { %v219_v2 = vld [vmem:[#allocation7 + $0x1f0] sm:$0xff]  ;;  %231 = vmatpush.msra.mxu0 %v217_v0  ;;  %272 = vmatpush.msra.mxu1 %v218_v1  ;;  %v220_v3 = vld [vmem:[#allocation7 + $0x1f8] sm:$0xff]  ;;  %v213_v4 = vld [vmem:[#allocation7 + $0x1c0] sm:$0xff]  ;;  %s1622_s3 = sshll.u32 %s2002_s2, 4  ;;  %s1623_s3 = int_to_ptr.vmem [resolvable:$true] %s1622_s3 }
  0x16   :  { %v214_v5 = vld [vmem:[#allocation7 + $0x1c8] sm:$0xff]  ;;  %313 = vmatpush.msra.mxu2 %v219_v2  ;;  %354 = vmatpush.msra.mxu3 %v220_v3  ;;  %v215_v6 = vld [vmem:[#allocation7 + $0x1d0] sm:$0xff]  ;;  %v216_v7 = vld [vmem:[#allocation7 + $0x1d8] sm:$0xff] }
  0x17   :  { %v209_v8 = vld [vmem:[#allocation7 + $0x1a0] sm:$0xff]  ;;  %232 = vmatpush.msra.mxu0 %v213_v4  ;;  %273 = vmatpush.msra.mxu1 %v214_v5  ;;  %v210_v9 = vld [vmem:[#allocation7 + $0x1a8] sm:$0xff]  ;;  %v211_v10 = vld [vmem:[#allocation7 + $0x1b0] sm:$0xff] }
  0x18   :  { %v212_v11 = vld [vmem:[#allocation7 + $0x1b8] sm:$0xff]  ;;  %314 = vmatpush.msra.mxu2 %v215_v6  ;;  %355 = vmatpush.msra.mxu3 %v216_v7  ;;  %v205_v12 = vld [vmem:[#allocation7 + $0x180] sm:$0xff]  ;;  %v206_v13 = vld [vmem:[#allocation7 + $0x188] sm:$0xff] }
  0x19   :  { %233 = vmatpush.msra.mxu0 %v209_v8  ;;  %274 = vmatpush.msra.mxu1 %v210_v9  ;;  %v207_v14 = vld [vmem:[#allocation7 + $0x190] sm:$0xff]  ;;  %v208_v15 = vld [vmem:[#allocation7 + $0x198] sm:$0xff]  ;;  %v201_v16 = vld [vmem:[#allocation7 + $0x160] sm:$0xff] }
  0x1a   :  { %315 = vmatpush.msra.mxu2 %v211_v10  ;;  %356 = vmatpush.msra.mxu3 %v212_v11  ;;  %v202_v17 = vld [vmem:[#allocation7 + $0x168] sm:$0xff]  ;;  %v203_v18 = vld [vmem:[#allocation7 + $0x170] sm:$0xff]  ;;  %v204_v19 = vld [vmem:[#allocation7 + $0x178] sm:$0xff] }
  0x1b   :  { %234 = vmatpush.msra.mxu0 %v205_v12  ;;  %275 = vmatpush.msra.mxu1 %v206_v13  ;;  %v197_v20 = vld [vmem:[#allocation7 + $0x140] sm:$0xff]  ;;  %v198_v21 = vld [vmem:[#allocation7 + $0x148] sm:$0xff]  ;;  %v199_v22 = vld [vmem:[#allocation7 + $0x150] sm:$0xff] }
  0x1c   :  { %316 = vmatpush.msra.mxu2 %v207_v14  ;;  %357 = vmatpush.msra.mxu3 %v208_v15  ;;  %v200_v23 = vld [vmem:[#allocation7 + $0x158] sm:$0xff]  ;;  %v193_v24 = vld [vmem:[#allocation7 + $0x120] sm:$0xff]  ;;  %v194_v25 = vld [vmem:[#allocation7 + $0x128] sm:$0xff] }
  0x1d   :  { %235 = vmatpush.msra.mxu0 %v201_v16  ;;  %276 = vmatpush.msra.mxu1 %v202_v17  ;;  %v195_v26 = vld [vmem:[#allocation7 + $0x130] sm:$0xff]  ;;  %v196_v27 = vld [vmem:[#allocation7 + $0x138] sm:$0xff]  ;;  %v189_v28 = vld [vmem:[#allocation7 + $0x100] sm:$0xff] }
  0x1e   :  { %317 = vmatpush.msra.mxu2 %v203_v18  ;;  %358 = vmatpush.msra.mxu3 %v204_v19  ;;  %v190_v29 = vld [vmem:[#allocation7 + $0x108] sm:$0xff]  ;;  %v191_v30 = vld [vmem:[#allocation7 + $0x110] sm:$0xff]  ;;  %v192_v31 = vld [vmem:[#allocation7 + $0x118] sm:$0xff] }
  0x1f   :  { %236 = vmatpush.msra.mxu0 %v197_v20  ;;  %277 = vmatpush.msra.mxu1 %v198_v21  ;;  %v185_v32 = vld [vmem:[#allocation7 + $0xe0] sm:$0xff]  ;;  %v186_v33 = vld [vmem:[#allocation7 + $0xe8] sm:$0xff]  ;;  %v187_v34 = vld [vmem:[#allocation7 + $0xf0] sm:$0xff] }
  0x20   :  { %318 = vmatpush.msra.mxu2 %v199_v22  ;;  %359 = vmatpush.msra.mxu3 %v200_v23  ;;  %v188_v35 = vld [vmem:[#allocation7 + $0xf8] sm:$0xff]  ;;  %v181_v36 = vld [vmem:[#allocation7 + $0xc0] sm:$0xff]  ;;  %v182_v37 = vld [vmem:[#allocation7 + $0xc8] sm:$0xff] }
  0x21   :  { %237 = vmatpush.msra.mxu0 %v193_v24  ;;  %278 = vmatpush.msra.mxu1 %v194_v25  ;;  %v183_v38 = vld [vmem:[#allocation7 + $0xd0] sm:$0xff]  ;;  %v184_v39 = vld [vmem:[#allocation7 + $0xd8] sm:$0xff]  ;;  %v177_v40 = vld [vmem:[#allocation7 + $0xa0] sm:$0xff] }
  0x22   :  { %319 = vmatpush.msra.mxu2 %v195_v26  ;;  %360 = vmatpush.msra.mxu3 %v196_v27  ;;  %v178_v41 = vld [vmem:[#allocation7 + $0xa8] sm:$0xff]  ;;  %v179_v42 = vld [vmem:[#allocation7 + $0xb0] sm:$0xff]  ;;  %v180_v43 = vld [vmem:[#allocation7 + $0xb8] sm:$0xff] }
  0x23   :  { %238 = vmatpush.msra.mxu0 %v189_v28  ;;  %279 = vmatpush.msra.mxu1 %v190_v29  ;;  %v173_v44 = vld [vmem:[#allocation7 + $0x80] sm:$0xff]  ;;  %v174_v45 = vld [vmem:[#allocation7 + $0x88] sm:$0xff]  ;;  %v175_v46 = vld [vmem:[#allocation7 + $0x90] sm:$0xff] }
  0x24   :  { %320 = vmatpush.msra.mxu2 %v191_v30  ;;  %361 = vmatpush.msra.mxu3 %v192_v31  ;;  %v176_v47 = vld [vmem:[#allocation7 + $0x98] sm:$0xff]  ;;  %v169_v48 = vld [vmem:[#allocation7 + $0x60] sm:$0xff]  ;;  %v170_v49 = vld [vmem:[#allocation7 + $0x68] sm:$0xff] }
  0x25   :  { %239 = vmatpush.msra.mxu0 %v185_v32  ;;  %280 = vmatpush.msra.mxu1 %v186_v33  ;;  %v171_v50 = vld [vmem:[#allocation7 + $0x70] sm:$0xff]  ;;  %v172_v51 = vld [vmem:[#allocation7 + $0x78] sm:$0xff]  ;;  %v165_v52 = vld [vmem:[#allocation7 + $0x40] sm:$0xff] }
  0x26   :  { %321 = vmatpush.msra.mxu2 %v187_v34  ;;  %362 = vmatpush.msra.mxu3 %v188_v35  ;;  %v166_v53 = vld [vmem:[#allocation7 + $0x48] sm:$0xff]  ;;  %v167_v54 = vld [vmem:[#allocation7 + $0x50] sm:$0xff]  ;;  %v168_v55 = vld [vmem:[#allocation7 + $0x58] sm:$0xff] }
  0x27   :  { %240 = vmatpush.msra.mxu0 %v181_v36  ;;  %281 = vmatpush.msra.mxu1 %v182_v37  ;;  %v161_v56 = vld [vmem:[#allocation7 + $0x20] sm:$0xff]  ;;  %v162_v57 = vld [vmem:[#allocation7 + $0x28] sm:$0xff]  ;;  %v163_v58 = vld [vmem:[#allocation7 + $0x30] sm:$0xff] }
  0x28   :  { %322 = vmatpush.msra.mxu2 %v183_v38  ;;  %363 = vmatpush.msra.mxu3 %v184_v39  ;;  %v164_v59 = vld [vmem:[#allocation7 + $0x38] sm:$0xff]  ;;  %v157_v60 = vld [vmem:[#allocation7] sm:$0xff]  ;;  %v158_v61 = vld [vmem:[#allocation7 + $0x8] sm:$0xff] }
  0x29   :  { %241 = vmatpush.msra.mxu0 %v177_v40  ;;  %282 = vmatpush.msra.mxu1 %v178_v41  ;;  %v159_v62 = vld [vmem:[#allocation7 + $0x10] sm:$0xff]  ;;  %v160_v63 = vld [vmem:[#allocation7 + $0x18] sm:$0xff]  ;;  %v149_v0 = vld [vmem:[#allocation4] sm:$0xff] }
  0x2a   :  { %323 = vmatpush.msra.mxu2 %v179_v42  ;;  %364 = vmatpush.msra.mxu3 %v180_v43  ;;  %v2043_v1 = vld [vmem:[#allocation9 + $0x1e0] sm:$0xff]  ;;  %v2045_v2 = vld [vmem:[#allocation9 + $0x1e8] sm:$0xff]  ;;  %v2047_v3 = vld [vmem:[#allocation9 + $0x1f8] sm:$0xff] }
  0x2b   :  { %242 = vmatpush.msra.mxu0 %v173_v44  ;;  %283 = vmatpush.msra.mxu1 %v174_v45  ;;  %v2049_v4 = vld [vmem:[#allocation9 + $0x1f0] sm:$0xff]  ;;  %v2051_v5 = vld [vmem:[#allocation9 + $0x1c0] sm:$0xff]  ;;  %v2053_v6 = vld [vmem:[#allocation9 + $0x1c8] sm:$0xff] }
  0x2c   :  { %324 = vmatpush.msra.mxu2 %v175_v46  ;;  %365 = vmatpush.msra.mxu3 %v176_v47  ;;  %v2057_v7 = vld [vmem:[#allocation9 + $0x1d8] sm:$0xff]  ;;  %v2059_v8 = vld [vmem:[#allocation9 + $0x1d0] sm:$0xff]  ;;  %v2062_v9 = vld [vmem:[#allocation9 + $0x1a0] sm:$0xff] }
  0x2d   :  { %243 = vmatpush.msra.mxu0 %v169_v48  ;;  %284 = vmatpush.msra.mxu1 %v170_v49  ;;  %v2064_v10 = vld [vmem:[#allocation9 + $0x1a8] sm:$0xff]  ;;  %v2069_v11 = vld [vmem:[#allocation9 + $0x1b8] sm:$0xff]  ;;  %v2071_v12 = vld [vmem:[#allocation9 + $0x1b0] sm:$0xff] }
  0x2e   :  { %325 = vmatpush.msra.mxu2 %v171_v50  ;;  %366 = vmatpush.msra.mxu3 %v172_v51  ;;  %v150_v13 = vld [vmem:[#allocation4 + $0x8] sm:$0xff]  ;;  %v2077_v14 = vld [vmem:[#allocation9 + $0x180] sm:$0xff]  ;;  %v2083_v16 = vld [vmem:[#allocation9 + $0x198] sm:$0xff] }
  0x2f   :  { %244 = vmatpush.msra.mxu0 %v165_v52  ;;  %285 = vmatpush.msra.mxu1 %v166_v53  ;;  %v2079_v15 = vld [vmem:[#allocation9 + $0x188] sm:$0xff]  ;;  %v2085_v17 = vld [vmem:[#allocation9 + $0x190] sm:$0xff]  ;;  %v2087_v18 = vld [vmem:[#allocation9 + $0x160] sm:$0xff] }
  0x30   :  { %326 = vmatpush.msra.mxu2 %v167_v54  ;;  %367 = vmatpush.msra.mxu3 %v168_v55  ;;  %v2089_v19 = vld [vmem:[#allocation9 + $0x168] sm:$0xff]  ;;  %v2093_v20 = vld [vmem:[#allocation9 + $0x178] sm:$0xff]  ;;  %v2095_v21 = vld [vmem:[#allocation9 + $0x170] sm:$0xff] }
  0x31   :  { %245 = vmatpush.msra.mxu0 %v161_v56  ;;  %286 = vmatpush.msra.mxu1 %v162_v57  ;;  %v2098_v22 = vld [vmem:[#allocation9 + $0x140] sm:$0xff]  ;;  %v2100_v23 = vld [vmem:[#allocation9 + $0x148] sm:$0xff]  ;;  %v2105_v24 = vld [vmem:[#allocation9 + $0x158] sm:$0xff] }
  0x32   :  { %327 = vmatpush.msra.mxu2 %v163_v58  ;;  %368 = vmatpush.msra.mxu3 %v164_v59  ;;  %v2107_v25 = vld [vmem:[#allocation9 + $0x150] sm:$0xff]  ;;  %v2113_v27 = vld [vmem:[#allocation9 + $0x120] sm:$0xff]  ;;  %v2115_v28 = vld [vmem:[#allocation9 + $0x128] sm:$0xff] }
  0x33   :  { %246 = vmatpush.msra.mxu0 %v157_v60  ;;  %287 = vmatpush.msra.mxu1 %v158_v61  ;;  %v151_v26 = vld [vmem:[#allocation4 + $0x10] sm:$0xff]  ;;  %v2119_v29 = vld [vmem:[#allocation9 + $0x138] sm:$0xff]  ;;  %v2123_v31 = vld [vmem:[#allocation9 + $0x100] sm:$0xff] }
  0x34   :  { %328 = vmatpush.msra.mxu2 %v159_v62  ;;  %369 = vmatpush.msra.mxu3 %v160_v63  ;;  %v2121_v30 = vld [vmem:[#allocation9 + $0x130] sm:$0xff]  ;;  %v2125_v32 = vld [vmem:[#allocation9 + $0x108] sm:$0xff]  ;;  %v2129_v33 = vld [vmem:[#allocation9 + $0x118] sm:$0xff] }
  0x35   :  { %247 = vmatmul.f32.vlgmr.msra.gmra.mxu0 %v149_v0  ;;  %288 = vmatmul.f32.vlgmr.msra.gmra.mxu1 %v149_v0  ;;  %v2131_v34 = vld [vmem:[#allocation9 + $0x110] sm:$0xff]  ;;  %v2134_v35 = vld [vmem:[#allocation9 + $0xe0] sm:$0xff]  ;;  %v2136_v36 = vld [vmem:[#allocation9 + $0xe8] sm:$0xff] }
  0x36   :  { %329 = vmatmul.f32.vlgmr.msra.gmra.mxu2 %v149_v0  ;;  %370 = vmatmul.f32.vlgmr.msra.gmra.mxu3 %v149_v0  ;;  %v2141_v37 = vld [vmem:[#allocation9 + $0xf8] sm:$0xff]  ;;  %v2143_v38 = vld [vmem:[#allocation9 + $0xf0] sm:$0xff]  ;;  %v2149_v40 = vld [vmem:[#allocation9 + $0xc0] sm:$0xff] }
  0x37   :  { %396 = vmatpush.msrb.mxu0 %v2043_v1  ;;  %416 = vmatpush.msrb.mxu1 %v2045_v2  ;;  %v152_v39 = vld [vmem:[#allocation4 + $0x18] sm:$0xff]  ;;  %v2151_v41 = vld [vmem:[#allocation9 + $0xc8] sm:$0xff]  ;;  %v2157_v43 = vld [vmem:[#allocation9 + $0xd0] sm:$0xff] }
  0x38   :  { %456 = vmatpush.msrb.mxu3 %v2047_v3  ;;  %436 = vmatpush.msrb.mxu2 %v2049_v4  ;;  %v2155_v42 = vld [vmem:[#allocation9 + $0xd8] sm:$0xff]  ;;  %3038 = vst [vmem:[#allocation18_spill] sm:$0xff] %v2157_v43  ;;  %v2159_v44 = vld [vmem:[#allocation9 + $0xa0] sm:$0xff]  ;;  %v2161_v45 = vld [vmem:[#allocation9 + $0xa8] sm:$0xff] }
  0x39   :  { %397 = vmatpush.msrb.mxu0 %v2051_v5  ;;  %417 = vmatpush.msrb.mxu1 %v2053_v6  ;;  %3037 = vst [vmem:[#allocation17_spill] sm:$0xff] %v2155_v42  ;;  %v2165_v46 = vld [vmem:[#allocation9 + $0xb8] sm:$0xff]  ;;  %v2167_v47 = vld [vmem:[#allocation9 + $0xb0] sm:$0xff]  ;;  %v2170_v48 = vld [vmem:[#allocation9 + $0x80] sm:$0xff] }
  0x3a   :  { %457 = vmatpush.msrb.mxu3 %v2057_v7  ;;  %437 = vmatpush.msrb.mxu2 %v2059_v8  ;;  %3039 = vst [vmem:[#allocation19_spill] sm:$0xff] %v2159_v44  ;;  %v2172_v49 = vld [vmem:[#allocation9 + $0x88] sm:$0xff]  ;;  %v2177_v50 = vld [vmem:[#allocation9 + $0x98] sm:$0xff]  ;;  %v2179_v51 = vld [vmem:[#allocation9 + $0x90] sm:$0xff] }
  0x3b   :  { %398 = vmatpush.msrb.mxu0 %v2062_v9  ;;  %418 = vmatpush.msrb.mxu1 %v2064_v10  ;;  %3040 = vst [vmem:[#allocation20_spill] sm:$0xff] %v2161_v45  ;;  %v153_v52 = vld [vmem:[#allocation4 + $0x20] sm:$0xff]  ;;  %v2187_v54 = vld [vmem:[#allocation9 + $0x68] sm:$0xff]  ;;  %v2191_v55 = vld [vmem:[#allocation9 + $0x78] sm:$0xff] }
  0x3c   :  { %458 = vmatpush.msrb.mxu3 %v2069_v11  ;;  %438 = vmatpush.msrb.mxu2 %v2071_v12  ;;  %3041 = vst [vmem:[#allocation21_spill] sm:$0xff] %v2165_v46  ;;  %v2185_v53 = vld [vmem:[#allocation9 + $0x60] sm:$0xff]  ;;  %v2193_v56 = vld [vmem:[#allocation9 + $0x70] sm:$0xff]  ;;  %v2197_v58 = vld [vmem:[#allocation9 + $0x48] sm:$0xff] }
  0x3d   :  { %250 = vmatmul.f32.gmra.mxu0 %v150_v13  ;;  %291 = vmatmul.f32.gmra.mxu1 %v150_v13  ;;  %3042 = vst [vmem:[#allocation22_spill] sm:$0xff] %v2167_v47  ;;  %v2195_v57 = vld [vmem:[#allocation9 + $0x40] sm:$0xff]  ;;  %v2201_v59 = vld [vmem:[#allocation9 + $0x58] sm:$0xff]  ;;  %v2203_v60 = vld [vmem:[#allocation9 + $0x50] sm:$0xff] }
  0x3e   :  { %332 = vmatmul.f32.gmra.mxu2 %v150_v13  ;;  %373 = vmatmul.f32.gmra.mxu3 %v150_v13  ;;  %3043 = vst [vmem:[#allocation23_spill] sm:$0xff] %v2170_v48  ;;  %v2206_v61 = vld [vmem:[#allocation9 + $0x20] sm:$0xff]  ;;  %v2208_v62 = vld [vmem:[#allocation9 + $0x28] sm:$0xff]  ;;  %v2213_v63 = vld [vmem:[#allocation9 + $0x30] sm:$0xff] }
  0x3f   :  { %399 = vmatpush.msrb.mxu0 %v2077_v14  ;;  %419 = vmatpush.msrb.mxu1 %v2079_v15  ;;  %3044 = vst [vmem:[#allocation24_spill] sm:$0xff] %v2172_v49  ;;  %v2215_v0 = vld [vmem:[#allocation9 + $0x38] sm:$0xff]  ;;  %v154_v13 = vld [vmem:[#allocation4 + $0x28] sm:$0xff] }
  0x40   :  { %459 = vmatpush.msrb.mxu3 %v2083_v16  ;;  %439 = vmatpush.msrb.mxu2 %v2085_v17  ;;  %3045 = vst [vmem:[#allocation25_spill] sm:$0xff] %v2177_v50 }
  0x41   :  { %400 = vmatpush.msrb.mxu0 %v2087_v18  ;;  %420 = vmatpush.msrb.mxu1 %v2089_v19  ;;  %3046 = vst [vmem:[#allocation26_spill] sm:$0xff] %v2179_v51 }
  0x42   :  { %460 = vmatpush.msrb.mxu3 %v2093_v20  ;;  %440 = vmatpush.msrb.mxu2 %v2095_v21  ;;  %3047 = vst [vmem:[#allocation27_spill] sm:$0xff] %v2185_v53 }
  0x43   :  { %401 = vmatpush.msrb.mxu0 %v2098_v22  ;;  %421 = vmatpush.msrb.mxu1 %v2100_v23  ;;  %3048 = vst [vmem:[#allocation28_spill] sm:$0xff] %v2187_v54 }
  0x44   :  { %461 = vmatpush.msrb.mxu3 %v2105_v24  ;;  %441 = vmatpush.msrb.mxu2 %v2107_v25  ;;  %3049 = vst [vmem:[#allocation29_spill] sm:$0xff] %v2191_v55 }
  0x45   :  { %253 = vmatmul.f32.gmra.mxu0 %v151_v26  ;;  %294 = vmatmul.f32.gmra.mxu1 %v151_v26  ;;  %3050 = vst [vmem:[#allocation30_spill] sm:$0xff] %v2193_v56 }
  0x46   :  { %335 = vmatmul.f32.gmra.mxu2 %v151_v26  ;;  %376 = vmatmul.f32.gmra.mxu3 %v151_v26  ;;  %3051 = vst [vmem:[#allocation31_spill] sm:$0xff] %v2195_v57  ;;  %v2221_v26 = vld [vmem:[#allocation9] sm:$0xff] }
  0x47   :  { %402 = vmatpush.msrb.mxu0 %v2113_v27  ;;  %422 = vmatpush.msrb.mxu1 %v2115_v28  ;;  %3052 = vst [vmem:[#allocation32_spill] sm:$0xff] %v2197_v58 }
  0x48   :  { %462 = vmatpush.msrb.mxu3 %v2119_v29  ;;  %442 = vmatpush.msrb.mxu2 %v2121_v30  ;;  %3053 = vst [vmem:[#allocation33_spill] sm:$0xff] %v2201_v59 }
  0x49   :  { %403 = vmatpush.msrb.mxu0 %v2123_v31  ;;  %423 = vmatpush.msrb.mxu1 %v2125_v32  ;;  %3054 = vst [vmem:[#allocation34_spill] sm:$0xff] %v2203_v60 }
  0x4a   :  { %463 = vmatpush.msrb.mxu3 %v2129_v33  ;;  %443 = vmatpush.msrb.mxu2 %v2131_v34  ;;  %3055 = vst [vmem:[#allocation35_spill] sm:$0xff] %v2206_v61 }
  0x4b   :  { %404 = vmatpush.msrb.mxu0 %v2134_v35  ;;  %424 = vmatpush.msrb.mxu1 %v2136_v36  ;;  %3056 = vst [vmem:[#allocation36_spill] sm:$0xff] %v2208_v62 }
  0x4c   :  { %464 = vmatpush.msrb.mxu3 %v2141_v37  ;;  %444 = vmatpush.msrb.mxu2 %v2143_v38  ;;  %3057 = vst [vmem:[#allocation37_spill] sm:$0xff] %v2213_v63 }
  0x4d   :  { %256 = vmatmul.f32.gmra.mxu0 %v152_v39  ;;  %297 = vmatmul.f32.gmra.mxu1 %v152_v39  ;;  %3058 = vst [vmem:[#allocation38_spill] sm:$0xff] %v2215_v0 }
  0x4e   :  { %338 = vmatmul.f32.gmra.mxu2 %v152_v39  ;;  %379 = vmatmul.f32.gmra.mxu3 %v152_v39  ;;  %3059 = vst [vmem:[#allocation39_spill] sm:$0xff] %v2221_v26  ;;  %v2223_v39 = vld [vmem:[#allocation9 + $0x8] sm:$0xff] }
  0x4f   :  { %405 = vmatpush.msrb.mxu0 %v2149_v40  ;;  %425 = vmatpush.msrb.mxu1 %v2151_v41  ;;  %3060 = vst [vmem:[#allocation40_spill] sm:$0xff] %v2223_v39 }
  0x50   :  { %465 = vmatpush.msrb.mxu3 %v2155_v42  ;;  %445 = vmatpush.msrb.mxu2 %v2157_v43 }
  0x51   :  { %406 = vmatpush.msrb.mxu0 %v2159_v44  ;;  %426 = vmatpush.msrb.mxu1 %v2161_v45 }
  0x52   :  { %466 = vmatpush.msrb.mxu3 %v2165_v46  ;;  %446 = vmatpush.msrb.mxu2 %v2167_v47 }
  0x53   :  { %407 = vmatpush.msrb.mxu0 %v2170_v48  ;;  %427 = vmatpush.msrb.mxu1 %v2172_v49 }
  0x54   :  { %467 = vmatpush.msrb.mxu3 %v2177_v50  ;;  %447 = vmatpush.msrb.mxu2 %v2179_v51 }
  0x55   :  { %259 = vmatmul.f32.gmra.mxu0 %v153_v52  ;;  %300 = vmatmul.f32.gmra.mxu1 %v153_v52 }
  0x56   :  { %341 = vmatmul.f32.gmra.mxu2 %v153_v52  ;;  %382 = vmatmul.f32.gmra.mxu3 %v153_v52  ;;  %v2227_v52 = vld [vmem:[#allocation9 + $0x10] sm:$0xff] }
  0x57   :  { %408 = vmatpush.msrb.mxu0 %v2185_v53  ;;  %428 = vmatpush.msrb.mxu1 %v2187_v54  ;;  %3061 = vst [vmem:[#allocation41_spill] sm:$0xff] %v2227_v52 }
  0x58   :  { %468 = vmatpush.msrb.mxu3 %v2191_v55  ;;  %448 = vmatpush.msrb.mxu2 %v2193_v56 }
  0x59   :  { %409 = vmatpush.msrb.mxu0 %v2195_v57  ;;  %429 = vmatpush.msrb.mxu1 %v2197_v58  ;;  %v2229_v58 = vld [vmem:[#allocation9 + $0x18] sm:$0xff] }
  0x5a   :  { %469 = vmatpush.msrb.mxu3 %v2201_v59  ;;  %449 = vmatpush.msrb.mxu2 %v2203_v60  ;;  %3062 = vst [vmem:[#allocation42_spill] sm:$0xff] %v2229_v58 }
  0x5b   :  { %410 = vmatpush.msrb.mxu0 %v2206_v61  ;;  %430 = vmatpush.msrb.mxu1 %v2208_v62 }
  0x5c   :  { %450 = vmatpush.msrb.mxu2 %v2213_v63  ;;  %470 = vmatpush.msrb.mxu3 %v2215_v0  ;;  %v155_v0 = vld [vmem:[#allocation4 + $0x30] sm:$0xff] }
  0x5d   :  { %262 = vmatmul.f32.gmra.mxu0 %v154_v13  ;;  %303 = vmatmul.f32.gmra.mxu1 %v154_v13 }
  0x5e   :  { %344 = vmatmul.f32.gmra.mxu2 %v154_v13  ;;  %385 = vmatmul.f32.gmra.mxu3 %v154_v13  ;;  %v156_v13 = vld [vmem:[#allocation4 + $0x38] sm:$0xff] }
  0x5f   :  { %411 = vmatpush.msrb.mxu0 %v2221_v26  ;;  %431 = vmatpush.msrb.mxu1 %v2223_v39 }
  0x60   :  { %451 = vmatpush.msrb.mxu2 %v2227_v52  ;;  %471 = vmatpush.msrb.mxu3 %v2229_v58 }
  0x61   :  { %548 = vmatpush.msra.mxu0 %v2043_v1  ;;  %568 = vmatpush.msra.mxu1 %v2045_v2 }
  0x62   :  { %588 = vmatpush.msra.mxu2 %v2049_v4  ;;  %608 = vmatpush.msra.mxu3 %v2047_v3 }
  0x63   :  { %549 = vmatpush.msra.mxu0 %v2051_v5  ;;  %569 = vmatpush.msra.mxu1 %v2053_v6 }
  0x64   :  { %589 = vmatpush.msra.mxu2 %v2059_v8  ;;  %609 = vmatpush.msra.mxu3 %v2057_v7 }
  0x65   :  { %265 = vmatmul.f32.gmra.mxu0 %v155_v0  ;;  %306 = vmatmul.f32.gmra.mxu1 %v155_v0 }
  0x66   :  { %347 = vmatmul.f32.gmra.mxu2 %v155_v0  ;;  %388 = vmatmul.f32.gmra.mxu3 %v155_v0  ;;  %v2001_v0 = vmov 0.0  }
  0x67   :  { %550 = vmatpush.msra.mxu0 %v2062_v9  ;;  %570 = vmatpush.msra.mxu1 %v2064_v10 }
  0x68   :  { %590 = vmatpush.msra.mxu2 %v2071_v12  ;;  %610 = vmatpush.msra.mxu3 %v2069_v11 }
  0x69   :  { %551 = vmatpush.msra.mxu0 %v2077_v14  ;;  %571 = vmatpush.msra.mxu1 %v2079_v15 }
  0x6a   :  { %591 = vmatpush.msra.mxu2 %v2085_v17  ;;  %611 = vmatpush.msra.mxu3 %v2083_v16 }
  0x6b   :  { %552 = vmatpush.msra.mxu0 %v2087_v18  ;;  %572 = vmatpush.msra.mxu1 %v2089_v19 }
  0x6c   :  { %592 = vmatpush.msra.mxu2 %v2095_v21  ;;  %612 = vmatpush.msra.mxu3 %v2093_v20 }
  0x6d   :  { %268 = vmatmul.f32.gmra.mxu0 %v156_v13  ;;  %309 = vmatmul.f32.gmra.mxu1 %v156_v13 }
  0x6e   :  { %350 = vmatmul.f32.gmra.mxu2 %v156_v13  ;;  %391 = vmatmul.f32.gmra.mxu3 %v156_v13  ;;  %v3063_v13 = vld [vmem:[#allocation32_spill] sm:$0xff] }
  0x6f   :  { %553 = vmatpush.msra.mxu0 %v2098_v22  ;;  %573 = vmatpush.msra.mxu1 %v2100_v23 }
  0x70   :  { %593 = vmatpush.msra.mxu2 %v2107_v25  ;;  %613 = vmatpush.msra.mxu3 %v2105_v24 }
  0x71   :  { %554 = vmatpush.msra.mxu0 %v2113_v27  ;;  %574 = vmatpush.msra.mxu1 %v2115_v28 }
  0x72   :  { %594 = vmatpush.msra.mxu2 %v2121_v30  ;;  %614 = vmatpush.msra.mxu3 %v2119_v29 }
  0x73   :  { %555 = vmatpush.msra.mxu0 %v2123_v31  ;;  %575 = vmatpush.msra.mxu1 %v2125_v32 }
  0x74   :  { %595 = vmatpush.msra.mxu2 %v2131_v34  ;;  %615 = vmatpush.msra.mxu3 %v2129_v33 }
  0x75   :  { %412 = vmatmul.f32.vlgmr.msrb.gmra.mxu0 %v2001_v0  ;;  %432 = vmatmul.f32.vlgmr.msrb.gmra.mxu1 %v2001_v0 }
  0x76   :  { %452 = vmatmul.f32.vlgmr.msrb.gmra.mxu2 %v2001_v0  ;;  %472 = vmatmul.f32.vlgmr.msrb.gmra.mxu3 %v2001_v0  ;;  %v3064_v0 = vld [vmem:[#allocation38_spill] sm:$0xff] }
  0x77   :  { %556 = vmatpush.msra.mxu0 %v2134_v35  ;;  %576 = vmatpush.msra.mxu1 %v2136_v36 }
  0x78   :  { %596 = vmatpush.msra.mxu2 %v2143_v38  ;;  %616 = vmatpush.msra.mxu3 %v2141_v37 }
  0x79   :  { %557 = vmatpush.msra.mxu0 %v2149_v40  ;;  %577 = vmatpush.msra.mxu1 %v2151_v41 }
  0x7a   :  { %597 = vmatpush.msra.mxu2 %v2157_v43  ;;  %617 = vmatpush.msra.mxu3 %v2155_v42 }
  0x7b   :  { %558 = vmatpush.msra.mxu0 %v2159_v44  ;;  %578 = vmatpush.msra.mxu1 %v2161_v45 }
  0x7c   :  { %598 = vmatpush.msra.mxu2 %v2167_v47  ;;  %618 = vmatpush.msra.mxu3 %v2165_v46 }
  0x7d   :  { %559 = vmatpush.msra.mxu0 %v2170_v48  ;;  %579 = vmatpush.msra.mxu1 %v2172_v49 }
  0x7e   :  { %599 = vmatpush.msra.mxu2 %v2179_v51  ;;  %619 = vmatpush.msra.mxu3 %v2177_v50 }
  0x7f   :  { %560 = vmatpush.msra.mxu0 %v2185_v53  ;;  %580 = vmatpush.msra.mxu1 %v2187_v54 }
  0x80   :  { %600 = vmatpush.msra.mxu2 %v2193_v56  ;;  %620 = vmatpush.msra.mxu3 %v2191_v55 }
  0x81   :  { %561 = vmatpush.msra.mxu0 %v2195_v57  ;;  %581 = vmatpush.msra.mxu1 %v3063_v13 }
  0x82   :  { %601 = vmatpush.msra.mxu2 %v2203_v60  ;;  %621 = vmatpush.msra.mxu3 %v2201_v59 }
  0x83   :  { %562 = vmatpush.msra.mxu0 %v2206_v61  ;;  %582 = vmatpush.msra.mxu1 %v2208_v62 }
  0x84   :  { %602 = vmatpush.msra.mxu2 %v2213_v63  ;;  %622 = vmatpush.msra.mxu3 %v3064_v0 }
  0x85   :  { %563 = vmatpush.msra.mxu0 %v2221_v26  ;;  %583 = vmatpush.msra.mxu1 %v2223_v39 }
  0x86   :  { %603 = vmatpush.msra.mxu2 %v2227_v52  ;;  %623 = vmatpush.msra.mxu3 %v2229_v58 }
  0x87   :  { %701 = vmatpush.msrb.mxu0 %v2043_v1  ;;  %721 = vmatpush.msrb.mxu1 %v2045_v2 }
  0x88   :  { %741 = vmatpush.msrb.mxu2 %v2049_v4  ;;  %761 = vmatpush.msrb.mxu3 %v2047_v3 }
  0x89   :  { %702 = vmatpush.msrb.mxu0 %v2051_v5  ;;  %722 = vmatpush.msrb.mxu1 %v2053_v6 }
  0x8a   :  { %742 = vmatpush.msrb.mxu2 %v2059_v8  ;;  %762 = vmatpush.msrb.mxu3 %v2057_v7 }
  0x8b   :  { %703 = vmatpush.msrb.mxu0 %v2062_v9  ;;  %723 = vmatpush.msrb.mxu1 %v2064_v10 }
  0x8c   :  { %743 = vmatpush.msrb.mxu2 %v2071_v12  ;;  %763 = vmatpush.msrb.mxu3 %v2069_v11 }
  0x8d   :  { %704 = vmatpush.msrb.mxu0 %v2077_v14  ;;  %724 = vmatpush.msrb.mxu1 %v2079_v15 }
  0x8e   :  { %744 = vmatpush.msrb.mxu2 %v2085_v17  ;;  %764 = vmatpush.msrb.mxu3 %v2083_v16 }
  0x8f   :  { %705 = vmatpush.msrb.mxu0 %v2087_v18  ;;  %725 = vmatpush.msrb.mxu1 %v2089_v19 }
  0x90   :  { %745 = vmatpush.msrb.mxu2 %v2095_v21  ;;  %765 = vmatpush.msrb.mxu3 %v2093_v20 }
  0x91   :  { %706 = vmatpush.msrb.mxu0 %v2098_v22  ;;  %726 = vmatpush.msrb.mxu1 %v2100_v23 }
  0x92   :  { %746 = vmatpush.msrb.mxu2 %v2107_v25  ;;  %766 = vmatpush.msrb.mxu3 %v2105_v24 }
  0x93   :  { %707 = vmatpush.msrb.mxu0 %v2113_v27  ;;  %727 = vmatpush.msrb.mxu1 %v2115_v28 }
  0x94   :  { %747 = vmatpush.msrb.mxu2 %v2121_v30  ;;  %767 = vmatpush.msrb.mxu3 %v2119_v29 }
  0x95   :  { %708 = vmatpush.msrb.mxu0 %v2123_v31  ;;  %728 = vmatpush.msrb.mxu1 %v2125_v32 }
  0x96   :  { %748 = vmatpush.msrb.mxu2 %v2131_v34  ;;  %768 = vmatpush.msrb.mxu3 %v2129_v33 }
  0x97   :  { %709 = vmatpush.msrb.mxu0 %v2134_v35  ;;  %729 = vmatpush.msrb.mxu1 %v2136_v36 }
  0x98   :  { %749 = vmatpush.msrb.mxu2 %v2143_v38  ;;  %769 = vmatpush.msrb.mxu3 %v2141_v37 }
  0x99   :  { %710 = vmatpush.msrb.mxu0 %v2149_v40  ;;  %730 = vmatpush.msrb.mxu1 %v2151_v41 }
  0x9a   :  { %750 = vmatpush.msrb.mxu2 %v2157_v43  ;;  %770 = vmatpush.msrb.mxu3 %v2155_v42 }
  0x9b   :  { %711 = vmatpush.msrb.mxu0 %v2159_v44  ;;  %731 = vmatpush.msrb.mxu1 %v2161_v45 }
  0x9c   :  { %751 = vmatpush.msrb.mxu2 %v2167_v47  ;;  %771 = vmatpush.msrb.mxu3 %v2165_v46 }
  0x9d   :  { %712 = vmatpush.msrb.mxu0 %v2170_v48  ;;  %732 = vmatpush.msrb.mxu1 %v2172_v49 }
  0x9e   :  { %752 = vmatpush.msrb.mxu2 %v2179_v51  ;;  %772 = vmatpush.msrb.mxu3 %v2177_v50 }
  0x9f   :  { %713 = vmatpush.msrb.mxu0 %v2185_v53  ;;  %733 = vmatpush.msrb.mxu1 %v2187_v54 }
  0xa0   :  { %753 = vmatpush.msrb.mxu2 %v2193_v56  ;;  %773 = vmatpush.msrb.mxu3 %v2191_v55 }
  0xa1   :  { %714 = vmatpush.msrb.mxu0 %v2195_v57  ;;  %734 = vmatpush.msrb.mxu1 %v3063_v13  ;;  %v221_v57 = vld [vmem:[#allocation10] sm:$0xf] }
  0xa2   :  { %754 = vmatpush.msrb.mxu2 %v2203_v60  ;;  %774 = vmatpush.msrb.mxu3 %v2201_v59  ;;  %v223_v59 = vperm.slane %v221_v57, 0  ;;  %v224_v55 = vperm.slane %v221_v57, 1 }
  0xa3   :  { %715 = vmatpush.msrb.mxu0 %v2206_v61  ;;  %735 = vmatpush.msrb.mxu1 %v2208_v62 }
  0xa4   :  { %755 = vmatpush.msrb.mxu2 %v2213_v63  ;;  %775 = vmatpush.msrb.mxu3 %v3064_v0 }
  0xa5   :  { %716 = vmatpush.msrb.mxu0 %v2221_v26  ;;  %736 = vmatpush.msrb.mxu1 %v2223_v39  ;;  %v2371_v39 = vperm.slane %v221_v57, 2 }
  0xa6   :  { %756 = vmatpush.msrb.mxu2 %v2227_v52  ;;  %776 = vmatpush.msrb.mxu3 %v2229_v58  ;;  %v226_v52 = vperm.slane %v221_v57, 3 }
  0xb2   :  { %v248_v13 = vpop.f32.mrf.mxu0  ;;  %v289_v60 = vpop.f32.mrf.mxu1 }
  0xb9   :  { %v2363_v61 = vpop.f32.mrf.mxu2  ;;  %v2365_v62 = vpop.f32.mrf.mxu3 }
  0xba   :  { %v251_v63 = vpop.f32.mrf.mxu0  ;;  %v292_v56 = vpop.f32.mrf.mxu1 }
  0xbb   :  { %v2367_v0 = vadd.f32 %v251_v63, %v223_v59  ;;  %v2369_v26 = vadd.f32 %v292_v56, %v224_v55 }
  0xbd   :  { %3065 = vst [vmem:[#allocation43_spill] sm:$0xff] %v2367_v0 }
  0xbe   :  { %3066 = vst [vmem:[#allocation44_spill] sm:$0xff] %v2369_v26 }
  0xc1   :  { %v333_v54 = vpop.f32.mrf.mxu2  ;;  %v374_v58 = vpop.f32.mrf.mxu3 }
  0xc2   :  { %v2374_v53 = vadd.f32 %v333_v54, %v2371_v39  ;;  %v2376_v50 = vadd.f32 %v374_v58, %v226_v52  ;;  %v254_v51 = vpop.f32.mrf.mxu0  ;;  %v295_v49 = vpop.f32.mrf.mxu1 }
  0xc3   :  { %v2378_v48 = vadd.f32 %v254_v51, %v223_v59  ;;  %v2380_v46 = vadd.f32 %v295_v49, %v224_v55 }
  0xc4   :  { %3067 = vst [vmem:[#allocation45_spill] sm:$0xff] %v2374_v53 }
  0xc5   :  { %3068 = vst [vmem:[#allocation46_spill] sm:$0xff] %v2376_v50 }
  0xc6   :  { %3069 = vst [vmem:[#allocation47_spill] sm:$0xff] %v2378_v48 }
  0xc7   :  { %3070 = vst [vmem:[#allocation48_spill] sm:$0xff] %v2380_v46 }
  0xc9   :  { %v336_v63 = vpop.f32.mrf.mxu2  ;;  %v377_v0 = vpop.f32.mrf.mxu3 }
  0xca   :  { %v2383_v56 = vadd.f32 %v336_v63, %v2371_v39  ;;  %v2385_v26 = vadd.f32 %v377_v0, %v226_v52  ;;  %v257_v57 = vpop.f32.mrf.mxu0  ;;  %v298_v47 = vpop.f32.mrf.mxu1 }
  0xcb   :  { %v2387_v45 = vadd.f32 %v257_v57, %v223_v59  ;;  %v2389_v54 = vadd.f32 %v298_v47, %v224_v55 }
  0xcc   :  { %3071 = vst [vmem:[#allocation49_spill] sm:$0xff] %v2383_v56 }
  0xcd   :  { %3072 = vst [vmem:[#allocation50_spill] sm:$0xff] %v2385_v26 }
  0xce   :  { %3073 = vst [vmem:[#allocation51_spill] sm:$0xff] %v2387_v45 }
  0xcf   :  { %3074 = vst [vmem:[#allocation52_spill] sm:$0xff] %v2389_v54 }
  0xd1   :  { %v339_v58 = vpop.f32.mrf.mxu2  ;;  %v380_v53 = vpop.f32.mrf.mxu3 }
  0xd2   :  { %v2392_v51 = vadd.f32 %v339_v58, %v2371_v39  ;;  %v2394_v49 = vadd.f32 %v380_v53, %v226_v52  ;;  %v260_v46 = vpop.f32.mrf.mxu0  ;;  %v301_v48 = vpop.f32.mrf.mxu1 }
  0xd3   :  { %v2396_v50 = vadd.f32 %v260_v46, %v223_v59  ;;  %v2398_v63 = vadd.f32 %v301_v48, %v224_v55 }
  0xd4   :  { %3075 = vst [vmem:[#allocation53_spill] sm:$0xff] %v2392_v51 }
  0xd5   :  { %3076 = vst [vmem:[#allocation54_spill] sm:$0xff] %v2394_v49 }
  0xd6   :  { %3077 = vst [vmem:[#allocation55_spill] sm:$0xff] %v2396_v50 }
  0xd7   :  { %3078 = vst [vmem:[#allocation56_spill] sm:$0xff] %v2398_v63 }
  0xd9   :  { %v342_v0 = vpop.f32.mrf.mxu2  ;;  %v383_v56 = vpop.f32.mrf.mxu3 }
  0xda   :  { %v2401_v57 = vadd.f32 %v342_v0, %v2371_v39  ;;  %v2403_v47 = vadd.f32 %v383_v56, %v226_v52  ;;  %v263_v54 = vpop.f32.mrf.mxu0  ;;  %v304_v45 = vpop.f32.mrf.mxu1 }
  0xdb   :  { %v2405_v26 = vadd.f32 %v263_v54, %v223_v59  ;;  %v2407_v58 = vadd.f32 %v304_v45, %v224_v55 }
  0xdc   :  { %3079 = vst [vmem:[#allocation57_spill] sm:$0xff] %v2401_v57 }
  0xdd   :  { %3080 = vst [vmem:[#allocation58_spill] sm:$0xff] %v2403_v47 }
  0xde   :  { %3081 = vst [vmem:[#allocation59_spill] sm:$0xff] %v2405_v26 }
  0xdf   :  { %3082 = vst [vmem:[#allocation60_spill] sm:$0xff] %v2407_v58 }
  0xe1   :  { %v345_v53 = vpop.f32.mrf.mxu2  ;;  %v386_v51 = vpop.f32.mrf.mxu3 }
  0xe2   :  { %v2410_v46 = vadd.f32 %v345_v53, %v2371_v39  ;;  %v2412_v48 = vadd.f32 %v386_v51, %v226_v52  ;;  %v266_v63 = vpop.f32.mrf.mxu0  ;;  %v307_v50 = vpop.f32.mrf.mxu1  ;;  %v249_v51 = vadd.f32 %v248_v13, %v223_v59 }
  0xe3   :  { %v2414_v49 = vadd.f32 %v266_v63, %v223_v59  ;;  %v2416_v0 = vadd.f32 %v307_v50, %v224_v55 }
  0xe4   :  { %3083 = vst [vmem:[#allocation61_spill] sm:$0xff] %v2410_v46  ;;  %v290_v46 = vadd.f32 %v289_v60, %v224_v55 }
  0xe5   :  { %3084 = vst [vmem:[#allocation62_spill] sm:$0xff] %v2412_v48 }
  0xe6   :  { %3085 = vst [vmem:[#allocation63_spill] sm:$0xff] %v2414_v49 }
  0xe7   :  { %3086 = vst [vmem:[#allocation64_spill] sm:$0xff] %v2416_v0 }
  0xe9   :  { %v348_v56 = vpop.f32.mrf.mxu2  ;;  %v389_v57 = vpop.f32.mrf.mxu3 }
  0xea   :  { %v2419_v54 = vadd.f32 %v348_v56, %v2371_v39  ;;  %v2421_v45 = vadd.f32 %v389_v57, %v226_v52  ;;  %v269_v58 = vpop.f32.mrf.mxu0  ;;  %v310_v26 = vpop.f32.mrf.mxu1 }
  0xeb   :  { %v2423_v47 = vadd.f32 %v269_v58, %v223_v59  ;;  %v2425_v53 = vadd.f32 %v310_v26, %v224_v55  ;;  %v372_v58 = vadd.f32 %v2365_v62, %v226_v52 }
  0xec   :  { %3087 = vst [vmem:[#allocation65_spill] sm:$0xff] %v2419_v54 }
  0xed   :  { %3088 = vst [vmem:[#allocation66_spill] sm:$0xff] %v2421_v45 }
  0xee   :  { %3089 = vst [vmem:[#allocation67_spill] sm:$0xff] %v2423_v47 }
  0xef   :  { %3090 = vst [vmem:[#allocation68_spill] sm:$0xff] %v2425_v53 }
  0xf1   :  { %v351_v48 = vpop.f32.mrf.mxu2  ;;  %v392_v63 = vpop.f32.mrf.mxu3 }
  0xf2   :  { %v2428_v50 = vadd.f32 %v351_v48, %v2371_v39  ;;  %v2430_v0 = vadd.f32 %v392_v63, %v226_v52  ;;  %v413_v49 = vpop.f32.mrf.mxu0  ;;  %v433_v56 = vpop.f32.mrf.mxu1 }
  0xf3   :  { %v476_v54 = vadd.f32 %v413_v49, %v249_v51  ;;  %v477_v57 = vadd.f32 %v433_v56, %v290_v46  ;;  %v331_v49 = vadd.f32 %v2363_v61, %v2371_v39 }
  0xf4   :  { %3091 = vst [vmem:[#allocation69_spill] sm:$0xff] %v2428_v50 }
  0xf5   :  { %3092 = vst [vmem:[#allocation70_spill] sm:$0xff] %v2430_v0  ;;  %v1639_v45 = vmul.f32 -1.442695, %v476_v54  ;;  %v1640_v44 = vmul.f32 -1.442695, %v477_v57 }
  0xf7   :  { %1673 = vpow2.f32 %v1639_v45 }
  0xf8   :  { %1675 = vpow2.f32 %v1640_v44 }
  0xf9   :  { %v473_v26 = vpop.f32.mrf.mxu3  ;;  %v453_v63 = vpop.f32.mrf.mxu2 }
  0xfa   :  { %v479_v59 = vadd.f32 %v473_v26, %v372_v58  ;;  %v478_v45 = vadd.f32 %v453_v63, %v331_v49 }
  0xfc   :  { %v1641_v55 = vmul.f32 -1.442695, %v479_v59 }
  0xfd   :  { %v1674_v60 = vpop.eup %1673 }
  0xfe   :  { %v1676_v13 = vpop.eup %1675  ;;  %v483_v53 = vadd.f32 1.0, %v1674_v60  ;;  %1677 = vpow2.f32 %v1641_v55 }
  0xff   :  { %v502_v48 = vadd.f32 1.0, %v1676_v13 }
 0x100   :  { %1679 = vrcp.f32 %v483_v53  ;;  %v495_v57 = vand.u32 2147483648, %v483_v53  ;;  %v493_v59 = vand.u32 2147483647, %v483_v53  ;;  %vm489_vm2 = vweird.f32 %v483_v53 }
 0x101   :  { %1681 = vrcp.f32 %v502_v48  ;;  %v514_v58 = vand.u32 2147483648, %v502_v48  ;;  %v512_v60 = vand.u32 2147483647, %v502_v48  ;;  %vm508_vm3 = vweird.f32 %v502_v48 }
 0x102   :  { %v496_v39 = vor.u32 1.1754944e-38, %v495_v57  ;;  %vm494_vm5 = vcmp.eq.f32.partialorder %v493_v59, 8.507059e+37 }
 0x103   :  { %v515_v49 = vor.u32 1.1754944e-38, %v514_v58  ;;  %vm513_vm7 = vcmp.eq.f32.partialorder %v512_v60, 8.507059e+37 }
 0x104   :  { %v1678_v50 = vpop.eup %1677 }
 0x105   :  { %v522_v46 = vadd.f32 1.0, %v1678_v50 }
 0x106   :  { %v1680_v54 = vpop.eup %1679 }
 0x107   :  { %v1682_v62 = vpop.eup %1681  ;;  %v485_v44 = vmul.f32 %v1680_v54, %v483_v53  ;;  %1683 = vrcp.f32 %v522_v46  ;;  %vm490_vm0 = vweird.f32 %v1680_v54  ;;  %vm528_vm9 = vweird.f32 %v522_v46 }
 0x108   :  { %v504_v52 = vmul.f32 %v1682_v62, %v502_v48  ;;  %1685 = vtanh.f32 %v478_v45  ;;  %vm509_vm1 = vweird.f32 %v1682_v62  ;;  %vm491_vm4 = vmor %vm489_vm2, %vm490_vm0  ;;  %v534_v48 = vand.u32 2147483648, %v522_v46 }
 0x109   :  { %v486_v51 = vsub.f32 1.0, %v485_v44  ;;  %vm510_vm6 = vmor %vm508_vm3, %vm509_vm1 }
 0x10a   :  { %v505_v56 = vsub.f32 1.0, %v504_v52  ;;  %v535_v58 = vor.u32 1.1754944e-38, %v534_v48 }
 0x10b   :  { %v487_v26 = vmul.f32 %v1680_v54, %v486_v51 }
 0x10c   :  { %v506_v55 = vmul.f32 %v1682_v62, %v505_v56 }
 0x10d   :  { %v1684_v13 = vpop.eup %1683  ;;  %v488_v61 = vadd.f32 %v1680_v54, %v487_v26 }
 0x10e   :  { %v507_v50 = vadd.f32 %v1682_v62, %v506_v55  ;;  %v524_v63 = vmul.f32 %v1684_v13, %v522_v46  ;;  %v1686_v45 = vpop.eup %1685  ;;  %vm529_vm8 = vweird.f32 %v1684_v13 }
 0x10f   :  { %v492_v44 = vsel %vm491_vm4, %v1680_v54, %v488_v61  ;;  %v532_v54 = vand.u32 2147483647, %v522_v46  ;;  %vm530_vm10 = vmor %vm528_vm9, %vm529_vm8 }
 0x110   :  { %v497_v52 = vsel %vm494_vm5, %v496_v39, %v492_v44  ;;  %v511_v51 = vsel %vm510_vm6, %v1682_v62, %v507_v50  ;;  %v525_v0 = vsub.f32 1.0, %v524_v63  ;;  %v3122_v39 = vld [vmem:[#allocation45_spill] sm:$0xff] }
 0x111   :  { %v516_v56 = vsel %vm513_vm7, %v515_v49, %v511_v51  ;;  %v538_v47 = vmul.f32 %v1686_v45, %v497_v52  ;;  %vm533_vm11 = vcmp.eq.f32.partialorder %v532_v54, 8.507059e+37 }
 0x112   :  { %v540_v42 = vmul.f32 0.0, %v516_v56  ;;  %v526_v43 = vmul.f32 %v1684_v13, %v525_v0 }
 0x114   :  { %v2435_v26 = vadd.f32 %v540_v42, %v538_v47  ;;  %v527_v53 = vadd.f32 %v1684_v13, %v526_v43 }
 0x116   :  { %1687 = vtanh.f32 %v2435_v26  ;;  %v531_v57 = vsel %vm530_vm10, %v1684_v13, %v527_v53 }
 0x117   :  { %v536_v59 = vsel %vm533_vm11, %v535_v58, %v531_v57 }
 0x11c   :  { %v1688_v62 = vpop.eup %1687 }
 0x11d   :  { %v543_v55 = vmul.f32 %v1688_v62, %v536_v59 }
 0x11f   :  { %546 = vst [vmem:[#allocation12] sm:$0xff] %v543_v55  ;;  %564 = vmatmul.f32.vlgmr.msra.gmra.mxu0 %v543_v55  ;;  %584 = vmatmul.f32.vlgmr.msra.gmra.mxu1 %v543_v55 }
 0x120   :  { %604 = vmatmul.f32.vlgmr.msra.gmra.mxu2 %v543_v55  ;;  %624 = vmatmul.f32.vlgmr.msra.gmra.mxu3 %v543_v55 }
 0x121   :  { %854 = vmatpush.msra.mxu0 %v2043_v1  ;;  %874 = vmatpush.msra.mxu1 %v2045_v2  ;;  %v3093_v1 = vld [vmem:[#allocation18_spill] sm:$0xff]  ;;  %v3094_v2 = vld [vmem:[#allocation17_spill] sm:$0xff] }
 0x122   :  { %894 = vmatpush.msra.mxu2 %v2049_v4  ;;  %914 = vmatpush.msra.mxu3 %v2047_v3  ;;  %v3095_v3 = vld [vmem:[#allocation19_spill] sm:$0xff]  ;;  %v3096_v4 = vld [vmem:[#allocation20_spill] sm:$0xff] }
 0x123   :  { %855 = vmatpush.msra.mxu0 %v2051_v5  ;;  %875 = vmatpush.msra.mxu1 %v2053_v6  ;;  %v3097_v5 = vld [vmem:[#allocation22_spill] sm:$0xff]  ;;  %v3098_v6 = vld [vmem:[#allocation21_spill] sm:$0xff] }
 0x124   :  { %895 = vmatpush.msra.mxu2 %v2059_v8  ;;  %915 = vmatpush.msra.mxu3 %v2057_v7  ;;  %v3099_v7 = vld [vmem:[#allocation23_spill] sm:$0xff]  ;;  %v3100_v8 = vld [vmem:[#allocation24_spill] sm:$0xff] }
 0x125   :  { %856 = vmatpush.msra.mxu0 %v2062_v9  ;;  %876 = vmatpush.msra.mxu1 %v2064_v10  ;;  %v3101_v9 = vld [vmem:[#allocation26_spill] sm:$0xff]  ;;  %v3102_v10 = vld [vmem:[#allocation25_spill] sm:$0xff] }
 0x126   :  { %896 = vmatpush.msra.mxu2 %v2071_v12  ;;  %916 = vmatpush.msra.mxu3 %v2069_v11  ;;  %v3103_v11 = vld [vmem:[#allocation27_spill] sm:$0xff]  ;;  %v3104_v12 = vld [vmem:[#allocation28_spill] sm:$0xff] }
 0x127   :  { %857 = vmatpush.msra.mxu0 %v2077_v14  ;;  %877 = vmatpush.msra.mxu1 %v2079_v15  ;;  %v3105_v14 = vld [vmem:[#allocation30_spill] sm:$0xff]  ;;  %v3106_v15 = vld [vmem:[#allocation29_spill] sm:$0xff] }
 0x128   :  { %897 = vmatpush.msra.mxu2 %v2085_v17  ;;  %917 = vmatpush.msra.mxu3 %v2083_v16  ;;  %v3107_v16 = vld [vmem:[#allocation31_spill] sm:$0xff]  ;;  %v3108_v17 = vld [vmem:[#allocation32_spill] sm:$0xff] }
 0x129   :  { %858 = vmatpush.msra.mxu0 %v2087_v18  ;;  %878 = vmatpush.msra.mxu1 %v2089_v19  ;;  %v3109_v18 = vld [vmem:[#allocation34_spill] sm:$0xff]  ;;  %v3110_v19 = vld [vmem:[#allocation33_spill] sm:$0xff] }
 0x12a   :  { %898 = vmatpush.msra.mxu2 %v2095_v21  ;;  %918 = vmatpush.msra.mxu3 %v2093_v20  ;;  %v3111_v20 = vld [vmem:[#allocation35_spill] sm:$0xff]  ;;  %v3112_v21 = vld [vmem:[#allocation36_spill] sm:$0xff] }
 0x12b   :  { %859 = vmatpush.msra.mxu0 %v2098_v22  ;;  %879 = vmatpush.msra.mxu1 %v2100_v23  ;;  %v3113_v22 = vld [vmem:[#allocation37_spill] sm:$0xff]  ;;  %v3114_v23 = vld [vmem:[#allocation38_spill] sm:$0xff] }
 0x12c   :  { %899 = vmatpush.msra.mxu2 %v2107_v25  ;;  %919 = vmatpush.msra.mxu3 %v2105_v24  ;;  %v3115_v24 = vld [vmem:[#allocation39_spill] sm:$0xff]  ;;  %v3116_v25 = vld [vmem:[#allocation40_spill] sm:$0xff] }
 0x12d   :  { %860 = vmatpush.msra.mxu0 %v2113_v27  ;;  %880 = vmatpush.msra.mxu1 %v2115_v28  ;;  %v3117_v27 = vld [vmem:[#allocation41_spill] sm:$0xff]  ;;  %v3118_v28 = vld [vmem:[#allocation42_spill] sm:$0xff] }
 0x12e   :  { %900 = vmatpush.msra.mxu2 %v2121_v30  ;;  %920 = vmatpush.msra.mxu3 %v2119_v29 }
 0x12f   :  { %861 = vmatpush.msra.mxu0 %v2123_v31  ;;  %881 = vmatpush.msra.mxu1 %v2125_v32  ;;  %v3119_v31 = vld [vmem:[#allocation43_spill] sm:$0xff] }
 0x130   :  { %901 = vmatpush.msra.mxu2 %v2131_v34  ;;  %921 = vmatpush.msra.mxu3 %v2129_v33  ;;  %v3120_v33 = vld [vmem:[#allocation44_spill] sm:$0xff] }
 0x131   :  { %862 = vmatpush.msra.mxu0 %v2134_v35  ;;  %882 = vmatpush.msra.mxu1 %v2136_v36 }
 0x132   :  { %902 = vmatpush.msra.mxu2 %v2143_v38  ;;  %922 = vmatpush.msra.mxu3 %v2141_v37  ;;  %v3121_v38 = vld [vmem:[#allocation46_spill] sm:$0xff] }
 0x133   :  { %863 = vmatpush.msra.mxu0 %v2149_v40  ;;  %883 = vmatpush.msra.mxu1 %v2151_v41 }
 0x134   :  { %903 = vmatpush.msra.mxu2 %v3093_v1  ;;  %923 = vmatpush.msra.mxu3 %v3094_v2 }
 0x135   :  { %864 = vmatpush.msra.mxu0 %v3095_v3  ;;  %884 = vmatpush.msra.mxu1 %v3096_v4 }
 0x136   :  { %904 = vmatpush.msra.mxu2 %v3097_v5  ;;  %924 = vmatpush.msra.mxu3 %v3098_v6 }
 0x137   :  { %865 = vmatpush.msra.mxu0 %v3099_v7  ;;  %885 = vmatpush.msra.mxu1 %v3100_v8 }
 0x138   :  { %905 = vmatpush.msra.mxu2 %v3101_v9  ;;  %925 = vmatpush.msra.mxu3 %v3102_v10 }
 0x139   :  { %866 = vmatpush.msra.mxu0 %v3103_v11  ;;  %886 = vmatpush.msra.mxu1 %v3104_v12 }
 0x13a   :  { %906 = vmatpush.msra.mxu2 %v3105_v14  ;;  %926 = vmatpush.msra.mxu3 %v3106_v15 }
 0x13b   :  { %867 = vmatpush.msra.mxu0 %v3107_v16  ;;  %887 = vmatpush.msra.mxu1 %v3108_v17 }
 0x13c   :  { %907 = vmatpush.msra.mxu2 %v3109_v18  ;;  %927 = vmatpush.msra.mxu3 %v3110_v19 }
 0x13d   :  { %868 = vmatpush.msra.mxu0 %v3111_v20  ;;  %888 = vmatpush.msra.mxu1 %v3112_v21 }
 0x13e   :  { %908 = vmatpush.msra.mxu2 %v3113_v22  ;;  %928 = vmatpush.msra.mxu3 %v3114_v23 }
 0x13f   :  { %869 = vmatpush.msra.mxu0 %v3115_v24  ;;  %889 = vmatpush.msra.mxu1 %v3116_v25 }
 0x140   :  { %909 = vmatpush.msra.mxu2 %v3117_v27  ;;  %929 = vmatpush.msra.mxu3 %v3118_v28 }
 0x19c   :  { %v565_v29 = vpop.f32.mrf.mxu0  ;;  %v585_v30 = vpop.f32.mrf.mxu1 }
 0x19d   :  { %v628_v32 = vadd.f32 %v565_v29, %v3119_v31  ;;  %v629_v34 = vadd.f32 %v585_v30, %v3120_v33  ;;  %v2513_v29 = vld [vmem:[#allocation9 + $0x1e8] sm:$0xff]  ;;  %v2516_v30 = vld [vmem:[#allocation9 + $0x1f0] sm:$0xff]  ;;  %v2519_v31 = vld [vmem:[#allocation9 + $0x1f8] sm:$0xff] }
 0x19e   :  { %v2525_v33 = vld [vmem:[#allocation9 + $0x1c8] sm:$0xff] }
 0x19f   :  { %v1642_v35 = vmul.f32 -1.442695, %v628_v32  ;;  %v1643_v36 = vmul.f32 -1.442695, %v629_v34  ;;  %v2522_v32 = vld [vmem:[#allocation9 + $0x1c0] sm:$0xff]  ;;  %v2528_v34 = vld [vmem:[#allocation9 + $0x1d0] sm:$0xff] }
 0x1a1   :  { %1689 = vpow2.f32 %v1642_v35  ;;  %v2531_v35 = vld [vmem:[#allocation9 + $0x1d8] sm:$0xff] }
 0x1a2   :  { %1691 = vpow2.f32 %v1643_v36  ;;  %v2534_v36 = vld [vmem:[#allocation9 + $0x1a0] sm:$0xff] }
 0x1a3   :  { %v625_v37 = vpop.f32.mrf.mxu3  ;;  %v605_v46 = vpop.f32.mrf.mxu2 }
 0x1a4   :  { %v631_v40 = vadd.f32 %v625_v37, %v3121_v38  ;;  %v630_v50 = vadd.f32 %v605_v46, %v3122_v39  ;;  %v2537_v37 = vld [vmem:[#allocation9 + $0x1a8] sm:$0xff]  ;;  %v2540_v38 = vld [vmem:[#allocation9 + $0x1b0] sm:$0xff] }
 0x1a5   :  { %v2561_v46 = vld [vmem:[#allocation9 + $0x168] sm:$0xff] }
 0x1a6   :  { %v1644_v41 = vmul.f32 -1.442695, %v631_v40  ;;  %v2543_v40 = vld [vmem:[#allocation9 + $0x1b8] sm:$0xff]  ;;  %v2573_v39 = vld [vmem:[#allocation9 + $0x148] sm:$0xff] }
 0x1a7   :  { %v1690_v42 = vpop.eup %1689 }
 0x1a8   :  { %v1692_v43 = vpop.eup %1691  ;;  %v635_v47 = vadd.f32 1.0, %v1690_v42  ;;  %1693 = vpow2.f32 %v1644_v41  ;;  %v2546_v41 = vld [vmem:[#allocation9 + $0x180] sm:$0xff]  ;;  %v2549_v42 = vld [vmem:[#allocation9 + $0x188] sm:$0xff] }
 0x1a9   :  { %v654_v0 = vadd.f32 1.0, %v1692_v43  ;;  %v2552_v43 = vld [vmem:[#allocation9 + $0x190] sm:$0xff] }
 0x1aa   :  { %1695 = vrcp.f32 %v635_v47  ;;  %v647_v51 = vand.u32 2147483648, %v635_v47  ;;  %v645_v48 = vand.u32 2147483647, %v635_v47  ;;  %vm641_vm14 = vweird.f32 %v635_v47 }
 0x1ab   :  { %1697 = vrcp.f32 %v654_v0  ;;  %v666_v56 = vand.u32 2147483648, %v654_v0  ;;  %v664_v57 = vand.u32 2147483647, %v654_v0  ;;  %vm660_vm15 = vweird.f32 %v654_v0 }
 0x1ac   :  { %v648_v59 = vor.u32 1.1754944e-38, %v647_v51  ;;  %vm646_vm2 = vcmp.eq.f32.partialorder %v645_v48, 8.507059e+37  ;;  %v2594_v51 = vld [vmem:[#allocation9 + $0x100] sm:$0xff]  ;;  %v2603_v48 = vld [vmem:[#allocation9 + $0x118] sm:$0xff] }
 0x1ad   :  { %v667_v2 = vor.u32 1.1754944e-38, %v666_v56  ;;  %vm665_vm3 = vcmp.eq.f32.partialorder %v664_v57, 8.507059e+37  ;;  %v2597_v56 = vld [vmem:[#allocation9 + $0x108] sm:$0xff] }
 0x1ae   :  { %v1694_v60 = vpop.eup %1693  ;;  %v2609_v57 = vld [vmem:[#allocation9 + $0xe8] sm:$0xff] }
 0x1af   :  { %v674_v13 = vadd.f32 1.0, %v1694_v60  ;;  %v2564_v60 = vld [vmem:[#allocation9 + $0x170] sm:$0xff] }
 0x1b0   :  { %v1696_v61 = vpop.eup %1695 }
 0x1b1   :  { %v1698_v63 = vpop.eup %1697  ;;  %v637_v49 = vmul.f32 %v1696_v61, %v635_v47  ;;  %1699 = vrcp.f32 %v674_v13  ;;  %vm642_vm12 = vweird.f32 %v1696_v61  ;;  %v686_v15 = vand.u32 2147483648, %v674_v13  ;;  %v2555_v47 = vld [vmem:[#allocation9 + $0x198] sm:$0xff] }
 0x1b2   :  { %v656_v44 = vmul.f32 %v1698_v63, %v654_v0  ;;  %1701 = vtanh.f32 %v630_v50  ;;  %vm661_vm13 = vweird.f32 %v1698_v63  ;;  %vm643_vm0 = vmor %vm641_vm14, %vm642_vm12  ;;  %vm680_vm5 = vweird.f32 %v674_v13  ;;  %v2558_v0 = vld [vmem:[#allocation9 + $0x160] sm:$0xff]  ;;  %v2576_v50 = vld [vmem:[#allocation9 + $0x150] sm:$0xff] }
 0x1b3   :  { %v638_v45 = vsub.f32 1.0, %v637_v49  ;;  %vm662_vm1 = vmor %vm660_vm15, %vm661_vm13  ;;  %v684_v16 = vand.u32 2147483647, %v674_v13  ;;  %v687_v18 = vor.u32 1.1754944e-38, %v686_v15  ;;  %v2582_v49 = vld [vmem:[#allocation9 + $0x120] sm:$0xff]  ;;  %v2660_v15 = vld [vmem:[#allocation9 + $0x70] sm:$0xff] }
 0x1b4   :  { %v657_v52 = vsub.f32 1.0, %v656_v44  ;;  %v2585_v44 = vld [vmem:[#allocation9 + $0x128] sm:$0xff]  ;;  %3135 = vst [vmem:[#allocation30_spill] sm:$0xff] %v2660_v15 }
 0x1b5   :  { %v639_v53 = vmul.f32 %v1696_v61, %v638_v45  ;;  %vm685_vm7 = vcmp.eq.f32.partialorder %v684_v16, 8.507059e+37  ;;  %v2588_v45 = vld [vmem:[#allocation9 + $0x130] sm:$0xff]  ;;  %v2663_v16 = vld [vmem:[#allocation9 + $0x78] sm:$0xff] }
 0x1b6   :  { %v658_v54 = vmul.f32 %v1698_v63, %v657_v52  ;;  %v2591_v52 = vld [vmem:[#allocation9 + $0x138] sm:$0xff]  ;;  %3136 = vst [vmem:[#allocation29_spill] sm:$0xff] %v2663_v16 }
 0x1b7   :  { %v1700_v58 = vpop.eup %1699  ;;  %v640_v62 = vadd.f32 %v1696_v61, %v639_v53  ;;  %v2600_v53 = vld [vmem:[#allocation9 + $0x110] sm:$0xff] }
 0x1b8   :  { %v659_v55 = vadd.f32 %v1698_v63, %v658_v54  ;;  %v676_v1 = vmul.f32 %v1700_v58, %v674_v13  ;;  %v1702_v4 = vpop.eup %1701  ;;  %vm681_vm4 = vweird.f32 %v1700_v58  ;;  %v2567_v13 = vld [vmem:[#allocation9 + $0x178] sm:$0xff]  ;;  %v2606_v54 = vld [vmem:[#allocation9 + $0xe0] sm:$0xff] }
 0x1b9   :  { %v644_v3 = vsel %vm643_vm0, %v1696_v61, %v640_v62  ;;  %vm682_vm6 = vmor %vm680_vm5, %vm681_vm4  ;;  %v2570_v61 = vld [vmem:[#allocation9 + $0x140] sm:$0xff]  ;;  %v2615_v62 = vld [vmem:[#allocation9 + $0xf8] sm:$0xff] }
 0x1ba   :  { %v649_v5 = vsel %vm646_vm2, %v648_v59, %v644_v3  ;;  %v663_v6 = vsel %vm662_vm1, %v1698_v63, %v659_v55  ;;  %v677_v7 = vsub.f32 1.0, %v676_v1  ;;  %v2579_v63 = vld [vmem:[#allocation9 + $0x158] sm:$0xff]  ;;  %v2618_v59 = vld [vmem:[#allocation9 + $0xc0] sm:$0xff]  ;;  %v2621_v55 = vld [vmem:[#allocation9 + $0xc8] sm:$0xff] }
 0x1bb   :  { %v668_v8 = vsel %vm665_vm3, %v667_v2, %v663_v6  ;;  %v690_v9 = vmul.f32 %v1702_v4, %v649_v5  ;;  %v2624_v1 = vld [vmem:[#allocation9 + $0xd0] sm:$0xff]  ;;  %v2627_v2 = vld [vmem:[#allocation9 + $0xd8] sm:$0xff]  ;;  %v2630_v3 = vld [vmem:[#allocation9 + $0xa0] sm:$0xff] }
 0x1bc   :  { %v692_v10 = vmul.f32 %v668_v8, %v2435_v26  ;;  %v678_v11 = vmul.f32 %v1700_v58, %v677_v7  ;;  %v2510_v26 = vld [vmem:[#allocation9 + $0x1e0] sm:$0xff]  ;;  %3123 = vst [vmem:[#allocation18_spill] sm:$0xff] %v2624_v1  ;;  %v2633_v4 = vld [vmem:[#allocation9 + $0xa8] sm:$0xff]  ;;  %v2636_v5 = vld [vmem:[#allocation9 + $0xb0] sm:$0xff] }
 0x1bd   :  { %3124 = vst [vmem:[#allocation17_spill] sm:$0xff] %v2627_v2  ;;  %v2639_v6 = vld [vmem:[#allocation9 + $0xb8] sm:$0xff]  ;;  %v2642_v7 = vld [vmem:[#allocation9 + $0x80] sm:$0xff]  ;;  %v2645_v8 = vld [vmem:[#allocation9 + $0x88] sm:$0xff] }
 0x1be   :  { %v2507_v12 = vadd.f32 %v692_v10, %v690_v9  ;;  %v679_v14 = vadd.f32 %v1700_v58, %v678_v11  ;;  %3125 = vst [vmem:[#allocation19_spill] sm:$0xff] %v2630_v3  ;;  %v2648_v9 = vld [vmem:[#allocation9 + $0x90] sm:$0xff]  ;;  %v2651_v10 = vld [vmem:[#allocation9 + $0x98] sm:$0xff]  ;;  %v2654_v11 = vld [vmem:[#allocation9 + $0x60] sm:$0xff] }
 0x1bf   :  { %3126 = vst [vmem:[#allocation20_spill] sm:$0xff] %v2633_v4 }
 0x1c0   :  { %1703 = vtanh.f32 %v2507_v12  ;;  %v683_v17 = vsel %vm682_vm6, %v1700_v58, %v679_v14  ;;  %v2612_v58 = vld [vmem:[#allocation9 + $0xf0] sm:$0xff]  ;;  %3127 = vst [vmem:[#allocation22_spill] sm:$0xff] %v2636_v5  ;;  %v2657_v14 = vld [vmem:[#allocation9 + $0x68] sm:$0xff] }
 0x1c1   :  { %v688_v20 = vsel %vm685_vm7, %v687_v18, %v683_v17  ;;  %3128 = vst [vmem:[#allocation21_spill] sm:$0xff] %v2639_v6  ;;  %v2666_v17 = vld [vmem:[#allocation9 + $0x40] sm:$0xff]  ;;  %v2669_v18 = vld [vmem:[#allocation9 + $0x48] sm:$0xff] }
 0x1c2   :  { %3129 = vst [vmem:[#allocation23_spill] sm:$0xff] %v2642_v7 }
 0x1c3   :  { %3130 = vst [vmem:[#allocation24_spill] sm:$0xff] %v2645_v8 }
 0x1c4   :  { %3131 = vst [vmem:[#allocation26_spill] sm:$0xff] %v2648_v9 }
 0x1c5   :  { %3132 = vst [vmem:[#allocation25_spill] sm:$0xff] %v2651_v10 }
 0x1c6   :  { %v1704_v19 = vpop.eup %1703  ;;  %3133 = vst [vmem:[#allocation27_spill] sm:$0xff] %v2654_v11 }
 0x1c7   :  { %v695_v21 = vmul.f32 %v1704_v19, %v688_v20  ;;  %3134 = vst [vmem:[#allocation28_spill] sm:$0xff] %v2657_v14  ;;  %v2672_v19 = vld [vmem:[#allocation9 + $0x50] sm:$0xff]  ;;  %v2675_v20 = vld [vmem:[#allocation9 + $0x58] sm:$0xff] }
 0x1c8   :  { %3137 = vst [vmem:[#allocation31_spill] sm:$0xff] %v2666_v17 }
 0x1c9   :  { %699 = vst [vmem:[#allocation12 + $0x8] sm:$0xff] %v695_v21  ;;  %717 = vmatmul.f32.vlgmr.msrb.gmra.mxu0 %v695_v21  ;;  %737 = vmatmul.f32.vlgmr.msrb.gmra.mxu1 %v695_v21 }
 0x1ca   :  { %757 = vmatmul.f32.vlgmr.msrb.gmra.mxu2 %v695_v21  ;;  %777 = vmatmul.f32.vlgmr.msrb.gmra.mxu3 %v695_v21  ;;  %3138 = vst [vmem:[#allocation32_spill] sm:$0xff] %v2669_v18  ;;  %v2678_v21 = vld [vmem:[#allocation9 + $0x20] sm:$0xff] }
 0x1cb   :  { %1007 = vmatpush.msrb.mxu0 %v2510_v26  ;;  %1027 = vmatpush.msrb.mxu1 %v2513_v29  ;;  %3139 = vst [vmem:[#allocation34_spill] sm:$0xff] %v2672_v19 }
 0x1cc   :  { %1047 = vmatpush.msrb.mxu2 %v2516_v30  ;;  %1067 = vmatpush.msrb.mxu3 %v2519_v31  ;;  %3140 = vst [vmem:[#allocation33_spill] sm:$0xff] %v2675_v20 }
 0x1cd   :  { %1008 = vmatpush.msrb.mxu0 %v2522_v32  ;;  %1028 = vmatpush.msrb.mxu1 %v2525_v33  ;;  %3141 = vst [vmem:[#allocation35_spill] sm:$0xff] %v2678_v21 }
 0x1ce   :  { %1048 = vmatpush.msrb.mxu2 %v2528_v34  ;;  %1068 = vmatpush.msrb.mxu3 %v2531_v35 }
 0x1cf   :  { %1009 = vmatpush.msrb.mxu0 %v2534_v36  ;;  %1029 = vmatpush.msrb.mxu1 %v2537_v37 }
 0x1d0   :  { %1049 = vmatpush.msrb.mxu2 %v2540_v38  ;;  %1069 = vmatpush.msrb.mxu3 %v2543_v40 }
 0x1d1   :  { %1010 = vmatpush.msrb.mxu0 %v2546_v41  ;;  %1030 = vmatpush.msrb.mxu1 %v2549_v42 }
 0x1d2   :  { %1050 = vmatpush.msrb.mxu2 %v2552_v43  ;;  %1070 = vmatpush.msrb.mxu3 %v2555_v47 }
 0x1d3   :  { %1011 = vmatpush.msrb.mxu0 %v2558_v0  ;;  %1031 = vmatpush.msrb.mxu1 %v2561_v46 }
 0x1d4   :  { %1051 = vmatpush.msrb.mxu2 %v2564_v60  ;;  %1071 = vmatpush.msrb.mxu3 %v2567_v13 }
 0x1d5   :  { %1012 = vmatpush.msrb.mxu0 %v2570_v61  ;;  %1032 = vmatpush.msrb.mxu1 %v2573_v39 }
 0x1d6   :  { %1052 = vmatpush.msrb.mxu2 %v2576_v50  ;;  %1072 = vmatpush.msrb.mxu3 %v2579_v63 }
 0x1d7   :  { %1013 = vmatpush.msrb.mxu0 %v2582_v49  ;;  %1033 = vmatpush.msrb.mxu1 %v2585_v44 }
 0x1d8   :  { %1053 = vmatpush.msrb.mxu2 %v2588_v45  ;;  %1073 = vmatpush.msrb.mxu3 %v2591_v52 }
 0x1d9   :  { %1014 = vmatpush.msrb.mxu0 %v2594_v51  ;;  %1034 = vmatpush.msrb.mxu1 %v2597_v56 }
 0x1da   :  { %1054 = vmatpush.msrb.mxu2 %v2600_v53  ;;  %1074 = vmatpush.msrb.mxu3 %v2603_v48 }
 0x1db   :  { %1015 = vmatpush.msrb.mxu0 %v2606_v54  ;;  %1035 = vmatpush.msrb.mxu1 %v2609_v57 }
 0x1dc   :  { %1055 = vmatpush.msrb.mxu2 %v2612_v58  ;;  %1075 = vmatpush.msrb.mxu3 %v2615_v62 }
 0x1dd   :  { %1016 = vmatpush.msrb.mxu0 %v2618_v59  ;;  %1036 = vmatpush.msrb.mxu1 %v2621_v55 }
 0x1de   :  { %1056 = vmatpush.msrb.mxu2 %v2624_v1  ;;  %1076 = vmatpush.msrb.mxu3 %v2627_v2 }
 0x1df   :  { %1017 = vmatpush.msrb.mxu0 %v2630_v3  ;;  %1037 = vmatpush.msrb.mxu1 %v2633_v4 }
 0x1e0   :  { %1057 = vmatpush.msrb.mxu2 %v2636_v5  ;;  %1077 = vmatpush.msrb.mxu3 %v2639_v6 }
 0x1e1   :  { %1018 = vmatpush.msrb.mxu0 %v2642_v7  ;;  %1038 = vmatpush.msrb.mxu1 %v2645_v8 }
 0x1e2   :  { %1058 = vmatpush.msrb.mxu2 %v2648_v9  ;;  %1078 = vmatpush.msrb.mxu3 %v2651_v10 }
 0x1e3   :  { %1019 = vmatpush.msrb.mxu0 %v2654_v11  ;;  %1039 = vmatpush.msrb.mxu1 %v2657_v14 }
 0x1e4   :  { %1059 = vmatpush.msrb.mxu2 %v2660_v15  ;;  %1079 = vmatpush.msrb.mxu3 %v2663_v16  ;;  %v2681_v16 = vld [vmem:[#allocation9 + $0x28] sm:$0xff] }
 0x1e5   :  { %1020 = vmatpush.msrb.mxu0 %v2666_v17  ;;  %1040 = vmatpush.msrb.mxu1 %v2669_v18  ;;  %3142 = vst [vmem:[#allocation36_spill] sm:$0xff] %v2681_v16  ;;  %v3143_v18 = vld [vmem:[#allocation47_spill] sm:$0xff]  ;;  %v3144_v17 = vld [vmem:[#allocation48_spill] sm:$0xff] }
 0x1e6   :  { %1060 = vmatpush.msrb.mxu2 %v2672_v19  ;;  %1080 = vmatpush.msrb.mxu3 %v2675_v20 }
 0x1e7   :  { %1021 = vmatpush.msrb.mxu0 %v2678_v21  ;;  %1041 = vmatpush.msrb.mxu1 %v2681_v16 }
 0x1e8   :  { %1061 = vmatpush.msrb.mxu2 %v3113_v22  ;;  %1081 = vmatpush.msrb.mxu3 %v3114_v23  ;;  %v3145_v23 = vld [vmem:[#allocation50_spill] sm:$0xff] }
 0x1e9   :  { %1022 = vmatpush.msrb.mxu0 %v3115_v24  ;;  %1042 = vmatpush.msrb.mxu1 %v3116_v25 }
 0x1ea   :  { %1062 = vmatpush.msrb.mxu2 %v3117_v27  ;;  %1082 = vmatpush.msrb.mxu3 %v3118_v28 }
 0x246   :  { %v718_v20 = vpop.f32.mrf.mxu0  ;;  %v738_v19 = vpop.f32.mrf.mxu1 }
 0x247   :  { %v781_v21 = vadd.f32 %v718_v20, %v3143_v18  ;;  %v782_v15 = vadd.f32 %v738_v19, %v3144_v17  ;;  %v3146_v17 = vld [vmem:[#allocation49_spill] sm:$0xff] }
 0x249   :  { %v1645_v14 = vmul.f32 -1.442695, %v781_v21  ;;  %v1646_v16 = vmul.f32 -1.442695, %v782_v15 }
 0x24b   :  { %1705 = vpow2.f32 %v1645_v14 }
 0x24c   :  { %1707 = vpow2.f32 %v1646_v16 }
 0x24d   :  { %v778_v22 = vpop.f32.mrf.mxu3  ;;  %v758_v28 = vpop.f32.mrf.mxu2 }
 0x24e   :  { %v784_v11 = vadd.f32 %v778_v22, %v3145_v23  ;;  %v783_v19 = vadd.f32 %v758_v28, %v3146_v17 }
 0x250   :  { %v1647_v24 = vmul.f32 -1.442695, %v784_v11 }
 0x251   :  { %v1706_v10 = vpop.eup %1705 }
 0x252   :  { %v1708_v25 = vpop.eup %1707  ;;  %v788_v9 = vadd.f32 1.0, %v1706_v10  ;;  %1709 = vpow2.f32 %v1647_v24 }
 0x253   :  { %v807_v27 = vadd.f32 1.0, %v1708_v25 }
 0x254   :  { %1711 = vrcp.f32 %v788_v9  ;;  %v800_v11 = vand.u32 2147483648, %v788_v9  ;;  %v798_v24 = vand.u32 2147483647, %v788_v9  ;;  %vm794_vm10 = vweird.f32 %v788_v9 }
 0x255   :  { %1713 = vrcp.f32 %v807_v27  ;;  %v819_v23 = vand.u32 2147483648, %v807_v27  ;;  %v817_v7 = vand.u32 2147483647, %v807_v27  ;;  %vm813_vm11 = vweird.f32 %v807_v27 }
 0x256   :  { %v801_v28 = vor.u32 1.1754944e-38, %v800_v11  ;;  %vm799_vm14 = vcmp.eq.f32.partialorder %v798_v24, 8.507059e+37 }
 0x257   :  { %vm818_vm15 = vcmp.eq.f32.partialorder %v817_v7, 8.507059e+37 }
 0x258   :  { %v1710_v8 = vpop.eup %1709 }
 0x259   :  { %v827_v18 = vadd.f32 1.0, %v1710_v8 }
 0x25a   :  { %v1712_v20 = vpop.eup %1711 }
 0x25b   :  { %v1714_v15 = vpop.eup %1713  ;;  %v790_v14 = vmul.f32 %v1712_v20, %v788_v9  ;;  %1715 = vrcp.f32 %v827_v18  ;;  %vm795_vm8 = vweird.f32 %v1712_v20  ;;  %v839_v11 = vand.u32 2147483648, %v827_v18 }
 0x25c   :  { %v809_v16 = vmul.f32 %v1714_v15, %v807_v27  ;;  %1717 = vtanh.f32 %v783_v19  ;;  %vm814_vm9 = vweird.f32 %v1714_v15  ;;  %vm796_vm12 = vmor %vm794_vm10, %vm795_vm8  ;;  %vm833_vm1 = vweird.f32 %v827_v18 }
 0x25d   :  { %v791_v21 = vsub.f32 1.0, %v790_v14  ;;  %vm815_vm13 = vmor %vm813_vm11, %vm814_vm9  ;;  %v820_v14 = vor.u32 1.1754944e-38, %v819_v23  ;;  %v840_v24 = vor.u32 1.1754944e-38, %v839_v11  ;;  %v3165_v11 = vld [vmem:[#allocation35_spill] sm:$0xff] }
 0x25e   :  { %v810_v22 = vsub.f32 1.0, %v809_v16 }
 0x25f   :  { %v792_v10 = vmul.f32 %v1712_v20, %v791_v21 }
 0x260   :  { %v811_v25 = vmul.f32 %v1714_v15, %v810_v22 }
 0x261   :  { %v1716_v6 = vpop.eup %1715  ;;  %v793_v8 = vadd.f32 %v1712_v20, %v792_v10 }
 0x262   :  { %v812_v17 = vadd.f32 %v1714_v15, %v811_v25  ;;  %v829_v5 = vmul.f32 %v1716_v6, %v827_v18  ;;  %v1718_v19 = vpop.eup %1717  ;;  %vm834_vm0 = vweird.f32 %v1716_v6  ;;  %v3154_v25 = vld [vmem:[#allocation24_spill] sm:$0xff] }
 0x263   :  { %v797_v16 = vsel %vm796_vm12, %v1712_v20, %v793_v8  ;;  %v837_v20 = vand.u32 2147483647, %v827_v18  ;;  %vm835_vm2 = vmor %vm833_vm1, %vm834_vm0  ;;  %v3153_v18 = vld [vmem:[#allocation23_spill] sm:$0xff]  ;;  %v3155_v8 = vld [vmem:[#allocation26_spill] sm:$0xff] }
 0x264   :  { %v802_v4 = vsel %vm799_vm14, %v801_v28, %v797_v16  ;;  %v816_v21 = vsel %vm815_vm13, %v1714_v15, %v812_v17  ;;  %v830_v3 = vsub.f32 1.0, %v829_v5  ;;  %v3156_v28 = vld [vmem:[#allocation25_spill] sm:$0xff]  ;;  %v3157_v17 = vld [vmem:[#allocation27_spill] sm:$0xff]  ;;  %v3159_v16 = vld [vmem:[#allocation30_spill] sm:$0xff] }
 0x265   :  { %v821_v22 = vsel %vm818_vm15, %v820_v14, %v816_v21  ;;  %v843_v2 = vmul.f32 %v1718_v19, %v802_v4  ;;  %vm838_vm3 = vcmp.eq.f32.partialorder %v837_v20, 8.507059e+37  ;;  %v3151_v4 = vld [vmem:[#allocation22_spill] sm:$0xff]  ;;  %v3158_v14 = vld [vmem:[#allocation28_spill] sm:$0xff]  ;;  %v3160_v19 = vld [vmem:[#allocation29_spill] sm:$0xff] }
 0x266   :  { %v845_v1 = vmul.f32 %v821_v22, %v2507_v12  ;;  %v831_v10 = vmul.f32 %v1716_v6, %v830_v3  ;;  %v3147_v12 = vld [vmem:[#allocation18_spill] sm:$0xff]  ;;  %v3150_v3 = vld [vmem:[#allocation20_spill] sm:$0xff]  ;;  %v3161_v21 = vld [vmem:[#allocation31_spill] sm:$0xff] }
 0x267   :  { %v3162_v22 = vld [vmem:[#allocation32_spill] sm:$0xff] }
 0x268   :  { %v2695_v9 = vadd.f32 %v845_v1, %v843_v2  ;;  %v832_v27 = vadd.f32 %v1716_v6, %v831_v10  ;;  %v3148_v1 = vld [vmem:[#allocation17_spill] sm:$0xff]  ;;  %v3149_v2 = vld [vmem:[#allocation19_spill] sm:$0xff]  ;;  %v3163_v10 = vld [vmem:[#allocation34_spill] sm:$0xff] }
 0x269   :  { %v3166_v20 = vld [vmem:[#allocation36_spill] sm:$0xff] }
 0x26a   :  { %1719 = vtanh.f32 %v2695_v9  ;;  %v836_v23 = vsel %vm835_vm2, %v1716_v6, %v832_v27  ;;  %v3152_v6 = vld [vmem:[#allocation21_spill] sm:$0xff] }
 0x26b   :  { %v841_v5 = vsel %vm838_vm3, %v840_v24, %v836_v23  ;;  %v3164_v27 = vld [vmem:[#allocation33_spill] sm:$0xff]  ;;  %v2756_v23 = vld [vmem:[#allocation9 + $0x30] sm:$0xff]  ;;  %v2759_v24 = vld [vmem:[#allocation9 + $0x38] sm:$0xff] }
 0x26c   :  { %3167 = vst [vmem:[#allocation37_spill] sm:$0xff] %v2756_v23 }
 0x26d   :  { %3168 = vst [vmem:[#allocation38_spill] sm:$0xff] %v2759_v24 }
 0x270   :  { %v1720_v7 = vpop.eup %1719 }
 0x271   :  { %v848_v15 = vmul.f32 %v1720_v7, %v841_v5  ;;  %v2762_v7 = vld [vmem:[#allocation9] sm:$0xff]  ;;  %v2765_v5 = vld [vmem:[#allocation9 + $0x8] sm:$0xff] }
 0x272   :  { %3169 = vst [vmem:[#allocation39_spill] sm:$0xff] %v2762_v7 }
 0x273   :  { %852 = vst [vmem:[#allocation12 + $0x10] sm:$0xff] %v848_v15  ;;  %870 = vmatmul.f32.vlgmr.msra.gmra.mxu0 %v848_v15  ;;  %890 = vmatmul.f32.vlgmr.msra.gmra.mxu1 %v848_v15 }
 0x274   :  { %910 = vmatmul.f32.vlgmr.msra.gmra.mxu2 %v848_v15  ;;  %930 = vmatmul.f32.vlgmr.msra.gmra.mxu3 %v848_v15  ;;  %3170 = vst [vmem:[#allocation40_spill] sm:$0xff] %v2765_v5  ;;  %v2768_v15 = vld [vmem:[#allocation9 + $0x10] sm:$0xff] }
 0x275   :  { %1160 = vmatpush.msra.mxu0 %v2510_v26  ;;  %1180 = vmatpush.msra.mxu1 %v2513_v29  ;;  %3171 = vst [vmem:[#allocation41_spill] sm:$0xff] %v2768_v15 }
 0x276   :  { %1200 = vmatpush.msra.mxu2 %v2516_v30  ;;  %1220 = vmatpush.msra.mxu3 %v2519_v31 }
 0x277   :  { %1161 = vmatpush.msra.mxu0 %v2522_v32  ;;  %1181 = vmatpush.msra.mxu1 %v2525_v33 }
 0x278   :  { %1201 = vmatpush.msra.mxu2 %v2528_v34  ;;  %1221 = vmatpush.msra.mxu3 %v2531_v35 }
 0x279   :  { %1162 = vmatpush.msra.mxu0 %v2534_v36  ;;  %1182 = vmatpush.msra.mxu1 %v2537_v37 }
 0x27a   :  { %1202 = vmatpush.msra.mxu2 %v2540_v38  ;;  %1222 = vmatpush.msra.mxu3 %v2543_v40 }
 0x27b   :  { %1163 = vmatpush.msra.mxu0 %v2546_v41  ;;  %1183 = vmatpush.msra.mxu1 %v2549_v42 }
 0x27c   :  { %1203 = vmatpush.msra.mxu2 %v2552_v43  ;;  %1223 = vmatpush.msra.mxu3 %v2555_v47 }
 0x27d   :  { %1164 = vmatpush.msra.mxu0 %v2558_v0  ;;  %1184 = vmatpush.msra.mxu1 %v2561_v46 }
 0x27e   :  { %1204 = vmatpush.msra.mxu2 %v2564_v60  ;;  %1224 = vmatpush.msra.mxu3 %v2567_v13 }
 0x27f   :  { %1165 = vmatpush.msra.mxu0 %v2570_v61  ;;  %1185 = vmatpush.msra.mxu1 %v2573_v39 }
 0x280   :  { %1205 = vmatpush.msra.mxu2 %v2576_v50  ;;  %1225 = vmatpush.msra.mxu3 %v2579_v63 }
 0x281   :  { %1166 = vmatpush.msra.mxu0 %v2582_v49  ;;  %1186 = vmatpush.msra.mxu1 %v2585_v44 }
 0x282   :  { %1206 = vmatpush.msra.mxu2 %v2588_v45  ;;  %1226 = vmatpush.msra.mxu3 %v2591_v52 }
 0x283   :  { %1167 = vmatpush.msra.mxu0 %v2594_v51  ;;  %1187 = vmatpush.msra.mxu1 %v2597_v56 }
 0x284   :  { %1207 = vmatpush.msra.mxu2 %v2600_v53  ;;  %1227 = vmatpush.msra.mxu3 %v2603_v48 }
 0x285   :  { %1168 = vmatpush.msra.mxu0 %v2606_v54  ;;  %1188 = vmatpush.msra.mxu1 %v2609_v57 }
 0x286   :  { %1208 = vmatpush.msra.mxu2 %v2612_v58  ;;  %1228 = vmatpush.msra.mxu3 %v2615_v62 }
 0x287   :  { %1169 = vmatpush.msra.mxu0 %v2618_v59  ;;  %1189 = vmatpush.msra.mxu1 %v2621_v55 }
 0x288   :  { %1209 = vmatpush.msra.mxu2 %v3147_v12  ;;  %1229 = vmatpush.msra.mxu3 %v3148_v1 }
 0x289   :  { %1170 = vmatpush.msra.mxu0 %v3149_v2  ;;  %1190 = vmatpush.msra.mxu1 %v3150_v3 }
 0x28a   :  { %1210 = vmatpush.msra.mxu2 %v3151_v4  ;;  %1230 = vmatpush.msra.mxu3 %v3152_v6 }
 0x28b   :  { %1171 = vmatpush.msra.mxu0 %v3153_v18  ;;  %1191 = vmatpush.msra.mxu1 %v3154_v25 }
 0x28c   :  { %1211 = vmatpush.msra.mxu2 %v3155_v8  ;;  %1231 = vmatpush.msra.mxu3 %v3156_v28 }
 0x28d   :  { %1172 = vmatpush.msra.mxu0 %v3157_v17  ;;  %1192 = vmatpush.msra.mxu1 %v3158_v14 }
 0x28e   :  { %1212 = vmatpush.msra.mxu2 %v3159_v16  ;;  %1232 = vmatpush.msra.mxu3 %v3160_v19 }
 0x28f   :  { %1173 = vmatpush.msra.mxu0 %v3161_v21  ;;  %1193 = vmatpush.msra.mxu1 %v3162_v22 }
 0x290   :  { %1213 = vmatpush.msra.mxu2 %v3163_v10  ;;  %1233 = vmatpush.msra.mxu3 %v3164_v27  ;;  %v3173_v27 = vld [vmem:[#allocation51_spill] sm:$0xff]  ;;  %v3174_v10 = vld [vmem:[#allocation52_spill] sm:$0xff] }
 0x291   :  { %1174 = vmatpush.msra.mxu0 %v3165_v11  ;;  %1194 = vmatpush.msra.mxu1 %v3166_v20  ;;  %v2771_v20 = vld [vmem:[#allocation9 + $0x18] sm:$0xff] }
 0x292   :  { %1214 = vmatpush.msra.mxu2 %v2756_v23  ;;  %1234 = vmatpush.msra.mxu3 %v2759_v24  ;;  %3172 = vst [vmem:[#allocation42_spill] sm:$0xff] %v2771_v20 }
 0x293   :  { %1175 = vmatpush.msra.mxu0 %v2762_v7  ;;  %1195 = vmatpush.msra.mxu1 %v2765_v5  ;;  %v3175_v5 = vld [vmem:[#allocation54_spill] sm:$0xff] }
 0x294   :  { %1215 = vmatpush.msra.mxu2 %v2768_v15  ;;  %1235 = vmatpush.msra.mxu3 %v2771_v20 }
 0x2f0   :  { %v871_v23 = vpop.f32.mrf.mxu0  ;;  %v891_v11 = vpop.f32.mrf.mxu1 }
 0x2f1   :  { %v934_v24 = vadd.f32 %v871_v23, %v3173_v27  ;;  %v935_v22 = vadd.f32 %v891_v11, %v3174_v10  ;;  %v3176_v10 = vld [vmem:[#allocation53_spill] sm:$0xff] }
 0x2f3   :  { %v1648_v21 = vmul.f32 -1.442695, %v934_v24  ;;  %v1649_v7 = vmul.f32 -1.442695, %v935_v22 }
 0x2f5   :  { %1721 = vpow2.f32 %v1648_v21 }
 0x2f6   :  { %1723 = vpow2.f32 %v1649_v7 }
 0x2f7   :  { %v931_v19 = vpop.f32.mrf.mxu3  ;;  %v911_v20 = vpop.f32.mrf.mxu2 }
 0x2f8   :  { %v937_v16 = vadd.f32 %v931_v19, %v3175_v5  ;;  %v936_v11 = vadd.f32 %v911_v20, %v3176_v10 }
 0x2fa   :  { %v1650_v14 = vmul.f32 -1.442695, %v937_v16 }
 0x2fb   :  { %v1722_v17 = vpop.eup %1721 }
 0x2fc   :  { %v1724_v15 = vpop.eup %1723  ;;  %v941_v28 = vadd.f32 1.0, %v1722_v17  ;;  %1725 = vpow2.f32 %v1650_v14 }
 0x2fd   :  { %v960_v8 = vadd.f32 1.0, %v1724_v15 }
 0x2fe   :  { %1727 = vrcp.f32 %v941_v28  ;;  %v953_v16 = vand.u32 2147483648, %v941_v28  ;;  %v951_v14 = vand.u32 2147483647, %v941_v28  ;;  %vm947_vm6 = vweird.f32 %v941_v28 }
 0x2ff   :  { %1729 = vrcp.f32 %v960_v8  ;;  %v972_v5 = vand.u32 2147483648, %v960_v8  ;;  %v970_v18 = vand.u32 2147483647, %v960_v8  ;;  %vm966_vm7 = vweird.f32 %v960_v8 }
 0x300   :  { %v954_v20 = vor.u32 1.1754944e-38, %v953_v16  ;;  %vm952_vm10 = vcmp.eq.f32.partialorder %v951_v14, 8.507059e+37 }
 0x301   :  { %vm971_vm11 = vcmp.eq.f32.partialorder %v970_v18, 8.507059e+37 }
 0x302   :  { %v1726_v25 = vpop.eup %1725 }
 0x303   :  { %v980_v27 = vadd.f32 1.0, %v1726_v25 }
 0x304   :  { %v1728_v23 = vpop.eup %1727 }
 0x305   :  { %v1730_v22 = vpop.eup %1729  ;;  %v943_v21 = vmul.f32 %v1728_v23, %v941_v28  ;;  %1731 = vrcp.f32 %v980_v27  ;;  %vm948_vm4 = vweird.f32 %v1728_v23  ;;  %v992_v16 = vand.u32 2147483648, %v980_v27 }
 0x306   :  { %v962_v24 = vmul.f32 %v1730_v22, %v960_v8  ;;  %1733 = vtanh.f32 %v936_v11  ;;  %vm967_vm5 = vweird.f32 %v1730_v22  ;;  %vm949_vm8 = vmor %vm947_vm6, %vm948_vm4  ;;  %vm986_vm13 = vweird.f32 %v980_v27 }
 0x307   :  { %v944_v7 = vsub.f32 1.0, %v943_v21  ;;  %vm968_vm9 = vmor %vm966_vm7, %vm967_vm5  ;;  %v973_v21 = vor.u32 1.1754944e-38, %v972_v5  ;;  %v993_v14 = vor.u32 1.1754944e-38, %v992_v16  ;;  %v3195_v16 = vld [vmem:[#allocation35_spill] sm:$0xff] }
 0x308   :  { %v963_v19 = vsub.f32 1.0, %v962_v24 }
 0x309   :  { %v945_v17 = vmul.f32 %v1728_v23, %v944_v7 }
 0x30a   :  { %v964_v15 = vmul.f32 %v1730_v22, %v963_v19 }
 0x30b   :  { %v1732_v6 = vpop.eup %1731  ;;  %v946_v25 = vadd.f32 %v1728_v23, %v945_v17 }
 0x30c   :  { %v965_v10 = vadd.f32 %v1730_v22, %v964_v15  ;;  %v982_v4 = vmul.f32 %v1732_v6, %v980_v27  ;;  %v1734_v11 = vpop.eup %1733  ;;  %vm987_vm12 = vweird.f32 %v1732_v6  ;;  %v3184_v15 = vld [vmem:[#allocation24_spill] sm:$0xff] }
 0x30d   :  { %v950_v24 = vsel %vm949_vm8, %v1728_v23, %v946_v25  ;;  %v990_v23 = vand.u32 2147483647, %v980_v27  ;;  %vm988_vm14 = vmor %vm986_vm13, %vm987_vm12  ;;  %v3183_v27 = vld [vmem:[#allocation23_spill] sm:$0xff]  ;;  %v3185_v25 = vld [vmem:[#allocation26_spill] sm:$0xff] }
 0x30e   :  { %v955_v3 = vsel %vm952_vm10, %v954_v20, %v950_v24  ;;  %v969_v7 = vsel %vm968_vm9, %v1730_v22, %v965_v10  ;;  %v983_v2 = vsub.f32 1.0, %v982_v4  ;;  %v3186_v20 = vld [vmem:[#allocation25_spill] sm:$0xff]  ;;  %v3187_v10 = vld [vmem:[#allocation27_spill] sm:$0xff]  ;;  %v3189_v24 = vld [vmem:[#allocation30_spill] sm:$0xff] }
 0x30f   :  { %v974_v19 = vsel %vm971_vm11, %v973_v21, %v969_v7  ;;  %v996_v1 = vmul.f32 %v1734_v11, %v955_v3  ;;  %vm991_vm15 = vcmp.eq.f32.partialorder %v990_v23, 8.507059e+37  ;;  %v3181_v3 = vld [vmem:[#allocation22_spill] sm:$0xff]  ;;  %v3188_v21 = vld [vmem:[#allocation28_spill] sm:$0xff]  ;;  %v3190_v11 = vld [vmem:[#allocation29_spill] sm:$0xff] }
 0x310   :  { %v998_v12 = vmul.f32 %v974_v19, %v2695_v9  ;;  %v984_v17 = vmul.f32 %v1732_v6, %v983_v2  ;;  %v3177_v9 = vld [vmem:[#allocation18_spill] sm:$0xff]  ;;  %v3180_v2 = vld [vmem:[#allocation20_spill] sm:$0xff]  ;;  %v3191_v7 = vld [vmem:[#allocation31_spill] sm:$0xff] }
 0x311   :  { %v3192_v19 = vld [vmem:[#allocation32_spill] sm:$0xff] }
 0x312   :  { %v2779_v28 = vadd.f32 %v998_v12, %v996_v1  ;;  %v985_v8 = vadd.f32 %v1732_v6, %v984_v17  ;;  %v3178_v12 = vld [vmem:[#allocation17_spill] sm:$0xff]  ;;  %v3179_v1 = vld [vmem:[#allocation19_spill] sm:$0xff]  ;;  %v3193_v17 = vld [vmem:[#allocation34_spill] sm:$0xff] }
 0x313   :  { %v3196_v23 = vld [vmem:[#allocation36_spill] sm:$0xff] }
 0x314   :  { %1735 = vtanh.f32 %v2779_v28  ;;  %v989_v5 = vsel %vm988_vm14, %v1732_v6, %v985_v8  ;;  %v3182_v6 = vld [vmem:[#allocation21_spill] sm:$0xff] }
 0x315   :  { %v994_v4 = vsel %vm991_vm15, %v993_v14, %v989_v5  ;;  %v3194_v8 = vld [vmem:[#allocation33_spill] sm:$0xff]  ;;  %v3198_v14 = vld [vmem:[#allocation38_spill] sm:$0xff] }
 0x316   :  { %v3197_v5 = vld [vmem:[#allocation37_spill] sm:$0xff] }
 0x31a   :  { %v1736_v18 = vpop.eup %1735 }
 0x31b   :  { %v1001_v22 = vmul.f32 %v1736_v18, %v994_v4  ;;  %v3199_v18 = vld [vmem:[#allocation39_spill] sm:$0xff]  ;;  %v3200_v4 = vld [vmem:[#allocation40_spill] sm:$0xff] }
 0x31d   :  { %1005 = vst [vmem:[#allocation12 + $0x18] sm:$0xff] %v1001_v22  ;;  %1023 = vmatmul.f32.vlgmr.msrb.gmra.mxu0 %v1001_v22  ;;  %1043 = vmatmul.f32.vlgmr.msrb.gmra.mxu1 %v1001_v22 }
 0x31e   :  { %1063 = vmatmul.f32.vlgmr.msrb.gmra.mxu2 %v1001_v22  ;;  %1083 = vmatmul.f32.vlgmr.msrb.gmra.mxu3 %v1001_v22  ;;  %v3201_v22 = vld [vmem:[#allocation41_spill] sm:$0xff] }
 0x31f   :  { %1313 = vmatpush.msrb.mxu0 %v2510_v26  ;;  %1333 = vmatpush.msrb.mxu1 %v2513_v29 }
 0x320   :  { %1353 = vmatpush.msrb.mxu2 %v2516_v30  ;;  %1373 = vmatpush.msrb.mxu3 %v2519_v31 }
 0x321   :  { %1314 = vmatpush.msrb.mxu0 %v2522_v32  ;;  %1334 = vmatpush.msrb.mxu1 %v2525_v33 }
 0x322   :  { %1354 = vmatpush.msrb.mxu2 %v2528_v34  ;;  %1374 = vmatpush.msrb.mxu3 %v2531_v35 }
 0x323   :  { %1315 = vmatpush.msrb.mxu0 %v2534_v36  ;;  %1335 = vmatpush.msrb.mxu1 %v2537_v37 }
 0x324   :  { %1355 = vmatpush.msrb.mxu2 %v2540_v38  ;;  %1375 = vmatpush.msrb.mxu3 %v2543_v40 }
 0x325   :  { %1316 = vmatpush.msrb.mxu0 %v2546_v41  ;;  %1336 = vmatpush.msrb.mxu1 %v2549_v42 }
 0x326   :  { %1356 = vmatpush.msrb.mxu2 %v2552_v43  ;;  %1376 = vmatpush.msrb.mxu3 %v2555_v47 }
 0x327   :  { %1317 = vmatpush.msrb.mxu0 %v2558_v0  ;;  %1337 = vmatpush.msrb.mxu1 %v2561_v46 }
 0x328   :  { %1357 = vmatpush.msrb.mxu2 %v2564_v60  ;;  %1377 = vmatpush.msrb.mxu3 %v2567_v13 }
 0x329   :  { %1318 = vmatpush.msrb.mxu0 %v2570_v61  ;;  %1338 = vmatpush.msrb.mxu1 %v2573_v39 }
 0x32a   :  { %1358 = vmatpush.msrb.mxu2 %v2576_v50  ;;  %1378 = vmatpush.msrb.mxu3 %v2579_v63 }
 0x32b   :  { %1319 = vmatpush.msrb.mxu0 %v2582_v49  ;;  %1339 = vmatpush.msrb.mxu1 %v2585_v44 }
 0x32c   :  { %1359 = vmatpush.msrb.mxu2 %v2588_v45  ;;  %1379 = vmatpush.msrb.mxu3 %v2591_v52 }
 0x32d   :  { %1320 = vmatpush.msrb.mxu0 %v2594_v51  ;;  %1340 = vmatpush.msrb.mxu1 %v2597_v56 }
 0x32e   :  { %1360 = vmatpush.msrb.mxu2 %v2600_v53  ;;  %1380 = vmatpush.msrb.mxu3 %v2603_v48 }
 0x32f   :  { %1321 = vmatpush.msrb.mxu0 %v2606_v54  ;;  %1341 = vmatpush.msrb.mxu1 %v2609_v57 }
 0x330   :  { %1361 = vmatpush.msrb.mxu2 %v2612_v58  ;;  %1381 = vmatpush.msrb.mxu3 %v2615_v62 }
 0x331   :  { %1322 = vmatpush.msrb.mxu0 %v2618_v59  ;;  %1342 = vmatpush.msrb.mxu1 %v2621_v55 }
 0x332   :  { %1362 = vmatpush.msrb.mxu2 %v3177_v9  ;;  %1382 = vmatpush.msrb.mxu3 %v3178_v12 }
 0x333   :  { %1323 = vmatpush.msrb.mxu0 %v3179_v1  ;;  %1343 = vmatpush.msrb.mxu1 %v3180_v2 }
 0x334   :  { %1363 = vmatpush.msrb.mxu2 %v3181_v3  ;;  %1383 = vmatpush.msrb.mxu3 %v3182_v6 }
 0x335   :  { %1324 = vmatpush.msrb.mxu0 %v3183_v27  ;;  %1344 = vmatpush.msrb.mxu1 %v3184_v15 }
 0x336   :  { %1364 = vmatpush.msrb.mxu2 %v3185_v25  ;;  %1384 = vmatpush.msrb.mxu3 %v3186_v20 }
 0x337   :  { %1325 = vmatpush.msrb.mxu0 %v3187_v10  ;;  %1345 = vmatpush.msrb.mxu1 %v3188_v21 }
 0x338   :  { %1365 = vmatpush.msrb.mxu2 %v3189_v24  ;;  %1385 = vmatpush.msrb.mxu3 %v3190_v11  ;;  %v3203_v11 = vld [vmem:[#allocation55_spill] sm:$0xff]  ;;  %v3204_v24 = vld [vmem:[#allocation56_spill] sm:$0xff] }
 0x339   :  { %1326 = vmatpush.msrb.mxu0 %v3191_v7  ;;  %1346 = vmatpush.msrb.mxu1 %v3192_v19  ;;  %v3202_v7 = vld [vmem:[#allocation42_spill] sm:$0xff] }
 0x33a   :  { %1366 = vmatpush.msrb.mxu2 %v3193_v17  ;;  %1386 = vmatpush.msrb.mxu3 %v3194_v8 }
 0x33b   :  { %1327 = vmatpush.msrb.mxu0 %v3195_v16  ;;  %1347 = vmatpush.msrb.mxu1 %v3196_v23 }
 0x33c   :  { %1367 = vmatpush.msrb.mxu2 %v3197_v5  ;;  %1387 = vmatpush.msrb.mxu3 %v3198_v14  ;;  %v3205_v14 = vld [vmem:[#allocation58_spill] sm:$0xff] }
 0x33d   :  { %1328 = vmatpush.msrb.mxu0 %v3199_v18  ;;  %1348 = vmatpush.msrb.mxu1 %v3200_v4 }
 0x33e   :  { %1368 = vmatpush.msrb.mxu2 %v3201_v22  ;;  %1388 = vmatpush.msrb.mxu3 %v3202_v7 }
 0x39a   :  { %v1024_v19 = vpop.f32.mrf.mxu0  ;;  %v1044_v17 = vpop.f32.mrf.mxu1 }
 0x39b   :  { %v1087_v8 = vadd.f32 %v1024_v19, %v3203_v11  ;;  %v1088_v16 = vadd.f32 %v1044_v17, %v3204_v24  ;;  %v3206_v24 = vld [vmem:[#allocation57_spill] sm:$0xff] }
 0x39d   :  { %v1651_v21 = vmul.f32 -1.442695, %v1087_v8  ;;  %v1652_v23 = vmul.f32 -1.442695, %v1088_v16 }
 0x39f   :  { %1737 = vpow2.f32 %v1651_v21 }
 0x3a0   :  { %1739 = vpow2.f32 %v1652_v23 }
 0x3a1   :  { %v1084_v5 = vpop.f32.mrf.mxu3  ;;  %v1064_v7 = vpop.f32.mrf.mxu2 }
 0x3a2   :  { %v1090_v10 = vadd.f32 %v1084_v5, %v3205_v14  ;;  %v1089_v17 = vadd.f32 %v1064_v7, %v3206_v24 }
 0x3a4   :  { %v1653_v18 = vmul.f32 -1.442695, %v1090_v10 }
 0x3a5   :  { %v1738_v20 = vpop.eup %1737 }
 0x3a6   :  { %v1740_v4 = vpop.eup %1739  ;;  %v1094_v25 = vadd.f32 1.0, %v1738_v20  ;;  %1741 = vpow2.f32 %v1653_v18 }
 0x3a7   :  { %v1113_v22 = vadd.f32 1.0, %v1740_v4 }
 0x3a8   :  { %1743 = vrcp.f32 %v1094_v25  ;;  %v1106_v10 = vand.u32 2147483648, %v1094_v25  ;;  %v1104_v18 = vand.u32 2147483647, %v1094_v25  ;;  %vm1100_vm2 = vweird.f32 %v1094_v25 }
 0x3a9   :  { %1745 = vrcp.f32 %v1113_v22  ;;  %v1125_v14 = vand.u32 2147483648, %v1113_v22  ;;  %v1123_v27 = vand.u32 2147483647, %v1113_v22  ;;  %vm1119_vm3 = vweird.f32 %v1113_v22 }
 0x3aa   :  { %v1107_v7 = vor.u32 1.1754944e-38, %v1106_v10  ;;  %vm1105_vm6 = vcmp.eq.f32.partialorder %v1104_v18, 8.507059e+37 }
 0x3ab   :  { %vm1124_vm7 = vcmp.eq.f32.partialorder %v1123_v27, 8.507059e+37 }
 0x3ac   :  { %v1742_v15 = vpop.eup %1741 }
 0x3ad   :  { %v1133_v11 = vadd.f32 1.0, %v1742_v15 }
 0x3ae   :  { %v1744_v19 = vpop.eup %1743 }
 0x3af   :  { %v1746_v8 = vpop.eup %1745  ;;  %v1096_v21 = vmul.f32 %v1744_v19, %v1094_v25  ;;  %1747 = vrcp.f32 %v1133_v11  ;;  %vm1101_vm0 = vweird.f32 %v1744_v19  ;;  %v1145_v10 = vand.u32 2147483648, %v1133_v11 }
 0x3b0   :  { %v1115_v16 = vmul.f32 %v1746_v8, %v1113_v22  ;;  %1749 = vtanh.f32 %v1089_v17  ;;  %vm1120_vm1 = vweird.f32 %v1746_v8  ;;  %vm1102_vm4 = vmor %vm1100_vm2, %vm1101_vm0  ;;  %vm1139_vm9 = vweird.f32 %v1133_v11 }
 0x3b1   :  { %v1097_v23 = vsub.f32 1.0, %v1096_v21  ;;  %vm1121_vm5 = vmor %vm1119_vm3, %vm1120_vm1  ;;  %v1126_v21 = vor.u32 1.1754944e-38, %v1125_v14  ;;  %v1146_v18 = vor.u32 1.1754944e-38, %v1145_v10 }
 0x3b2   :  { %v1116_v5 = vsub.f32 1.0, %v1115_v16 }
 0x3b3   :  { %v1098_v20 = vmul.f32 %v1744_v19, %v1097_v23 }
 0x3b4   :  { %v1117_v4 = vmul.f32 %v1746_v8, %v1116_v5 }
 0x3b5   :  { %v1748_v6 = vpop.eup %1747  ;;  %v1099_v15 = vadd.f32 %v1744_v19, %v1098_v20 }
 0x3b6   :  { %v1118_v24 = vadd.f32 %v1746_v8, %v1117_v4  ;;  %v1135_v3 = vmul.f32 %v1748_v6, %v1133_v11  ;;  %v1750_v17 = vpop.eup %1749  ;;  %vm1140_vm8 = vweird.f32 %v1748_v6 }
 0x3b7   :  { %v1103_v16 = vsel %vm1102_vm4, %v1744_v19, %v1099_v15  ;;  %v1143_v19 = vand.u32 2147483647, %v1133_v11  ;;  %vm1141_vm10 = vmor %vm1139_vm9, %vm1140_vm8  ;;  %v3236_v15 = vld [vmem:[#allocation61_spill] sm:$0xff] }
 0x3b8   :  { %v1108_v2 = vsel %vm1105_vm6, %v1107_v7, %v1103_v16  ;;  %v1122_v23 = vsel %vm1121_vm5, %v1746_v8, %v1118_v24  ;;  %v1136_v1 = vsub.f32 1.0, %v1135_v3 }
 0x3b9   :  { %v1127_v5 = vsel %vm1124_vm7, %v1126_v21, %v1122_v23  ;;  %v1149_v12 = vmul.f32 %v1750_v17, %v1108_v2  ;;  %vm1144_vm11 = vcmp.eq.f32.partialorder %v1143_v19, 8.507059e+37 }
 0x3ba   :  { %v1151_v9 = vmul.f32 %v1127_v5, %v2779_v28  ;;  %v1137_v20 = vmul.f32 %v1748_v6, %v1136_v1 }
 0x3bc   :  { %v2851_v25 = vadd.f32 %v1151_v9, %v1149_v12  ;;  %v1138_v22 = vadd.f32 %v1748_v6, %v1137_v20 }
 0x3be   :  { %1751 = vtanh.f32 %v2851_v25  ;;  %v1142_v14 = vsel %vm1141_vm10, %v1748_v6, %v1138_v22 }
 0x3bf   :  { %v1147_v3 = vsel %vm1144_vm11, %v1146_v18, %v1142_v14 }
 0x3c4   :  { %v1752_v27 = vpop.eup %1751 }
 0x3c5   :  { %v1154_v8 = vmul.f32 %v1752_v27, %v1147_v3 }
 0x3c7   :  { %1158 = vst [vmem:[#allocation12 + $0x20] sm:$0xff] %v1154_v8  ;;  %1176 = vmatmul.f32.vlgmr.msra.gmra.mxu0 %v1154_v8  ;;  %1196 = vmatmul.f32.vlgmr.msra.gmra.mxu1 %v1154_v8 }
 0x3c8   :  { %1216 = vmatmul.f32.vlgmr.msra.gmra.mxu2 %v1154_v8  ;;  %1236 = vmatmul.f32.vlgmr.msra.gmra.mxu3 %v1154_v8 }
 0x3c9   :  { %1466 = vmatpush.msra.mxu0 %v2510_v26  ;;  %1486 = vmatpush.msra.mxu1 %v2513_v29  ;;  %v3207_v26 = vld [vmem:[#allocation18_spill] sm:$0xff]  ;;  %v3208_v29 = vld [vmem:[#allocation17_spill] sm:$0xff] }
 0x3ca   :  { %1506 = vmatpush.msra.mxu2 %v2516_v30  ;;  %1526 = vmatpush.msra.mxu3 %v2519_v31  ;;  %v3209_v30 = vld [vmem:[#allocation19_spill] sm:$0xff]  ;;  %v3210_v31 = vld [vmem:[#allocation20_spill] sm:$0xff] }
 0x3cb   :  { %1467 = vmatpush.msra.mxu0 %v2522_v32  ;;  %1487 = vmatpush.msra.mxu1 %v2525_v33  ;;  %v3211_v32 = vld [vmem:[#allocation22_spill] sm:$0xff]  ;;  %v3212_v33 = vld [vmem:[#allocation21_spill] sm:$0xff] }
 0x3cc   :  { %1507 = vmatpush.msra.mxu2 %v2528_v34  ;;  %1527 = vmatpush.msra.mxu3 %v2531_v35  ;;  %v3213_v34 = vld [vmem:[#allocation23_spill] sm:$0xff]  ;;  %v3214_v35 = vld [vmem:[#allocation24_spill] sm:$0xff] }
 0x3cd   :  { %1468 = vmatpush.msra.mxu0 %v2534_v36  ;;  %1488 = vmatpush.msra.mxu1 %v2537_v37  ;;  %v3215_v36 = vld [vmem:[#allocation26_spill] sm:$0xff]  ;;  %v3216_v37 = vld [vmem:[#allocation25_spill] sm:$0xff] }
 0x3ce   :  { %1508 = vmatpush.msra.mxu2 %v2540_v38  ;;  %1528 = vmatpush.msra.mxu3 %v2543_v40  ;;  %v3217_v38 = vld [vmem:[#allocation27_spill] sm:$0xff]  ;;  %v3218_v40 = vld [vmem:[#allocation28_spill] sm:$0xff] }
 0x3cf   :  { %1469 = vmatpush.msra.mxu0 %v2546_v41  ;;  %1489 = vmatpush.msra.mxu1 %v2549_v42  ;;  %v3219_v41 = vld [vmem:[#allocation30_spill] sm:$0xff]  ;;  %v3220_v42 = vld [vmem:[#allocation29_spill] sm:$0xff] }
 0x3d0   :  { %1509 = vmatpush.msra.mxu2 %v2552_v43  ;;  %1529 = vmatpush.msra.mxu3 %v2555_v47  ;;  %v3221_v43 = vld [vmem:[#allocation31_spill] sm:$0xff]  ;;  %v3222_v47 = vld [vmem:[#allocation32_spill] sm:$0xff] }
 0x3d1   :  { %1470 = vmatpush.msra.mxu0 %v2558_v0  ;;  %1490 = vmatpush.msra.mxu1 %v2561_v46  ;;  %v3223_v0 = vld [vmem:[#allocation34_spill] sm:$0xff]  ;;  %v3224_v46 = vld [vmem:[#allocation33_spill] sm:$0xff] }
 0x3d2   :  { %1510 = vmatpush.msra.mxu2 %v2564_v60  ;;  %1530 = vmatpush.msra.mxu3 %v2567_v13  ;;  %v3225_v60 = vld [vmem:[#allocation35_spill] sm:$0xff]  ;;  %v3226_v13 = vld [vmem:[#allocation36_spill] sm:$0xff] }
 0x3d3   :  { %1471 = vmatpush.msra.mxu0 %v2570_v61  ;;  %1491 = vmatpush.msra.mxu1 %v2573_v39  ;;  %v3227_v61 = vld [vmem:[#allocation37_spill] sm:$0xff]  ;;  %v3228_v39 = vld [vmem:[#allocation38_spill] sm:$0xff] }
 0x3d4   :  { %1511 = vmatpush.msra.mxu2 %v2576_v50  ;;  %1531 = vmatpush.msra.mxu3 %v2579_v63  ;;  %v3229_v50 = vld [vmem:[#allocation39_spill] sm:$0xff]  ;;  %v3230_v63 = vld [vmem:[#allocation40_spill] sm:$0xff] }
 0x3d5   :  { %1472 = vmatpush.msra.mxu0 %v2582_v49  ;;  %1492 = vmatpush.msra.mxu1 %v2585_v44  ;;  %v3231_v49 = vld [vmem:[#allocation41_spill] sm:$0xff]  ;;  %v3232_v44 = vld [vmem:[#allocation42_spill] sm:$0xff] }
 0x3d6   :  { %1512 = vmatpush.msra.mxu2 %v2588_v45  ;;  %1532 = vmatpush.msra.mxu3 %v2591_v52 }
 0x3d7   :  { %1473 = vmatpush.msra.mxu0 %v2594_v51  ;;  %1493 = vmatpush.msra.mxu1 %v2597_v56  ;;  %v3233_v51 = vld [vmem:[#allocation59_spill] sm:$0xff] }
 0x3d8   :  { %1513 = vmatpush.msra.mxu2 %v2600_v53  ;;  %1533 = vmatpush.msra.mxu3 %v2603_v48  ;;  %v3234_v53 = vld [vmem:[#allocation60_spill] sm:$0xff] }
 0x3d9   :  { %1474 = vmatpush.msra.mxu0 %v2606_v54  ;;  %1494 = vmatpush.msra.mxu1 %v2609_v57 }
 0x3da   :  { %1514 = vmatpush.msra.mxu2 %v2612_v58  ;;  %1534 = vmatpush.msra.mxu3 %v2615_v62  ;;  %v3235_v62 = vld [vmem:[#allocation62_spill] sm:$0xff] }
 0x3db   :  { %1475 = vmatpush.msra.mxu0 %v2618_v59  ;;  %1495 = vmatpush.msra.mxu1 %v2621_v55 }
 0x3dc   :  { %1515 = vmatpush.msra.mxu2 %v3207_v26  ;;  %1535 = vmatpush.msra.mxu3 %v3208_v29 }
 0x3dd   :  { %1476 = vmatpush.msra.mxu0 %v3209_v30  ;;  %1496 = vmatpush.msra.mxu1 %v3210_v31 }
 0x3de   :  { %1516 = vmatpush.msra.mxu2 %v3211_v32  ;;  %1536 = vmatpush.msra.mxu3 %v3212_v33 }
 0x3df   :  { %1477 = vmatpush.msra.mxu0 %v3213_v34  ;;  %1497 = vmatpush.msra.mxu1 %v3214_v35 }
 0x3e0   :  { %1517 = vmatpush.msra.mxu2 %v3215_v36  ;;  %1537 = vmatpush.msra.mxu3 %v3216_v37 }
 0x3e1   :  { %1478 = vmatpush.msra.mxu0 %v3217_v38  ;;  %1498 = vmatpush.msra.mxu1 %v3218_v40 }
 0x3e2   :  { %1518 = vmatpush.msra.mxu2 %v3219_v41  ;;  %1538 = vmatpush.msra.mxu3 %v3220_v42 }
 0x3e3   :  { %1479 = vmatpush.msra.mxu0 %v3221_v43  ;;  %1499 = vmatpush.msra.mxu1 %v3222_v47 }
 0x3e4   :  { %1519 = vmatpush.msra.mxu2 %v3223_v0  ;;  %1539 = vmatpush.msra.mxu3 %v3224_v46 }
 0x3e5   :  { %1480 = vmatpush.msra.mxu0 %v3225_v60  ;;  %1500 = vmatpush.msra.mxu1 %v3226_v13 }
 0x3e6   :  { %1520 = vmatpush.msra.mxu2 %v3227_v61  ;;  %1540 = vmatpush.msra.mxu3 %v3228_v39  ;;  %v3237_v39 = vld [vmem:[#allocation63_spill] sm:$0xff] }
 0x3e7   :  { %1481 = vmatpush.msra.mxu0 %v3229_v50  ;;  %1501 = vmatpush.msra.mxu1 %v3230_v63  ;;  %v3238_v63 = vld [vmem:[#allocation64_spill] sm:$0xff] }
 0x3e8   :  { %1521 = vmatpush.msra.mxu2 %v3231_v49  ;;  %1541 = vmatpush.msra.mxu3 %v3232_v44 }
 0x444   :  { %v1177_v45 = vpop.f32.mrf.mxu0  ;;  %v1197_v52 = vpop.f32.mrf.mxu1 }
 0x445   :  { %v1240_v56 = vadd.f32 %v1177_v45, %v3233_v51  ;;  %v1241_v48 = vadd.f32 %v1197_v52, %v3234_v53  ;;  %v3239_v51 = vld [vmem:[#allocation66_spill] sm:$0xff] }
 0x447   :  { %v1654_v54 = vmul.f32 -1.442695, %v1240_v56  ;;  %v1655_v57 = vmul.f32 -1.442695, %v1241_v48 }
 0x449   :  { %1753 = vpow2.f32 %v1654_v54 }
 0x44a   :  { %1755 = vpow2.f32 %v1655_v57 }
 0x44b   :  { %v1237_v58 = vpop.f32.mrf.mxu3  ;;  %v1217_v2 = vpop.f32.mrf.mxu2 }
 0x44c   :  { %v1243_v59 = vadd.f32 %v1237_v58, %v3235_v62  ;;  %v1242_v7 = vadd.f32 %v1217_v2, %v3236_v15 }
 0x44e   :  { %v1656_v55 = vmul.f32 -1.442695, %v1243_v59 }
 0x44f   :  { %v1754_v28 = vpop.eup %1753 }
 0x450   :  { %v1756_v9 = vpop.eup %1755  ;;  %v1247_v12 = vadd.f32 1.0, %v1754_v28  ;;  %1757 = vpow2.f32 %v1656_v55 }
 0x451   :  { %v1266_v1 = vadd.f32 1.0, %v1756_v9  ;;  %v3240_v9 = vld [vmem:[#allocation65_spill] sm:$0xff] }
 0x452   :  { %1759 = vrcp.f32 %v1247_v12  ;;  %v1259_v5 = vand.u32 2147483648, %v1247_v12  ;;  %v1257_v10 = vand.u32 2147483647, %v1247_v12  ;;  %vm1253_vm14 = vweird.f32 %v1247_v12 }
 0x453   :  { %1761 = vrcp.f32 %v1266_v1  ;;  %v1278_v20 = vand.u32 2147483648, %v1266_v1  ;;  %v1276_v14 = vand.u32 2147483647, %v1266_v1  ;;  %vm1272_vm15 = vweird.f32 %v1266_v1 }
 0x454   :  { %v1260_v3 = vor.u32 1.1754944e-38, %v1259_v5  ;;  %vm1258_vm2 = vcmp.eq.f32.partialorder %v1257_v10, 8.507059e+37 }
 0x455   :  { %v1279_v29 = vor.u32 1.1754944e-38, %v1278_v20  ;;  %vm1277_vm3 = vcmp.eq.f32.partialorder %v1276_v14, 8.507059e+37 }
 0x456   :  { %v1758_v6 = vpop.eup %1757 }
 0x457   :  { %v1286_v11 = vadd.f32 1.0, %v1758_v6 }
 0x458   :  { %v1760_v4 = vpop.eup %1759 }
 0x459   :  { %v1762_v24 = vpop.eup %1761  ;;  %v1249_v21 = vmul.f32 %v1760_v4, %v1247_v12  ;;  %1763 = vrcp.f32 %v1286_v11  ;;  %vm1254_vm12 = vweird.f32 %v1760_v4  ;;  %v1298_v42 = vand.u32 2147483648, %v1286_v11 }
 0x45a   :  { %v1268_v16 = vmul.f32 %v1762_v24, %v1266_v1  ;;  %1765 = vtanh.f32 %v1242_v7  ;;  %vm1273_vm13 = vweird.f32 %v1762_v24  ;;  %vm1255_vm0 = vmor %vm1253_vm14, %vm1254_vm12  ;;  %vm1292_vm5 = vweird.f32 %v1286_v11 }
 0x45b   :  { %v1250_v17 = vsub.f32 1.0, %v1249_v21  ;;  %vm1274_vm1 = vmor %vm1272_vm15, %vm1273_vm13  ;;  %v1296_v43 = vand.u32 2147483647, %v1286_v11  ;;  %v1299_v0 = vor.u32 1.1754944e-38, %v1298_v42 }
 0x45c   :  { %v1269_v23 = vsub.f32 1.0, %v1268_v16 }
 0x45d   :  { %v1251_v22 = vmul.f32 %v1760_v4, %v1250_v17  ;;  %vm1297_vm7 = vcmp.eq.f32.partialorder %v1296_v43, 8.507059e+37 }
 0x45e   :  { %v1270_v19 = vmul.f32 %v1762_v24, %v1269_v23 }
 0x45f   :  { %v1764_v18 = vpop.eup %1763  ;;  %v1252_v27 = vadd.f32 %v1760_v4, %v1251_v22 }
 0x460   :  { %v1271_v8 = vadd.f32 %v1762_v24, %v1270_v19  ;;  %v1288_v26 = vmul.f32 %v1764_v18, %v1286_v11  ;;  %v1766_v31 = vpop.eup %1765  ;;  %vm1293_vm4 = vweird.f32 %v1764_v18 }
 0x461   :  { %v1256_v30 = vsel %vm1255_vm0, %v1760_v4, %v1252_v27  ;;  %vm1294_vm6 = vmor %vm1292_vm5, %vm1293_vm4 }
 0x462   :  { %v1261_v32 = vsel %vm1258_vm2, %v1260_v3, %v1256_v30  ;;  %v1275_v33 = vsel %vm1274_vm1, %v1762_v24, %v1271_v8  ;;  %v1289_v34 = vsub.f32 1.0, %v1288_v26 }
 0x463   :  { %v1280_v35 = vsel %vm1277_vm3, %v1279_v29, %v1275_v33  ;;  %v1302_v36 = vmul.f32 %v1766_v31, %v1261_v32 }
 0x464   :  { %v1304_v37 = vmul.f32 %v1280_v35, %v2851_v25  ;;  %v1290_v38 = vmul.f32 %v1764_v18, %v1289_v34 }
 0x466   :  { %v2923_v40 = vadd.f32 %v1304_v37, %v1302_v36  ;;  %v1291_v41 = vadd.f32 %v1764_v18, %v1290_v38 }
 0x468   :  { %1767 = vtanh.f32 %v2923_v40  ;;  %v1295_v47 = vsel %vm1294_vm6, %v1764_v18, %v1291_v41 }
 0x469   :  { %v1300_v60 = vsel %vm1297_vm7, %v1299_v0, %v1295_v47  ;;  %v3241_v47 = vld [vmem:[#allocation67_spill] sm:$0xff] }
 0x46e   :  { %v1768_v46 = vpop.eup %1767 }
 0x46f   :  { %v1307_v13 = vmul.f32 %v1768_v46, %v1300_v60  ;;  %v3242_v46 = vld [vmem:[#allocation68_spill] sm:$0xff] }
 0x471   :  { %1311 = vst [vmem:[#allocation12 + $0x28] sm:$0xff] %v1307_v13  ;;  %1329 = vmatmul.f32.vlgmr.msrb.gmra.mxu0 %v1307_v13  ;;  %1349 = vmatmul.f32.vlgmr.msrb.gmra.mxu1 %v1307_v13 }
 0x472   :  { %1369 = vmatmul.f32.vlgmr.msrb.gmra.mxu2 %v1307_v13  ;;  %1389 = vmatmul.f32.vlgmr.msrb.gmra.mxu3 %v1307_v13 }
 0x4ee   :  { %v1330_v25 = vpop.f32.mrf.mxu0  ;;  %v1350_v61 = vpop.f32.mrf.mxu1 }
 0x4ef   :  { %v1393_v50 = vadd.f32 %v1330_v25, %v3237_v39  ;;  %v1394_v49 = vadd.f32 %v1350_v61, %v3238_v63  ;;  %v3243_v39 = vld [vmem:[#allocation70_spill] sm:$0xff] }
 0x4f1   :  { %v1657_v44 = vmul.f32 -1.442695, %v1393_v50  ;;  %v1658_v45 = vmul.f32 -1.442695, %v1394_v49 }
 0x4f3   :  { %1769 = vpow2.f32 %v1657_v44 }
 0x4f4   :  { %1771 = vpow2.f32 %v1658_v45 }
 0x4f5   :  { %v1390_v52 = vpop.f32.mrf.mxu3  ;;  %v1370_v62 = vpop.f32.mrf.mxu2 }
 0x4f6   :  { %v1396_v56 = vadd.f32 %v1390_v52, %v3239_v51  ;;  %v1395_v12 = vadd.f32 %v1370_v62, %v3240_v9 }
 0x4f8   :  { %v1659_v53 = vmul.f32 -1.442695, %v1396_v56 }
 0x4f9   :  { %v1770_v48 = vpop.eup %1769 }
 0x4fa   :  { %v1772_v54 = vpop.eup %1771  ;;  %v1400_v57 = vadd.f32 1.0, %v1770_v48  ;;  %1773 = vpow2.f32 %v1659_v53 }
 0x4fb   :  { %v1419_v58 = vadd.f32 1.0, %v1772_v54  ;;  %v3244_v54 = vld [vmem:[#allocation69_spill] sm:$0xff] }
 0x4fc   :  { %1775 = vrcp.f32 %v1400_v57  ;;  %v1412_v15 = vand.u32 2147483648, %v1400_v57  ;;  %v1410_v21 = vand.u32 2147483647, %v1400_v57  ;;  %vm1406_vm10 = vweird.f32 %v1400_v57 }
 0x4fd   :  { %1777 = vrcp.f32 %v1419_v58  ;;  %v1431_v7 = vand.u32 2147483648, %v1419_v58  ;;  %v1429_v17 = vand.u32 2147483647, %v1419_v58  ;;  %vm1425_vm11 = vweird.f32 %v1419_v58 }
 0x4fe   :  { %v1413_v20 = vor.u32 1.1754944e-38, %v1412_v15  ;;  %vm1411_vm14 = vcmp.eq.f32.partialorder %v1410_v21, 8.507059e+37 }
 0x4ff   :  { %v1432_v19 = vor.u32 1.1754944e-38, %v1431_v7  ;;  %vm1430_vm15 = vcmp.eq.f32.partialorder %v1429_v17, 8.507059e+37 }
 0x500   :  { %v1774_v59 = vpop.eup %1773 }
 0x501   :  { %v1439_v55 = vadd.f32 1.0, %v1774_v59 }
 0x502   :  { %v1776_v28 = vpop.eup %1775 }
 0x503   :  { %v1778_v1 = vpop.eup %1777  ;;  %v1402_v2 = vmul.f32 %v1776_v28, %v1400_v57  ;;  %1779 = vrcp.f32 %v1439_v55  ;;  %vm1407_vm8 = vweird.f32 %v1776_v28  ;;  %v1451_v34 = vand.u32 2147483648, %v1439_v55 }
 0x504   :  { %v1421_v6 = vmul.f32 %v1778_v1, %v1419_v58  ;;  %1781 = vtanh.f32 %v1395_v12  ;;  %vm1426_vm9 = vweird.f32 %v1778_v1  ;;  %vm1408_vm12 = vmor %vm1406_vm10, %vm1407_vm8  ;;  %vm1445_vm1 = vweird.f32 %v1439_v55 }
 0x505   :  { %v1403_v11 = vsub.f32 1.0, %v1402_v2  ;;  %vm1427_vm13 = vmor %vm1425_vm11, %vm1426_vm9  ;;  %v1449_v35 = vand.u32 2147483647, %v1439_v55  ;;  %v1452_v37 = vor.u32 1.1754944e-38, %v1451_v34 }
 0x506   :  { %v1422_v4 = vsub.f32 1.0, %v1421_v6 }
 0x507   :  { %v1404_v24 = vmul.f32 %v1776_v28, %v1403_v11  ;;  %vm1450_vm3 = vcmp.eq.f32.partialorder %v1449_v35, 8.507059e+37 }
 0x508   :  { %v1423_v16 = vmul.f32 %v1778_v1, %v1422_v4 }
 0x509   :  { %v1780_v23 = vpop.eup %1779  ;;  %v1405_v5 = vadd.f32 %v1776_v28, %v1404_v24 }
 0x50a   :  { %v1424_v22 = vadd.f32 %v1778_v1, %v1423_v16  ;;  %v1441_v10 = vmul.f32 %v1780_v23, %v1439_v55  ;;  %v1782_v18 = vpop.eup %1781  ;;  %vm1446_vm0 = vweird.f32 %v1780_v23 }
 0x50b   :  { %v1409_v14 = vsel %vm1408_vm12, %v1776_v28, %v1405_v5  ;;  %vm1447_vm2 = vmor %vm1445_vm1, %vm1446_vm0 }
 0x50c   :  { %v1414_v27 = vsel %vm1411_vm14, %v1413_v20, %v1409_v14  ;;  %v1428_v3 = vsel %vm1427_vm13, %v1778_v1, %v1424_v22  ;;  %v1442_v8 = vsub.f32 1.0, %v1441_v10 }
 0x50d   :  { %v1433_v26 = vsel %vm1430_vm15, %v1432_v19, %v1428_v3  ;;  %v1455_v29 = vmul.f32 %v1782_v18, %v1414_v27 }
 0x50e   :  { %v1457_v30 = vmul.f32 %v1433_v26, %v2923_v40  ;;  %v1443_v31 = vmul.f32 %v1780_v23, %v1442_v8 }
 0x510   :  { %v2931_v32 = vadd.f32 %v1457_v30, %v1455_v29  ;;  %v1444_v33 = vadd.f32 %v1780_v23, %v1443_v31 }
 0x512   :  { %1783 = vtanh.f32 %v2931_v32  ;;  %v1448_v36 = vsel %vm1447_vm2, %v1780_v23, %v1444_v33 }
 0x513   :  { %v1453_v41 = vsel %vm1450_vm3, %v1452_v37, %v1448_v36 }
 0x518   :  { %v1784_v38 = vpop.eup %1783 }
 0x519   :  { %v1460_v42 = vmul.f32 %v1784_v38, %v1453_v41 }
 0x51b   :  { %1464 = vst [vmem:[#allocation12 + $0x30] sm:$0xff] %v1460_v42  ;;  %1482 = vmatmul.f32.vlgmr.msra.gmra.mxu0 %v1460_v42  ;;  %1502 = vmatmul.f32.vlgmr.msra.gmra.mxu1 %v1460_v42 }
 0x51c   :  { %1522 = vmatmul.f32.vlgmr.msra.gmra.mxu2 %v1460_v42  ;;  %1542 = vmatmul.f32.vlgmr.msra.gmra.mxu3 %v1460_v42 }
 0x598   :  { %v1483_v40 = vpop.f32.mrf.mxu0  ;;  %v1503_v43 = vpop.f32.mrf.mxu1 }
 0x599   :  { %v1546_v0 = vadd.f32 %v1483_v40, %v3241_v47  ;;  %v1547_v60 = vadd.f32 %v1503_v43, %v3242_v46 }
 0x59b   :  { %v1660_v13 = vmul.f32 -1.442695, %v1546_v0  ;;  %v1661_v25 = vmul.f32 -1.442695, %v1547_v60 }
 0x59d   :  { %1785 = vpow2.f32 %v1660_v13 }
 0x59e   :  { %1787 = vpow2.f32 %v1661_v25 }
 0x59f   :  { %v1543_v61 = vpop.f32.mrf.mxu3  ;;  %v1523_v51 = vpop.f32.mrf.mxu2 }
 0x5a0   :  { %v1549_v50 = vadd.f32 %v1543_v61, %v3243_v39  ;;  %v1548_v57 = vadd.f32 %v1523_v51, %v3244_v54 }
 0x5a2   :  { %v1662_v63 = vmul.f32 -1.442695, %v1549_v50 }
 0x5a3   :  { %v1786_v49 = vpop.eup %1785 }
 0x5a4   :  { %v1788_v44 = vpop.eup %1787  ;;  %v1553_v45 = vadd.f32 1.0, %v1786_v49  ;;  %1789 = vpow2.f32 %v1662_v63 }
 0x5a5   :  { %v1572_v52 = vadd.f32 1.0, %v1788_v44 }
 0x5a6   :  { %1791 = vrcp.f32 %v1553_v45  ;;  %v1565_v9 = vand.u32 2147483648, %v1553_v45  ;;  %v1563_v2 = vand.u32 2147483647, %v1553_v45  ;;  %vm1559_vm6 = vweird.f32 %v1553_v45 }
 0x5a7   :  { %1793 = vrcp.f32 %v1572_v52  ;;  %v1584_v12 = vand.u32 2147483648, %v1572_v52  ;;  %v1582_v11 = vand.u32 2147483647, %v1572_v52  ;;  %vm1578_vm7 = vweird.f32 %v1572_v52 }
 0x5a8   :  { %v1566_v7 = vor.u32 1.1754944e-38, %v1565_v9  ;;  %vm1564_vm10 = vcmp.eq.f32.partialorder %v1563_v2, 8.507059e+37 }
 0x5a9   :  { %v1585_v16 = vor.u32 1.1754944e-38, %v1584_v12  ;;  %vm1583_vm11 = vcmp.eq.f32.partialorder %v1582_v11, 8.507059e+37 }
 0x5aa   :  { %v1790_v56 = vpop.eup %1789 }
 0x5ab   :  { %v1592_v53 = vadd.f32 1.0, %v1790_v56 }
 0x5ac   :  { %v1792_v48 = vpop.eup %1791 }
 0x5ad   :  { %v1794_v58 = vpop.eup %1793  ;;  %v1555_v62 = vmul.f32 %v1792_v48, %v1553_v45  ;;  %1795 = vrcp.f32 %v1592_v53  ;;  %vm1560_vm4 = vweird.f32 %v1792_v48  ;;  %v1604_v8 = vand.u32 2147483648, %v1592_v53 }
 0x5ae   :  { %v1574_v59 = vmul.f32 %v1794_v58, %v1572_v52  ;;  %1797 = vtanh.f32 %v1548_v57  ;;  %vm1579_vm5 = vweird.f32 %v1794_v58  ;;  %vm1561_vm8 = vmor %vm1559_vm6, %vm1560_vm4  ;;  %vm1598_vm13 = vweird.f32 %v1592_v53 }
 0x5af   :  { %v1556_v55 = vsub.f32 1.0, %v1555_v62  ;;  %vm1580_vm9 = vmor %vm1578_vm7, %vm1579_vm5  ;;  %v1602_v26 = vand.u32 2147483647, %v1592_v53  ;;  %v1605_v30 = vor.u32 1.1754944e-38, %v1604_v8 }
 0x5b0   :  { %v1575_v28 = vsub.f32 1.0, %v1574_v59 }
 0x5b1   :  { %v1557_v1 = vmul.f32 %v1792_v48, %v1556_v55  ;;  %vm1603_vm15 = vcmp.eq.f32.partialorder %v1602_v26, 8.507059e+37 }
 0x5b2   :  { %v1576_v6 = vmul.f32 %v1794_v58, %v1575_v28 }
 0x5b3   :  { %v1796_v4 = vpop.eup %1795  ;;  %v1558_v15 = vadd.f32 %v1792_v48, %v1557_v1 }
 0x5b4   :  { %v1577_v24 = vadd.f32 %v1794_v58, %v1576_v6  ;;  %v1594_v21 = vmul.f32 %v1796_v4, %v1592_v53  ;;  %v1798_v23 = vpop.eup %1797  ;;  %vm1599_vm12 = vweird.f32 %v1796_v4 }
 0x5b5   :  { %v1562_v17 = vsel %vm1561_vm8, %v1792_v48, %v1558_v15  ;;  %vm1600_vm14 = vmor %vm1598_vm13, %vm1599_vm12 }
 0x5b6   :  { %v1567_v5 = vsel %vm1564_vm10, %v1566_v7, %v1562_v17  ;;  %v1581_v20 = vsel %vm1580_vm9, %v1794_v58, %v1577_v24  ;;  %v1595_v22 = vsub.f32 1.0, %v1594_v21 }
 0x5b7   :  { %v1586_v10 = vsel %vm1583_vm11, %v1585_v16, %v1581_v20  ;;  %v1608_v19 = vmul.f32 %v1798_v23, %v1567_v5 }
 0x5b8   :  { %v1610_v14 = vmul.f32 %v1586_v10, %v2931_v32  ;;  %v1596_v18 = vmul.f32 %v1796_v4, %v1595_v22 }
 0x5ba   :  { %v1611_v27 = vadd.f32 %v1610_v14, %v1608_v19  ;;  %v1597_v3 = vadd.f32 %v1796_v4, %v1596_v18 }
 0x5bc   :  { %1799 = vtanh.f32 %v1611_v27  ;;  %v1601_v29 = vsel %vm1600_vm14, %v1796_v4, %v1597_v3 }
 0x5bd   :  { %v1606_v32 = vsel %vm1603_vm15, %v1605_v30, %v1601_v29 }
 0x5c2   :  { %v1800_v31 = vpop.eup %1799 }
 0x5c3   :  { %v1613_v33 = vmul.f32 %v1800_v31, %v1606_v32 }
 0x5c5   :  { %1617 = vst [vmem:[#allocation12 + $0x38] sm:$0xff] %v1613_v33 }
 0x5c6   :  { %1630 = dma.vmem_to_hbm [thread:$0]  %s1623_s3, 1024, %s1625_s13, [#allocation6], %s1997_s27, %s1997_s27, %s1998_s28  }
 0x5c7   :  { %1991 = dma.done.wait [#allocation6], 1024  }
 0x5c8   :  { %1992 = vsyncadd [#allocation6], 4294966272 }
 0x5c9   :  { %1635 = vsyncpa [#allocation5], 1 }
 0x5ca   :  { %1636 = vsyncpa [#allocation8], 1 }
 0x5cb   :  { %1637 = vsyncpa [#allocation11], 1 }
 0x5cc   :  { %1638 = vsyncpa [#allocation6], 1 }

</bundles_post_ra>
